<compile_context>
chip_gen: v5e
topology: v5e:2x2
jax: 0.10.0
libtpu: 0.0.40
codegen_flags: <defaults>
</compile_context>

<pallas_src>
import jax
import jax.numpy as jnp
from jax.experimental import pallas as pl
from jax.experimental.pallas import tpu as pltpu

_EPS = 1e-5


# ---------------------------------------------------------------------------
# Fused kernel (closure over static shapes)
# ---------------------------------------------------------------------------

def _make_seek_kernel(H, W, C, PADL):
    HW = H * W
    bf16, f32 = jnp.bfloat16, jnp.float32

    def kernel(x_ref,                                  # (1, C, HW) f32
               w_in_ref, s_in_ref, b_in_ref,           # (C, 9C) bf16, (C,1), (C,1)
               w1_ref, s1_ref, b1_ref,                 # (C, C)  bf16, (C,1), (C,1)
               w2_ref, s2_ref, b2_ref,                 # (Ch,9C) bf16, (Ch,1),(Ch,1)
               w3_ref, s3_ref, b3_ref,                 # (C, Ch) bf16, (C,1), (C,1)
               sw1_ref, sb1_ref, sw2_ref, sb2_ref,     # (C,Cr), (1,Cr), (C,Cr), (C,1)
               o_ref,                                  # (1, C, HW) f32
               slab_ref,                               # (9C, HW) bf16 scratch
               pad_ref):                               # (C, HW+2*PADL) bf16 scratch
        # Zero the halo columns of the line buffer (cheap, done every step so it
        # stays correct when the batch grid axis is split across TensorCores).
        zero_halo = jnp.zeros((C, PADL), bf16)
        pad_ref[:, 0:PADL] = zero_halo
        pad_ref[:, PADL + HW:PADL + HW + PADL] = zero_halo

        # Column index of every flattened pixel, for left/right edge masking.
        w_pos = jax.lax.broadcasted_iota(jnp.int32, (1, HW), 1) % W
        not_left_edge = w_pos >= 1            # reading column w-1 is valid
        not_right_edge = w_pos < (W - 1)      # reading column w+1 is valid

        def conv3x3_bn_relu(t_bf, wflat_ref, s_ref, b_ref):
            # t_bf: (C, HW) bf16.  im2col slab + single MXU dot (K = 9C).
            pad_ref[:, PADL:PADL + HW] = t_bf
            for dy in range(3):
                for dx in range(3):
                    off = (dy - 1) * W + (dx - 1)
                    tap = pad_ref[:, PADL + off:PADL + off + HW]   # (C, HW)
                    if dx == 0:       # row-wrap pixels at w == 0 are invalid
                        tap = jnp.where(not_left_edge, tap, jnp.zeros_like(tap))
                    elif dx == 2:     # row-wrap pixels at w == W-1 are invalid
                        tap = jnp.where(not_right_edge, tap, jnp.zeros_like(tap))
                    t_idx = dy * 3 + dx
                    slab_ref[t_idx * C:(t_idx + 1) * C, :] = tap
            acc = jnp.dot(wflat_ref[...], slab_ref[...],
                          preferred_element_type=f32)              # (Cout, HW)
            return jnp.maximum(acc * s_ref[...] + b_ref[...], 0.0).astype(bf16)

        def conv1x1_bn_relu(t_bf, w_ref, s_ref, b_ref):
            acc = jnp.dot(w_ref[...], t_bf, preferred_element_type=f32)
            return jnp.maximum(acc * s_ref[...] + b_ref[...], 0.0).astype(bf16)

        def se(t_bf):
            # Squeeze-excite on the VPU/XLU (no M=1 MXU dots).  (C,HW)->(C,HW) f32
            t = t_bf.astype(f32)
            m = jnp.mean(t, axis=1, keepdims=True)                             # (C, 1)
            h = jnp.sum(sw1_ref[...] * m, axis=0, keepdims=True) + sb1_ref[...]  # (1, Cr)
            h = jnp.maximum(h, 0.0)
            g = jnp.sum(sw2_ref[...] * h, axis=1, keepdims=True) + sb2_ref[...]  # (C, 1)
            g = jax.nn.sigmoid(g)
            return t * g

        def seek_block(t_bf):
            a = conv1x1_bn_relu(t_bf, w1_ref, s1_ref, b1_ref)      # (C, HW)  bf16
            b = conv3x3_bn_relu(a, w2_ref, s2_ref, b2_ref)         # (Ch, HW) bf16
            c = conv1x1_bn_relu(b, w3_ref, s3_ref, b3_ref)         # (C, HW)  bf16
            return se(c)                                           # (C, HW)  f32

        x_bf = x_ref[0].astype(bf16)                                # (C, HW)
        x_in = conv3x3_bn_relu(x_bf, w_in_ref, s_in_ref, b_in_ref)  # bf16
        y = seek_block(x_in)                                        # f32
        y2 = seek_block(y.astype(bf16))                             # second block uses y
        out = x_in.astype(f32) + y + y2                             # = y1 + y2
        o_ref[...] = out.reshape(1, C, HW)

    return kernel


# ---------------------------------------------------------------------------
# Parameters (PyTorch layouts, BatchNorm folded) + forward wrapper
# ---------------------------------------------------------------------------

def _fold_bn(gamma, beta, mean, var):
    scale = gamma / jnp.sqrt(var + _EPS)
    return scale, beta - mean * scale


def init_params(key, n_features):
    C = n_features
    Ch = C // 2
    Cr = max(C // 8, 1)
    ks = jax.random.split(key, 12)

    def normal(k, shape, s=0.1):
        return jax.random.normal(k, shape, jnp.float32) * s

    def bn(k, c):
        k1, k2, k3, k4 = jax.random.split(k, 4)
        gamma = 1.0 + 0.1 * jax.random.normal(k1, (c,), jnp.float32)
        beta = 0.1 * jax.random.normal(k2, (c,), jnp.float32)
        mean = 0.1 * jax.random.normal(k3, (c,), jnp.float32)
        var = jax.random.uniform(k4, (c,), jnp.float32, 0.5, 1.5)
        return _fold_bn(gamma, beta, mean, var)

    p = {}
    p["w_in"] = normal(ks[0], (C, 3, 3, 3))        # Conv2d(3, C, 3)   (Cout,Cin,kh,kw)
    p["s_in"], p["b_in"] = bn(ks[1], C)
    p["w1"] = normal(ks[2], (C, C))                # Conv2d(C, C, 1)
    p["s1"], p["b1"] = bn(ks[3], C)
    p["w2"] = normal(ks[4], (Ch, C, 3, 3))         # Conv2d(C, C//2, 3)
    p["s2"], p["b2"] = bn(ks[5], Ch)
    p["w3"] = normal(ks[6], (C, Ch))               # Conv2d(C//2, C, 1)
    p["s3"], p["b3"] = bn(ks[7], C)
    p["se_w1"] = normal(ks[8], (Cr, C))            # Linear(C, C//8) weight
    p["se_b1"] = normal(ks[9], (Cr,))
    p["se_w2"] = normal(ks[10], (C, Cr))           # Linear(C//8, C) weight
    p["se_b2"] = normal(ks[11], (C,))
    return p


@jax.jit
def seek_forward(x_nchw, params):
    # x_nchw: (B, 3, H, W) float32 (PyTorch layout).
    B, Cin, H, W = x_nchw.shape
    C = params["w1"].shape[0]
    HW = H * W
    PADL = ((W + 1 + 127) // 128) * 128       # 128-aligned zero halo width

    bf16, f32 = jnp.bfloat16, jnp.float32

    # Channels-first flat layout (B, C, H*W): NCHW -> this is a pure reshape.
    # Pad the 3 input channels to C so all 3x3 convs share one im2col shape.
    x = x_nchw.reshape(B, Cin, HW)
    x = jnp.pad(x, ((0, 0), (0, C - Cin), (0, 0)))

    def flat3x3(w, cin_pad):
        # (Cout, Cin, 3, 3) -> (Cout, 9*cin_pad), tap-major (dy, dx, cin) order
        # matching the in-kernel slab layout.
        cout, cin = w.shape[0], w.shape[1]
        w = jnp.pad(w, ((0, 0), (0, cin_pad - cin), (0, 0), (0, 0)))
        return jnp.transpose(w, (0, 2, 3, 1)).reshape(cout, 9 * cin_pad).astype(bf16)

    def col(v):
        return v.reshape(-1, 1).astype(f32)

    args = (
        x,
        flat3x3(params["w_in"], C), col(params["s_in"]), col(params["b_in"]),
        params["w1"].astype(bf16), col(params["s1"]), col(params["b1"]),
        flat3x3(params["w2"], C), col(params["s2"]), col(params["b2"]),
        params["w3"].astype(bf16), col(params["s3"]), col(params["b3"]),
        params["se_w1"].T.astype(f32),                 # (C, Cr)
        params["se_b1"].reshape(1, -1).astype(f32),    # (1, Cr)
        params["se_w2"].astype(f32),                   # (C, Cr)
        params["se_b2"].reshape(-1, 1).astype(f32),    # (C, 1)
    )

    def full_spec(a):
        # TODO(synk): these blocks are grid-invariant; single-buffer them via
        # pipeline_mode=pl.Buffered(1) once verified on all target generations.
        return pl.BlockSpec(a.shape, lambda b, _nd=a.ndim: (0,) * _nd)

    in_specs = [pl.BlockSpec((1, C, HW), lambda b: (b, 0, 0))]
    in_specs += [full_spec(a) for a in args[1:]]

    try:   # per-generation VMEM budget (v7x: 64 MiB/TC vs 128 MiB on v5e/v6e)
        cap = pltpu.get_tpu_info().vmem_capacity_bytes
        vmem_limit = min((cap * 3) // 4, 100 * 1024 * 1024)
    except Exception:
        vmem_limit = 48 * 1024 * 1024

    out = pl.pallas_call(
        _make_seek_kernel(H, W, C, PADL),
        out_shape=jax.ShapeDtypeStruct((B, C, HW), f32),
        grid=(B,),
        in_specs=in_specs,
        out_specs=pl.BlockSpec((1, C, HW), lambda b: (b, 0, 0)),
        scratch_shapes=[
            pltpu.VMEM((9 * C, HW), bf16),             # im2col slab
            pltpu.VMEM((C, HW + 2 * PADL), bf16),      # zero-halo line buffer
        ],
        compiler_params=pltpu.CompilerParams(
            dimension_semantics=("parallel",),
            vmem_limit_bytes=int(vmem_limit)),
    )(*args)

    # TODO(synk): BatchNorm uses folded running stats (inference mode); PyTorch
    # training-mode batch statistics are not reproduced.
    # TODO(synk): for very large H*W*C (or B == 1 on v7x), add a spatially
    # row-tiled variant with a two-pass SE so both TensorCores stay busy.
    return out.reshape(B, C, H, W)     # back to NCHW


if __name__ == "__main__":
    key = jax.random.PRNGKey(0)
    k_x, k_p = jax.random.split(key)

    B, C_IN, H, W = 2, 3, 16, 16
    N_FEATURES = 16

    x = jax.random.normal(k_x, (B, C_IN, H, W), jnp.float32)
    params = init_params(k_p, N_FEATURES)

    out = jax.block_until_ready(seek_forward(x, params))

    assert out.shape == (B, N_FEATURES, H, W), out.shape
    assert bool(jnp.all(jnp.isfinite(out)))
    print("KERNEL_OK")
</pallas_src>

<mosaic_0001>
module attributes {stable_mosaic.version = 11 : i64} {
  func.func @kernel(%arg0: i32, %arg1: memref<1x16x256xf32, #tpu.memory_space<vmem>>, %arg2: memref<16x144xbf16, #tpu.memory_space<vmem>>, %arg3: memref<16x1xf32, #tpu.memory_space<vmem>>, %arg4: memref<16x1xf32, #tpu.memory_space<vmem>>, %arg5: memref<16x16xbf16, #tpu.memory_space<vmem>>, %arg6: memref<16x1xf32, #tpu.memory_space<vmem>>, %arg7: memref<16x1xf32, #tpu.memory_space<vmem>>, %arg8: memref<8x144xbf16, #tpu.memory_space<vmem>>, %arg9: memref<8x1xf32, #tpu.memory_space<vmem>>, %arg10: memref<8x1xf32, #tpu.memory_space<vmem>>, %arg11: memref<16x8xbf16, #tpu.memory_space<vmem>>, %arg12: memref<16x1xf32, #tpu.memory_space<vmem>>, %arg13: memref<16x1xf32, #tpu.memory_space<vmem>>, %arg14: memref<16x2xf32, #tpu.memory_space<vmem>>, %arg15: memref<1x2xf32, #tpu.memory_space<vmem>>, %arg16: memref<16x2xf32, #tpu.memory_space<vmem>>, %arg17: memref<16x1xf32, #tpu.memory_space<vmem>>, %arg18: memref<1x16x256xf32, #tpu.memory_space<vmem>>, %arg19: memref<144x256xbf16, #tpu.memory_space<vmem>>, %arg20: memref<16x512xbf16, #tpu.memory_space<vmem>>) attributes {dimension_semantics = [#tpu.dimension_semantics<parallel>], iteration_bounds = array<i64: 2>, scalar_prefetch = 0 : i64, scratch_operands = 2 : i64, tpu.core_type = #tpu.core_type<tc>, window_params = [{transform_indices = @transform_0, window_bounds = array<i64: 1, 16, 256>}, {pipeline_mode = #tpu.pipeline_mode<synchronous>, transform_indices = @transform_1, window_bounds = array<i64: 16, 144>}, {pipeline_mode = #tpu.pipeline_mode<synchronous>, transform_indices = @transform_2, window_bounds = array<i64: 16, 1>}, {pipeline_mode = #tpu.pipeline_mode<synchronous>, transform_indices = @transform_3, window_bounds = array<i64: 16, 1>}, {pipeline_mode = #tpu.pipeline_mode<synchronous>, transform_indices = @transform_4, window_bounds = array<i64: 16, 16>}, {pipeline_mode = #tpu.pipeline_mode<synchronous>, transform_indices = @transform_5, window_bounds = array<i64: 16, 1>}, {pipeline_mode = #tpu.pipeline_mode<synchronous>, transform_indices = @transform_6, window_bounds = array<i64: 16, 1>}, {pipeline_mode = #tpu.pipeline_mode<synchronous>, transform_indices = @transform_7, window_bounds = array<i64: 8, 144>}, {pipeline_mode = #tpu.pipeline_mode<synchronous>, transform_indices = @transform_8, window_bounds = array<i64: 8, 1>}, {pipeline_mode = #tpu.pipeline_mode<synchronous>, transform_indices = @transform_9, window_bounds = array<i64: 8, 1>}, {pipeline_mode = #tpu.pipeline_mode<synchronous>, transform_indices = @transform_10, window_bounds = array<i64: 16, 8>}, {pipeline_mode = #tpu.pipeline_mode<synchronous>, transform_indices = @transform_11, window_bounds = array<i64: 16, 1>}, {pipeline_mode = #tpu.pipeline_mode<synchronous>, transform_indices = @transform_12, window_bounds = array<i64: 16, 1>}, {pipeline_mode = #tpu.pipeline_mode<synchronous>, transform_indices = @transform_13, window_bounds = array<i64: 16, 2>}, {pipeline_mode = #tpu.pipeline_mode<synchronous>, transform_indices = @transform_14, window_bounds = array<i64: 1, 2>}, {pipeline_mode = #tpu.pipeline_mode<synchronous>, transform_indices = @transform_15, window_bounds = array<i64: 16, 2>}, {pipeline_mode = #tpu.pipeline_mode<synchronous>, transform_indices = @transform_16, window_bounds = array<i64: 16, 1>}, {transform_indices = @transform_17, window_bounds = array<i64: 1, 16, 256>}]} {
    %cst = arith.constant 0.000000e+00 : bf16
    %0 = vector.broadcast %cst : bf16 to vector<16x128xbf16>
    %c0 = arith.constant 0 : index
    %c0_0 = arith.constant 0 : index
    %1 = vector.load %arg20[%c0, %c0_0] : memref<16x512xbf16, #tpu.memory_space<vmem>>, vector<16x128xbf16>
    tpu.vector_store %arg20[%c0, %c0_0], %0 {strides = array<i32>} : memref<16x512xbf16, #tpu.memory_space<vmem>>, vector<16x128xbf16>,
    %c0_1 = arith.constant 0 : index
    %c384 = arith.constant 384 : index
    %2 = vector.load %arg20[%c0_1, %c384] : memref<16x512xbf16, #tpu.memory_space<vmem>>, vector<16x128xbf16>
    tpu.vector_store %arg20[%c0_1, %c384], %0 {strides = array<i32>} : memref<16x512xbf16, #tpu.memory_space<vmem>>, vector<16x128xbf16>,
    %3 = tpu.iota {dimensions = array<i32: 1>} : vector<1x256xi32>
    %c16_i32 = arith.constant 16 : i32
    %c0_i32 = arith.constant 0 : i32
    %4 = arith.cmpi eq, %c16_i32, %c0_i32 : i32
    %c1_i32 = arith.constant 1 : i32
    %5 = arith.select %4, %c1_i32, %c16_i32 : i32
    %6 = vector.broadcast %5 : i32 to vector<1x256xi32>
    %7 = arith.remsi %3, %6 : vector<1x256xi32>
    %c0_i32_2 = arith.constant 0 : i32
    %8 = vector.broadcast %c0_i32_2 : i32 to vector<1x256xi32>
    %9 = arith.cmpi ne, %7, %8 : vector<1x256xi32>
    %c0_i32_3 = arith.constant 0 : i32
    %10 = vector.broadcast %c0_i32_3 : i32 to vector<1x256xi32>
    %11 = arith.cmpi slt, %7, %10 : vector<1x256xi32>
    %c0_i32_4 = arith.constant 0 : i32
    %12 = arith.cmpi slt, %5, %c0_i32_4 : i32
    %13 = vector.broadcast %12 : i1 to vector<1x256xi1>
    %14 = vector.broadcast %13 : vector<1x256xi1> to vector<1x256xi1>
    %15 = arith.xori %11, %14 : vector<1x256xi1>
    %16 = arith.andi %15, %9 : vector<1x256xi1>
    %17 = vector.broadcast %5 : i32 to vector<1x256xi32>
    %18 = arith.addi %7, %17 : vector<1x256xi32>
    %19 = arith.select %16, %18, %7 : vector<1x256xi1>, vector<1x256xi32>
    %c1_i32_5 = arith.constant 1 : i32
    %20 = vector.broadcast %c1_i32_5 : i32 to vector<1x256xi32>
    %21 = arith.cmpi sge, %19, %20 : vector<1x256xi32>
    %c15_i32 = arith.constant 15 : i32
    %22 = vector.broadcast %c15_i32 : i32 to vector<1x256xi32>
    %23 = arith.cmpi slt, %19, %22 : vector<1x256xi32>
    %c0_6 = arith.constant 0 : index
    %c0_7 = arith.constant 0 : index
    %c0_8 = arith.constant 0 : index
    %24 = vector.load %arg1[%c0_6, %c0_7, %c0_8] : memref<1x16x256xf32, #tpu.memory_space<vmem>>, vector<1x16x256xf32>
    %25 = vector.shape_cast %24 : vector<1x16x256xf32> to vector<16x256xf32>
    %26 = arith.truncf %25 : vector<16x256xf32> to vector<16x256xbf16>
    %c0_9 = arith.constant 0 : index
    %c128 = arith.constant 128 : index
    %27 = vector.load %arg20[%c0_9, %c128] : memref<16x512xbf16, #tpu.memory_space<vmem>>, vector<16x256xbf16>
    tpu.vector_store %arg20[%c0_9, %c128], %26 {strides = array<i32>} : memref<16x512xbf16, #tpu.memory_space<vmem>>, vector<16x256xbf16>,
    %c0_10 = arith.constant 0 : index
    %c111 = arith.constant 111 : index
    %28 = vector.load %arg20[%c0_10, %c111] : memref<16x512xbf16, #tpu.memory_space<vmem>>, vector<16x256xbf16>
    %cst_11 = arith.constant 0.000000e+00 : bf16
    %29 = vector.broadcast %cst_11 : bf16 to vector<16x256xbf16>
    %30 = vector.shape_cast %21 : vector<1x256xi1> to vector<1x256xi1>
    %31 = vector.broadcast %30 : vector<1x256xi1> to vector<16x256xi1>
    %32 = arith.select %31, %28, %29 : vector<16x256xi1>, vector<16x256xbf16>
    %c0_12 = arith.constant 0 : index
    %c0_13 = arith.constant 0 : index
    %33 = vector.load %arg19[%c0_12, %c0_13] : memref<144x256xbf16, #tpu.memory_space<vmem>>, vector<16x256xbf16>
    tpu.vector_store %arg19[%c0_12, %c0_13], %32 {strides = array<i32>} : memref<144x256xbf16, #tpu.memory_space<vmem>>, vector<16x256xbf16>,
    %c0_14 = arith.constant 0 : index
    %c112 = arith.constant 112 : index
    %34 = vector.load %arg20[%c0_14, %c112] : memref<16x512xbf16, #tpu.memory_space<vmem>>, vector<16x256xbf16>
    %c16 = arith.constant 16 : index
    %c0_15 = arith.constant 0 : index
    %35 = vector.load %arg19[%c16, %c0_15] : memref<144x256xbf16, #tpu.memory_space<vmem>>, vector<16x256xbf16>
    tpu.vector_store %arg19[%c16, %c0_15], %34 {strides = array<i32>} : memref<144x256xbf16, #tpu.memory_space<vmem>>, vector<16x256xbf16>,
    %c0_16 = arith.constant 0 : index
    %c113 = arith.constant 113 : index
    %36 = vector.load %arg20[%c0_16, %c113] : memref<16x512xbf16, #tpu.memory_space<vmem>>, vector<16x256xbf16>
    %cst_17 = arith.constant 0.000000e+00 : bf16
    %37 = vector.broadcast %cst_17 : bf16 to vector<16x256xbf16>
    %38 = vector.shape_cast %23 : vector<1x256xi1> to vector<1x256xi1>
    %39 = vector.broadcast %38 : vector<1x256xi1> to vector<16x256xi1>
    %40 = arith.select %39, %36, %37 : vector<16x256xi1>, vector<16x256xbf16>
    %c32 = arith.constant 32 : index
    %c0_18 = arith.constant 0 : index
    %41 = vector.load %arg19[%c32, %c0_18] : memref<144x256xbf16, #tpu.memory_space<vmem>>, vector<16x256xbf16>
    tpu.vector_store %arg19[%c32, %c0_18], %40 {strides = array<i32>} : memref<144x256xbf16, #tpu.memory_space<vmem>>, vector<16x256xbf16>,
    %c0_19 = arith.constant 0 : index
    %c127 = arith.constant 127 : index
    %42 = vector.load %arg20[%c0_19, %c127] : memref<16x512xbf16, #tpu.memory_space<vmem>>, vector<16x256xbf16>
    %cst_20 = arith.constant 0.000000e+00 : bf16
    %43 = vector.broadcast %cst_20 : bf16 to vector<16x256xbf16>
    %44 = vector.shape_cast %21 : vector<1x256xi1> to vector<1x256xi1>
    %45 = vector.broadcast %44 : vector<1x256xi1> to vector<16x256xi1>
    %46 = arith.select %45, %42, %43 : vector<16x256xi1>, vector<16x256xbf16>
    %c48 = arith.constant 48 : index
    %c0_21 = arith.constant 0 : index
    %47 = vector.load %arg19[%c48, %c0_21] : memref<144x256xbf16, #tpu.memory_space<vmem>>, vector<16x256xbf16>
    tpu.vector_store %arg19[%c48, %c0_21], %46 {strides = array<i32>} : memref<144x256xbf16, #tpu.memory_space<vmem>>, vector<16x256xbf16>,
    %c0_22 = arith.constant 0 : index
    %c128_23 = arith.constant 128 : index
    %48 = vector.load %arg20[%c0_22, %c128_23] : memref<16x512xbf16, #tpu.memory_space<vmem>>, vector<16x256xbf16>
    %c64 = arith.constant 64 : index
    %c0_24 = arith.constant 0 : index
    %49 = vector.load %arg19[%c64, %c0_24] : memref<144x256xbf16, #tpu.memory_space<vmem>>, vector<16x256xbf16>
    tpu.vector_store %arg19[%c64, %c0_24], %48 {strides = array<i32>} : memref<144x256xbf16, #tpu.memory_space<vmem>>, vector<16x256xbf16>,
    %c0_25 = arith.constant 0 : index
    %c129 = arith.constant 129 : index
    %50 = vector.load %arg20[%c0_25, %c129] : memref<16x512xbf16, #tpu.memory_space<vmem>>, vector<16x256xbf16>
    %cst_26 = arith.constant 0.000000e+00 : bf16
    %51 = vector.broadcast %cst_26 : bf16 to vector<16x256xbf16>
    %52 = vector.shape_cast %23 : vector<1x256xi1> to vector<1x256xi1>
    %53 = vector.broadcast %52 : vector<1x256xi1> to vector<16x256xi1>
    %54 = arith.select %53, %50, %51 : vector<16x256xi1>, vector<16x256xbf16>
    %c80 = arith.constant 80 : index
    %c0_27 = arith.constant 0 : index
    %55 = vector.load %arg19[%c80, %c0_27] : memref<144x256xbf16, #tpu.memory_space<vmem>>, vector<16x256xbf16>
    tpu.vector_store %arg19[%c80, %c0_27], %54 {strides = array<i32>} : memref<144x256xbf16, #tpu.memory_space<vmem>>, vector<16x256xbf16>,
    %c0_28 = arith.constant 0 : index
    %c143 = arith.constant 143 : index
    %56 = vector.load %arg20[%c0_28, %c143] : memref<16x512xbf16, #tpu.memory_space<vmem>>, vector<16x256xbf16>
    %cst_29 = arith.constant 0.000000e+00 : bf16
    %57 = vector.broadcast %cst_29 : bf16 to vector<16x256xbf16>
    %58 = vector.shape_cast %21 : vector<1x256xi1> to vector<1x256xi1>
    %59 = vector.broadcast %58 : vector<1x256xi1> to vector<16x256xi1>
    %60 = arith.select %59, %56, %57 : vector<16x256xi1>, vector<16x256xbf16>
    %c96 = arith.constant 96 : index
    %c0_30 = arith.constant 0 : index
    %61 = vector.load %arg19[%c96, %c0_30] : memref<144x256xbf16, #tpu.memory_space<vmem>>, vector<16x256xbf16>
    tpu.vector_store %arg19[%c96, %c0_30], %60 {strides = array<i32>} : memref<144x256xbf16, #tpu.memory_space<vmem>>, vector<16x256xbf16>,
    %c0_31 = arith.constant 0 : index
    %c144 = arith.constant 144 : index
    %62 = vector.load %arg20[%c0_31, %c144] : memref<16x512xbf16, #tpu.memory_space<vmem>>, vector<16x256xbf16>
    %c112_32 = arith.constant 112 : index
    %c0_33 = arith.constant 0 : index
    %63 = vector.load %arg19[%c112_32, %c0_33] : memref<144x256xbf16, #tpu.memory_space<vmem>>, vector<16x256xbf16>
    tpu.vector_store %arg19[%c112_32, %c0_33], %62 {strides = array<i32>} : memref<144x256xbf16, #tpu.memory_space<vmem>>, vector<16x256xbf16>,
    %c0_34 = arith.constant 0 : index
    %c145 = arith.constant 145 : index
    %64 = vector.load %arg20[%c0_34, %c145] : memref<16x512xbf16, #tpu.memory_space<vmem>>, vector<16x256xbf16>
    %cst_35 = arith.constant 0.000000e+00 : bf16
    %65 = vector.broadcast %cst_35 : bf16 to vector<16x256xbf16>
    %66 = vector.shape_cast %23 : vector<1x256xi1> to vector<1x256xi1>
    %67 = vector.broadcast %66 : vector<1x256xi1> to vector<16x256xi1>
    %68 = arith.select %67, %64, %65 : vector<16x256xi1>, vector<16x256xbf16>
    %c128_36 = arith.constant 128 : index
    %c0_37 = arith.constant 0 : index
    %69 = vector.load %arg19[%c128_36, %c0_37] : memref<144x256xbf16, #tpu.memory_space<vmem>>, vector<16x256xbf16>
    tpu.vector_store %arg19[%c128_36, %c0_37], %68 {strides = array<i32>} : memref<144x256xbf16, #tpu.memory_space<vmem>>, vector<16x256xbf16>,
    %c0_38 = arith.constant 0 : index
    %c0_39 = arith.constant 0 : index
    %70 = vector.load %arg2[%c0_38, %c0_39] : memref<16x144xbf16, #tpu.memory_space<vmem>>, vector<16x144xbf16>
    %c0_40 = arith.constant 0 : index
    %c0_41 = arith.constant 0 : index
    %71 = vector.load %arg19[%c0_40, %c0_41] : memref<144x256xbf16, #tpu.memory_space<vmem>>, vector<144x256xbf16>
    %cst_42 = arith.constant dense<0.000000e+00> : vector<16x256xf32>
    %72 = tpu.matmul %70, %71, %cst_42 {dimension_numbers = #tpu.dot_dimension_numbers<[1], [0], [0], [1], [0, 0, 1, 1], [], []>} : vector<16x144xbf16>, vector<144x256xbf16>, vector<16x256xf32> -> vector<16x256xf32>
    %c0_43 = arith.constant 0 : index
    %c0_44 = arith.constant 0 : index
    %73 = vector.load %arg3[%c0_43, %c0_44] : memref<16x1xf32, #tpu.memory_space<vmem>>, vector<16x1xf32>
    %74 = vector.broadcast %73 : vector<16x1xf32> to vector<16x256xf32>
    %75 = arith.mulf %72, %74 : vector<16x256xf32>
    %c0_45 = arith.constant 0 : index
    %c0_46 = arith.constant 0 : index
    %76 = vector.load %arg4[%c0_45, %c0_46] : memref<16x1xf32, #tpu.memory_space<vmem>>, vector<16x1xf32>
    %77 = vector.broadcast %76 : vector<16x1xf32> to vector<16x256xf32>
    %78 = arith.addf %75, %77 : vector<16x256xf32>
    %cst_47 = arith.constant 0.000000e+00 : f32
    %79 = vector.broadcast %cst_47 : f32 to vector<16x256xf32>
    %80 = arith.maximumf %78, %79 : vector<16x256xf32>
    %81 = arith.truncf %80 : vector<16x256xf32> to vector<16x256xbf16>
    %c0_48 = arith.constant 0 : index
    %c0_49 = arith.constant 0 : index
    %82 = vector.load %arg5[%c0_48, %c0_49] : memref<16x16xbf16, #tpu.memory_space<vmem>>, vector<16x16xbf16>
    %cst_50 = arith.constant dense<0.000000e+00> : vector<16x256xf32>
    %83 = tpu.matmul %82, %81, %cst_50 {dimension_numbers = #tpu.dot_dimension_numbers<[1], [0], [0], [1], [0, 0, 1, 1], [], []>} : vector<16x16xbf16>, vector<16x256xbf16>, vector<16x256xf32> -> vector<16x256xf32>
    %c0_51 = arith.constant 0 : index
    %c0_52 = arith.constant 0 : index
    %84 = vector.load %arg6[%c0_51, %c0_52] : memref<16x1xf32, #tpu.memory_space<vmem>>, vector<16x1xf32>
    %85 = vector.broadcast %84 : vector<16x1xf32> to vector<16x256xf32>
    %86 = arith.mulf %83, %85 : vector<16x256xf32>
    %c0_53 = arith.constant 0 : index
    %c0_54 = arith.constant 0 : index
    %87 = vector.load %arg7[%c0_53, %c0_54] : memref<16x1xf32, #tpu.memory_space<vmem>>, vector<16x1xf32>
    %88 = vector.broadcast %87 : vector<16x1xf32> to vector<16x256xf32>
    %89 = arith.addf %86, %88 : vector<16x256xf32>
    %cst_55 = arith.constant 0.000000e+00 : f32
    %90 = vector.broadcast %cst_55 : f32 to vector<16x256xf32>
    %91 = arith.maximumf %89, %90 : vector<16x256xf32>
    %92 = arith.truncf %91 : vector<16x256xf32> to vector<16x256xbf16>
    %c0_56 = arith.constant 0 : index
    %c128_57 = arith.constant 128 : index
    %93 = vector.load %arg20[%c0_56, %c128_57] : memref<16x512xbf16, #tpu.memory_space<vmem>>, vector<16x256xbf16>
    tpu.vector_store %arg20[%c0_56, %c128_57], %92 {strides = array<i32>} : memref<16x512xbf16, #tpu.memory_space<vmem>>, vector<16x256xbf16>,
    %c0_58 = arith.constant 0 : index
    %c111_59 = arith.constant 111 : index
    %94 = vector.load %arg20[%c0_58, %c111_59] : memref<16x512xbf16, #tpu.memory_space<vmem>>, vector<16x256xbf16>
    %cst_60 = arith.constant 0.000000e+00 : bf16
    %95 = vector.broadcast %cst_60 : bf16 to vector<16x256xbf16>
    %96 = vector.shape_cast %21 : vector<1x256xi1> to vector<1x256xi1>
    %97 = vector.broadcast %96 : vector<1x256xi1> to vector<16x256xi1>
    %98 = arith.select %97, %94, %95 : vector<16x256xi1>, vector<16x256xbf16>
    %c0_61 = arith.constant 0 : index
    %c0_62 = arith.constant 0 : index
    %99 = vector.load %arg19[%c0_61, %c0_62] : memref<144x256xbf16, #tpu.memory_space<vmem>>, vector<16x256xbf16>
    tpu.vector_store %arg19[%c0_61, %c0_62], %98 {strides = array<i32>} : memref<144x256xbf16, #tpu.memory_space<vmem>>, vector<16x256xbf16>,
    %c0_63 = arith.constant 0 : index
    %c112_64 = arith.constant 112 : index
    %100 = vector.load %arg20[%c0_63, %c112_64] : memref<16x512xbf16, #tpu.memory_space<vmem>>, vector<16x256xbf16>
    %c16_65 = arith.constant 16 : index
    %c0_66 = arith.constant 0 : index
    %101 = vector.load %arg19[%c16_65, %c0_66] : memref<144x256xbf16, #tpu.memory_space<vmem>>, vector<16x256xbf16>
    tpu.vector_store %arg19[%c16_65, %c0_66], %100 {strides = array<i32>} : memref<144x256xbf16, #tpu.memory_space<vmem>>, vector<16x256xbf16>,
    %c0_67 = arith.constant 0 : index
    %c113_68 = arith.constant 113 : index
    %102 = vector.load %arg20[%c0_67, %c113_68] : memref<16x512xbf16, #tpu.memory_space<vmem>>, vector<16x256xbf16>
    %cst_69 = arith.constant 0.000000e+00 : bf16
    %103 = vector.broadcast %cst_69 : bf16 to vector<16x256xbf16>
    %104 = vector.shape_cast %23 : vector<1x256xi1> to vector<1x256xi1>
    %105 = vector.broadcast %104 : vector<1x256xi1> to vector<16x256xi1>
    %106 = arith.select %105, %102, %103 : vector<16x256xi1>, vector<16x256xbf16>
    %c32_70 = arith.constant 32 : index
    %c0_71 = arith.constant 0 : index
    %107 = vector.load %arg19[%c32_70, %c0_71] : memref<144x256xbf16, #tpu.memory_space<vmem>>, vector<16x256xbf16>
    tpu.vector_store %arg19[%c32_70, %c0_71], %106 {strides = array<i32>} : memref<144x256xbf16, #tpu.memory_space<vmem>>, vector<16x256xbf16>,
    %c0_72 = arith.constant 0 : index
    %c127_73 = arith.constant 127 : index
    %108 = vector.load %arg20[%c0_72, %c127_73] : memref<16x512xbf16, #tpu.memory_space<vmem>>, vector<16x256xbf16>
    %cst_74 = arith.constant 0.000000e+00 : bf16
    %109 = vector.broadcast %cst_74 : bf16 to vector<16x256xbf16>
    %110 = vector.shape_cast %21 : vector<1x256xi1> to vector<1x256xi1>
    %111 = vector.broadcast %110 : vector<1x256xi1> to vector<16x256xi1>
    %112 = arith.select %111, %108, %109 : vector<16x256xi1>, vector<16x256xbf16>
    %c48_75 = arith.constant 48 : index
    %c0_76 = arith.constant 0 : index
    %113 = vector.load %arg19[%c48_75, %c0_76] : memref<144x256xbf16, #tpu.memory_space<vmem>>, vector<16x256xbf16>
    tpu.vector_store %arg19[%c48_75, %c0_76], %112 {strides = array<i32>} : memref<144x256xbf16, #tpu.memory_space<vmem>>, vector<16x256xbf16>,
    %c0_77 = arith.constant 0 : index
    %c128_78 = arith.constant 128 : index
    %114 = vector.load %arg20[%c0_77, %c128_78] : memref<16x512xbf16, #tpu.memory_space<vmem>>, vector<16x256xbf16>
    %c64_79 = arith.constant 64 : index
    %c0_80 = arith.constant 0 : index
    %115 = vector.load %arg19[%c64_79, %c0_80] : memref<144x256xbf16, #tpu.memory_space<vmem>>, vector<16x256xbf16>
    tpu.vector_store %arg19[%c64_79, %c0_80], %114 {strides = array<i32>} : memref<144x256xbf16, #tpu.memory_space<vmem>>, vector<16x256xbf16>,
    %c0_81 = arith.constant 0 : index
    %c129_82 = arith.constant 129 : index
    %116 = vector.load %arg20[%c0_81, %c129_82] : memref<16x512xbf16, #tpu.memory_space<vmem>>, vector<16x256xbf16>
    %cst_83 = arith.constant 0.000000e+00 : bf16
    %117 = vector.broadcast %cst_83 : bf16 to vector<16x256xbf16>
    %118 = vector.shape_cast %23 : vector<1x256xi1> to vector<1x256xi1>
    %119 = vector.broadcast %118 : vector<1x256xi1> to vector<16x256xi1>
    %120 = arith.select %119, %116, %117 : vector<16x256xi1>, vector<16x256xbf16>
    %c80_84 = arith.constant 80 : index
    %c0_85 = arith.constant 0 : index
    %121 = vector.load %arg19[%c80_84, %c0_85] : memref<144x256xbf16, #tpu.memory_space<vmem>>, vector<16x256xbf16>
    tpu.vector_store %arg19[%c80_84, %c0_85], %120 {strides = array<i32>} : memref<144x256xbf16, #tpu.memory_space<vmem>>, vector<16x256xbf16>,
    %c0_86 = arith.constant 0 : index
    %c143_87 = arith.constant 143 : index
    %122 = vector.load %arg20[%c0_86, %c143_87] : memref<16x512xbf16, #tpu.memory_space<vmem>>, vector<16x256xbf16>
    %cst_88 = arith.constant 0.000000e+00 : bf16
    %123 = vector.broadcast %cst_88 : bf16 to vector<16x256xbf16>
    %124 = vector.shape_cast %21 : vector<1x256xi1> to vector<1x256xi1>
    %125 = vector.broadcast %124 : vector<1x256xi1> to vector<16x256xi1>
    %126 = arith.select %125, %122, %123 : vector<16x256xi1>, vector<16x256xbf16>
    %c96_89 = arith.constant 96 : index
    %c0_90 = arith.constant 0 : index
    %127 = vector.load %arg19[%c96_89, %c0_90] : memref<144x256xbf16, #tpu.memory_space<vmem>>, vector<16x256xbf16>
    tpu.vector_store %arg19[%c96_89, %c0_90], %126 {strides = array<i32>} : memref<144x256xbf16, #tpu.memory_space<vmem>>, vector<16x256xbf16>,
    %c0_91 = arith.constant 0 : index
    %c144_92 = arith.constant 144 : index
    %128 = vector.load %arg20[%c0_91, %c144_92] : memref<16x512xbf16, #tpu.memory_space<vmem>>, vector<16x256xbf16>
    %c112_93 = arith.constant 112 : index
    %c0_94 = arith.constant 0 : index
    %129 = vector.load %arg19[%c112_93, %c0_94] : memref<144x256xbf16, #tpu.memory_space<vmem>>, vector<16x256xbf16>
    tpu.vector_store %arg19[%c112_93, %c0_94], %128 {strides = array<i32>} : memref<144x256xbf16, #tpu.memory_space<vmem>>, vector<16x256xbf16>,
    %c0_95 = arith.constant 0 : index
    %c145_96 = arith.constant 145 : index
    %130 = vector.load %arg20[%c0_95, %c145_96] : memref<16x512xbf16, #tpu.memory_space<vmem>>, vector<16x256xbf16>
    %cst_97 = arith.constant 0.000000e+00 : bf16
    %131 = vector.broadcast %cst_97 : bf16 to vector<16x256xbf16>
    %132 = vector.shape_cast %23 : vector<1x256xi1> to vector<1x256xi1>
    %133 = vector.broadcast %132 : vector<1x256xi1> to vector<16x256xi1>
    %134 = arith.select %133, %130, %131 : vector<16x256xi1>, vector<16x256xbf16>
    %c128_98 = arith.constant 128 : index
    %c0_99 = arith.constant 0 : index
    %135 = vector.load %arg19[%c128_98, %c0_99] : memref<144x256xbf16, #tpu.memory_space<vmem>>, vector<16x256xbf16>
    tpu.vector_store %arg19[%c128_98, %c0_99], %134 {strides = array<i32>} : memref<144x256xbf16, #tpu.memory_space<vmem>>, vector<16x256xbf16>,
    %c0_100 = arith.constant 0 : index
    %c0_101 = arith.constant 0 : index
    %136 = vector.load %arg8[%c0_100, %c0_101] : memref<8x144xbf16, #tpu.memory_space<vmem>>, vector<8x144xbf16>
    %c0_102 = arith.constant 0 : index
    %c0_103 = arith.constant 0 : index
    %137 = vector.load %arg19[%c0_102, %c0_103] : memref<144x256xbf16, #tpu.memory_space<vmem>>, vector<144x256xbf16>
    %cst_104 = arith.constant dense<0.000000e+00> : vector<8x256xf32>
    %138 = tpu.matmul %136, %137, %cst_104 {dimension_numbers = #tpu.dot_dimension_numbers<[1], [0], [0], [1], [0, 0, 1, 1], [], []>} : vector<8x144xbf16>, vector<144x256xbf16>, vector<8x256xf32> -> vector<8x256xf32>
    %c0_105 = arith.constant 0 : index
    %c0_106 = arith.constant 0 : index
    %139 = vector.load %arg9[%c0_105, %c0_106] : memref<8x1xf32, #tpu.memory_space<vmem>>, vector<8x1xf32>
    %140 = vector.broadcast %139 : vector<8x1xf32> to vector<8x256xf32>
    %141 = arith.mulf %138, %140 : vector<8x256xf32>
    %c0_107 = arith.constant 0 : index
    %c0_108 = arith.constant 0 : index
    %142 = vector.load %arg10[%c0_107, %c0_108] : memref<8x1xf32, #tpu.memory_space<vmem>>, vector<8x1xf32>
    %143 = vector.broadcast %142 : vector<8x1xf32> to vector<8x256xf32>
    %144 = arith.addf %141, %143 : vector<8x256xf32>
    %cst_109 = arith.constant 0.000000e+00 : f32
    %145 = vector.broadcast %cst_109 : f32 to vector<8x256xf32>
    %146 = arith.maximumf %144, %145 : vector<8x256xf32>
    %147 = arith.truncf %146 : vector<8x256xf32> to vector<8x256xbf16>
    %c0_110 = arith.constant 0 : index
    %c0_111 = arith.constant 0 : index
    %148 = vector.load %arg11[%c0_110, %c0_111] : memref<16x8xbf16, #tpu.memory_space<vmem>>, vector<16x8xbf16>
    %cst_112 = arith.constant dense<0.000000e+00> : vector<16x256xf32>
    %149 = tpu.matmul %148, %147, %cst_112 {dimension_numbers = #tpu.dot_dimension_numbers<[1], [0], [0], [1], [0, 0, 1, 1], [], []>} : vector<16x8xbf16>, vector<8x256xbf16>, vector<16x256xf32> -> vector<16x256xf32>
    %c0_113 = arith.constant 0 : index
    %c0_114 = arith.constant 0 : index
    %150 = vector.load %arg12[%c0_113, %c0_114] : memref<16x1xf32, #tpu.memory_space<vmem>>, vector<16x1xf32>
    %151 = vector.broadcast %150 : vector<16x1xf32> to vector<16x256xf32>
    %152 = arith.mulf %149, %151 : vector<16x256xf32>
    %c0_115 = arith.constant 0 : index
    %c0_116 = arith.constant 0 : index
    %153 = vector.load %arg13[%c0_115, %c0_116] : memref<16x1xf32, #tpu.memory_space<vmem>>, vector<16x1xf32>
    %154 = vector.broadcast %153 : vector<16x1xf32> to vector<16x256xf32>
    %155 = arith.addf %152, %154 : vector<16x256xf32>
    %cst_117 = arith.constant 0.000000e+00 : f32
    %156 = vector.broadcast %cst_117 : f32 to vector<16x256xf32>
    %157 = arith.maximumf %155, %156 : vector<16x256xf32>
    %158 = arith.truncf %157 : vector<16x256xf32> to vector<16x256xbf16>
    %159 = arith.extf %158 : vector<16x256xbf16> to vector<16x256xf32>
    %cst_118 = arith.constant dense<0.000000e+00> : vector<16xf32>
    %160 = vector.multi_reduction <add>, %159, %cst_118 [1] : vector<16x256xf32> to vector<16xf32>
    %161 = vector.shape_cast %160 : vector<16xf32> to vector<16x1xf32>
    %cst_119 = arith.constant 2.560000e+02 : f32
    %162 = vector.broadcast %cst_119 : f32 to vector<16x1xf32>
    %163 = arith.divf %161, %162 : vector<16x1xf32>
    %c0_120 = arith.constant 0 : index
    %c0_121 = arith.constant 0 : index
    %164 = vector.load %arg14[%c0_120, %c0_121] : memref<16x2xf32, #tpu.memory_space<vmem>>, vector<16x2xf32>
    %165 = vector.broadcast %163 : vector<16x1xf32> to vector<16x2xf32>
    %166 = arith.mulf %164, %165 : vector<16x2xf32>
    %cst_122 = arith.constant dense<0.000000e+00> : vector<2xf32>
    %167 = vector.multi_reduction <add>, %166, %cst_122 [0] : vector<16x2xf32> to vector<2xf32>
    %168 = vector.shape_cast %167 : vector<2xf32> to vector<1x2xf32>
    %c0_123 = arith.constant 0 : index
    %c0_124 = arith.constant 0 : index
    %169 = vector.load %arg15[%c0_123, %c0_124] : memref<1x2xf32, #tpu.memory_space<vmem>>, vector<1x2xf32>
    %170 = arith.addf %168, %169 : vector<1x2xf32>
    %cst_125 = arith.constant 0.000000e+00 : f32
    %171 = vector.broadcast %cst_125 : f32 to vector<1x2xf32>
    %172 = arith.maximumf %170, %171 : vector<1x2xf32>
    %c0_126 = arith.constant 0 : index
    %c0_127 = arith.constant 0 : index
    %173 = vector.load %arg16[%c0_126, %c0_127] : memref<16x2xf32, #tpu.memory_space<vmem>>, vector<16x2xf32>
    %174 = vector.broadcast %172 : vector<1x2xf32> to vector<16x2xf32>
    %175 = arith.mulf %173, %174 : vector<16x2xf32>
    %cst_128 = arith.constant dense<0.000000e+00> : vector<16xf32>
    %176 = vector.multi_reduction <add>, %175, %cst_128 [1] : vector<16x2xf32> to vector<16xf32>
    %177 = vector.shape_cast %176 : vector<16xf32> to vector<16x1xf32>
    %c0_129 = arith.constant 0 : index
    %c0_130 = arith.constant 0 : index
    %178 = vector.load %arg17[%c0_129, %c0_130] : memref<16x1xf32, #tpu.memory_space<vmem>>, vector<16x1xf32>
    %179 = arith.addf %177, %178 : vector<16x1xf32>
    %180 = arith.negf %179 : vector<16x1xf32>
    %181 = math.exp %180 : vector<16x1xf32>
    %cst_131 = arith.constant 1.000000e+00 : f32
    %182 = vector.broadcast %cst_131 : f32 to vector<16x1xf32>
    %183 = arith.addf %182, %181 : vector<16x1xf32>
    %184 = arith.divf %182, %183 : vector<16x1xf32>
    %185 = vector.broadcast %184 : vector<16x1xf32> to vector<16x256xf32>
    %186 = arith.mulf %159, %185 : vector<16x256xf32>
    %187 = arith.truncf %186 : vector<16x256xf32> to vector<16x256xbf16>
    %c0_132 = arith.constant 0 : index
    %c0_133 = arith.constant 0 : index
    %188 = vector.load %arg5[%c0_132, %c0_133] : memref<16x16xbf16, #tpu.memory_space<vmem>>, vector<16x16xbf16>
    %cst_134 = arith.constant dense<0.000000e+00> : vector<16x256xf32>
    %189 = tpu.matmul %188, %187, %cst_134 {dimension_numbers = #tpu.dot_dimension_numbers<[1], [0], [0], [1], [0, 0, 1, 1], [], []>} : vector<16x16xbf16>, vector<16x256xbf16>, vector<16x256xf32> -> vector<16x256xf32>
    %c0_135 = arith.constant 0 : index
    %c0_136 = arith.constant 0 : index
    %190 = vector.load %arg6[%c0_135, %c0_136] : memref<16x1xf32, #tpu.memory_space<vmem>>, vector<16x1xf32>
    %191 = vector.broadcast %190 : vector<16x1xf32> to vector<16x256xf32>
    %192 = arith.mulf %189, %191 : vector<16x256xf32>
    %c0_137 = arith.constant 0 : index
    %c0_138 = arith.constant 0 : index
    %193 = vector.load %arg7[%c0_137, %c0_138] : memref<16x1xf32, #tpu.memory_space<vmem>>, vector<16x1xf32>
    %194 = vector.broadcast %193 : vector<16x1xf32> to vector<16x256xf32>
    %195 = arith.addf %192, %194 : vector<16x256xf32>
    %cst_139 = arith.constant 0.000000e+00 : f32
    %196 = vector.broadcast %cst_139 : f32 to vector<16x256xf32>
    %197 = arith.maximumf %195, %196 : vector<16x256xf32>
    %198 = arith.truncf %197 : vector<16x256xf32> to vector<16x256xbf16>
    %c0_140 = arith.constant 0 : index
    %c128_141 = arith.constant 128 : index
    %199 = vector.load %arg20[%c0_140, %c128_141] : memref<16x512xbf16, #tpu.memory_space<vmem>>, vector<16x256xbf16>
    tpu.vector_store %arg20[%c0_140, %c128_141], %198 {strides = array<i32>} : memref<16x512xbf16, #tpu.memory_space<vmem>>, vector<16x256xbf16>,
    %c0_142 = arith.constant 0 : index
    %c111_143 = arith.constant 111 : index
    %200 = vector.load %arg20[%c0_142, %c111_143] : memref<16x512xbf16, #tpu.memory_space<vmem>>, vector<16x256xbf16>
    %cst_144 = arith.constant 0.000000e+00 : bf16
    %201 = vector.broadcast %cst_144 : bf16 to vector<16x256xbf16>
    %202 = vector.shape_cast %21 : vector<1x256xi1> to vector<1x256xi1>
    %203 = vector.broadcast %202 : vector<1x256xi1> to vector<16x256xi1>
    %204 = arith.select %203, %200, %201 : vector<16x256xi1>, vector<16x256xbf16>
    %c0_145 = arith.constant 0 : index
    %c0_146 = arith.constant 0 : index
    %205 = vector.load %arg19[%c0_145, %c0_146] : memref<144x256xbf16, #tpu.memory_space<vmem>>, vector<16x256xbf16>
    tpu.vector_store %arg19[%c0_145, %c0_146], %204 {strides = array<i32>} : memref<144x256xbf16, #tpu.memory_space<vmem>>, vector<16x256xbf16>,
    %c0_147 = arith.constant 0 : index
    %c112_148 = arith.constant 112 : index
    %206 = vector.load %arg20[%c0_147, %c112_148] : memref<16x512xbf16, #tpu.memory_space<vmem>>, vector<16x256xbf16>
    %c16_149 = arith.constant 16 : index
    %c0_150 = arith.constant 0 : index
    %207 = vector.load %arg19[%c16_149, %c0_150] : memref<144x256xbf16, #tpu.memory_space<vmem>>, vector<16x256xbf16>
    tpu.vector_store %arg19[%c16_149, %c0_150], %206 {strides = array<i32>} : memref<144x256xbf16, #tpu.memory_space<vmem>>, vector<16x256xbf16>,
    %c0_151 = arith.constant 0 : index
    %c113_152 = arith.constant 113 : index
    %208 = vector.load %arg20[%c0_151, %c113_152] : memref<16x512xbf16, #tpu.memory_space<vmem>>, vector<16x256xbf16>
    %cst_153 = arith.constant 0.000000e+00 : bf16
    %209 = vector.broadcast %cst_153 : bf16 to vector<16x256xbf16>
    %210 = vector.shape_cast %23 : vector<1x256xi1> to vector<1x256xi1>
    %211 = vector.broadcast %210 : vector<1x256xi1> to vector<16x256xi1>
    %212 = arith.select %211, %208, %209 : vector<16x256xi1>, vector<16x256xbf16>
    %c32_154 = arith.constant 32 : index
    %c0_155 = arith.constant 0 : index
    %213 = vector.load %arg19[%c32_154, %c0_155] : memref<144x256xbf16, #tpu.memory_space<vmem>>, vector<16x256xbf16>
    tpu.vector_store %arg19[%c32_154, %c0_155], %212 {strides = array<i32>} : memref<144x256xbf16, #tpu.memory_space<vmem>>, vector<16x256xbf16>,
    %c0_156 = arith.constant 0 : index
    %c127_157 = arith.constant 127 : index
    %214 = vector.load %arg20[%c0_156, %c127_157] : memref<16x512xbf16, #tpu.memory_space<vmem>>, vector<16x256xbf16>
    %cst_158 = arith.constant 0.000000e+00 : bf16
    %215 = vector.broadcast %cst_158 : bf16 to vector<16x256xbf16>
    %216 = vector.shape_cast %21 : vector<1x256xi1> to vector<1x256xi1>
    %217 = vector.broadcast %216 : vector<1x256xi1> to vector<16x256xi1>
    %218 = arith.select %217, %214, %215 : vector<16x256xi1>, vector<16x256xbf16>
    %c48_159 = arith.constant 48 : index
    %c0_160 = arith.constant 0 : index
    %219 = vector.load %arg19[%c48_159, %c0_160] : memref<144x256xbf16, #tpu.memory_space<vmem>>, vector<16x256xbf16>
    tpu.vector_store %arg19[%c48_159, %c0_160], %218 {strides = array<i32>} : memref<144x256xbf16, #tpu.memory_space<vmem>>, vector<16x256xbf16>,
    %c0_161 = arith.constant 0 : index
    %c128_162 = arith.constant 128 : index
    %220 = vector.load %arg20[%c0_161, %c128_162] : memref<16x512xbf16, #tpu.memory_space<vmem>>, vector<16x256xbf16>
    %c64_163 = arith.constant 64 : index
    %c0_164 = arith.constant 0 : index
    %221 = vector.load %arg19[%c64_163, %c0_164] : memref<144x256xbf16, #tpu.memory_space<vmem>>, vector<16x256xbf16>
    tpu.vector_store %arg19[%c64_163, %c0_164], %220 {strides = array<i32>} : memref<144x256xbf16, #tpu.memory_space<vmem>>, vector<16x256xbf16>,
    %c0_165 = arith.constant 0 : index
    %c129_166 = arith.constant 129 : index
    %222 = vector.load %arg20[%c0_165, %c129_166] : memref<16x512xbf16, #tpu.memory_space<vmem>>, vector<16x256xbf16>
    %cst_167 = arith.constant 0.000000e+00 : bf16
    %223 = vector.broadcast %cst_167 : bf16 to vector<16x256xbf16>
    %224 = vector.shape_cast %23 : vector<1x256xi1> to vector<1x256xi1>
    %225 = vector.broadcast %224 : vector<1x256xi1> to vector<16x256xi1>
    %226 = arith.select %225, %222, %223 : vector<16x256xi1>, vector<16x256xbf16>
    %c80_168 = arith.constant 80 : index
    %c0_169 = arith.constant 0 : index
    %227 = vector.load %arg19[%c80_168, %c0_169] : memref<144x256xbf16, #tpu.memory_space<vmem>>, vector<16x256xbf16>
    tpu.vector_store %arg19[%c80_168, %c0_169], %226 {strides = array<i32>} : memref<144x256xbf16, #tpu.memory_space<vmem>>, vector<16x256xbf16>,
    %c0_170 = arith.constant 0 : index
    %c143_171 = arith.constant 143 : index
    %228 = vector.load %arg20[%c0_170, %c143_171] : memref<16x512xbf16, #tpu.memory_space<vmem>>, vector<16x256xbf16>
    %cst_172 = arith.constant 0.000000e+00 : bf16
    %229 = vector.broadcast %cst_172 : bf16 to vector<16x256xbf16>
    %230 = vector.shape_cast %21 : vector<1x256xi1> to vector<1x256xi1>
    %231 = vector.broadcast %230 : vector<1x256xi1> to vector<16x256xi1>
    %232 = arith.select %231, %228, %229 : vector<16x256xi1>, vector<16x256xbf16>
    %c96_173 = arith.constant 96 : index
    %c0_174 = arith.constant 0 : index
    %233 = vector.load %arg19[%c96_173, %c0_174] : memref<144x256xbf16, #tpu.memory_space<vmem>>, vector<16x256xbf16>
    tpu.vector_store %arg19[%c96_173, %c0_174], %232 {strides = array<i32>} : memref<144x256xbf16, #tpu.memory_space<vmem>>, vector<16x256xbf16>,
    %c0_175 = arith.constant 0 : index
    %c144_176 = arith.constant 144 : index
    %234 = vector.load %arg20[%c0_175, %c144_176] : memref<16x512xbf16, #tpu.memory_space<vmem>>, vector<16x256xbf16>
    %c112_177 = arith.constant 112 : index
    %c0_178 = arith.constant 0 : index
    %235 = vector.load %arg19[%c112_177, %c0_178] : memref<144x256xbf16, #tpu.memory_space<vmem>>, vector<16x256xbf16>
    tpu.vector_store %arg19[%c112_177, %c0_178], %234 {strides = array<i32>} : memref<144x256xbf16, #tpu.memory_space<vmem>>, vector<16x256xbf16>,
    %c0_179 = arith.constant 0 : index
    %c145_180 = arith.constant 145 : index
    %236 = vector.load %arg20[%c0_179, %c145_180] : memref<16x512xbf16, #tpu.memory_space<vmem>>, vector<16x256xbf16>
    %cst_181 = arith.constant 0.000000e+00 : bf16
    %237 = vector.broadcast %cst_181 : bf16 to vector<16x256xbf16>
    %238 = vector.shape_cast %23 : vector<1x256xi1> to vector<1x256xi1>
    %239 = vector.broadcast %238 : vector<1x256xi1> to vector<16x256xi1>
    %240 = arith.select %239, %236, %237 : vector<16x256xi1>, vector<16x256xbf16>
    %c128_182 = arith.constant 128 : index
    %c0_183 = arith.constant 0 : index
    %241 = vector.load %arg19[%c128_182, %c0_183] : memref<144x256xbf16, #tpu.memory_space<vmem>>, vector<16x256xbf16>
    tpu.vector_store %arg19[%c128_182, %c0_183], %240 {strides = array<i32>} : memref<144x256xbf16, #tpu.memory_space<vmem>>, vector<16x256xbf16>,
    %c0_184 = arith.constant 0 : index
    %c0_185 = arith.constant 0 : index
    %242 = vector.load %arg8[%c0_184, %c0_185] : memref<8x144xbf16, #tpu.memory_space<vmem>>, vector<8x144xbf16>
    %c0_186 = arith.constant 0 : index
    %c0_187 = arith.constant 0 : index
    %243 = vector.load %arg19[%c0_186, %c0_187] : memref<144x256xbf16, #tpu.memory_space<vmem>>, vector<144x256xbf16>
    %cst_188 = arith.constant dense<0.000000e+00> : vector<8x256xf32>
    %244 = tpu.matmul %242, %243, %cst_188 {dimension_numbers = #tpu.dot_dimension_numbers<[1], [0], [0], [1], [0, 0, 1, 1], [], []>} : vector<8x144xbf16>, vector<144x256xbf16>, vector<8x256xf32> -> vector<8x256xf32>
    %c0_189 = arith.constant 0 : index
    %c0_190 = arith.constant 0 : index
    %245 = vector.load %arg9[%c0_189, %c0_190] : memref<8x1xf32, #tpu.memory_space<vmem>>, vector<8x1xf32>
    %246 = vector.broadcast %245 : vector<8x1xf32> to vector<8x256xf32>
    %247 = arith.mulf %244, %246 : vector<8x256xf32>
    %c0_191 = arith.constant 0 : index
    %c0_192 = arith.constant 0 : index
    %248 = vector.load %arg10[%c0_191, %c0_192] : memref<8x1xf32, #tpu.memory_space<vmem>>, vector<8x1xf32>
    %249 = vector.broadcast %248 : vector<8x1xf32> to vector<8x256xf32>
    %250 = arith.addf %247, %249 : vector<8x256xf32>
    %cst_193 = arith.constant 0.000000e+00 : f32
    %251 = vector.broadcast %cst_193 : f32 to vector<8x256xf32>
    %252 = arith.maximumf %250, %251 : vector<8x256xf32>
    %253 = arith.truncf %252 : vector<8x256xf32> to vector<8x256xbf16>
    %c0_194 = arith.constant 0 : index
    %c0_195 = arith.constant 0 : index
    %254 = vector.load %arg11[%c0_194, %c0_195] : memref<16x8xbf16, #tpu.memory_space<vmem>>, vector<16x8xbf16>
    %cst_196 = arith.constant dense<0.000000e+00> : vector<16x256xf32>
    %255 = tpu.matmul %254, %253, %cst_196 {dimension_numbers = #tpu.dot_dimension_numbers<[1], [0], [0], [1], [0, 0, 1, 1], [], []>} : vector<16x8xbf16>, vector<8x256xbf16>, vector<16x256xf32> -> vector<16x256xf32>
    %c0_197 = arith.constant 0 : index
    %c0_198 = arith.constant 0 : index
    %256 = vector.load %arg12[%c0_197, %c0_198] : memref<16x1xf32, #tpu.memory_space<vmem>>, vector<16x1xf32>
    %257 = vector.broadcast %256 : vector<16x1xf32> to vector<16x256xf32>
    %258 = arith.mulf %255, %257 : vector<16x256xf32>
    %c0_199 = arith.constant 0 : index
    %c0_200 = arith.constant 0 : index
    %259 = vector.load %arg13[%c0_199, %c0_200] : memref<16x1xf32, #tpu.memory_space<vmem>>, vector<16x1xf32>
    %260 = vector.broadcast %259 : vector<16x1xf32> to vector<16x256xf32>
    %261 = arith.addf %258, %260 : vector<16x256xf32>
    %cst_201 = arith.constant 0.000000e+00 : f32
    %262 = vector.broadcast %cst_201 : f32 to vector<16x256xf32>
    %263 = arith.maximumf %261, %262 : vector<16x256xf32>
    %264 = arith.truncf %263 : vector<16x256xf32> to vector<16x256xbf16>
    %265 = arith.extf %264 : vector<16x256xbf16> to vector<16x256xf32>
    %cst_202 = arith.constant dense<0.000000e+00> : vector<16xf32>
    %266 = vector.multi_reduction <add>, %265, %cst_202 [1] : vector<16x256xf32> to vector<16xf32>
    %267 = vector.shape_cast %266 : vector<16xf32> to vector<16x1xf32>
    %cst_203 = arith.constant 2.560000e+02 : f32
    %268 = vector.broadcast %cst_203 : f32 to vector<16x1xf32>
    %269 = arith.divf %267, %268 : vector<16x1xf32>
    %c0_204 = arith.constant 0 : index
    %c0_205 = arith.constant 0 : index
    %270 = vector.load %arg14[%c0_204, %c0_205] : memref<16x2xf32, #tpu.memory_space<vmem>>, vector<16x2xf32>
    %271 = vector.broadcast %269 : vector<16x1xf32> to vector<16x2xf32>
    %272 = arith.mulf %270, %271 : vector<16x2xf32>
    %cst_206 = arith.constant dense<0.000000e+00> : vector<2xf32>
    %273 = vector.multi_reduction <add>, %272, %cst_206 [0] : vector<16x2xf32> to vector<2xf32>
    %274 = vector.shape_cast %273 : vector<2xf32> to vector<1x2xf32>
    %c0_207 = arith.constant 0 : index
    %c0_208 = arith.constant 0 : index
    %275 = vector.load %arg15[%c0_207, %c0_208] : memref<1x2xf32, #tpu.memory_space<vmem>>, vector<1x2xf32>
    %276 = arith.addf %274, %275 : vector<1x2xf32>
    %cst_209 = arith.constant 0.000000e+00 : f32
    %277 = vector.broadcast %cst_209 : f32 to vector<1x2xf32>
    %278 = arith.maximumf %276, %277 : vector<1x2xf32>
    %c0_210 = arith.constant 0 : index
    %c0_211 = arith.constant 0 : index
    %279 = vector.load %arg16[%c0_210, %c0_211] : memref<16x2xf32, #tpu.memory_space<vmem>>, vector<16x2xf32>
    %280 = vector.broadcast %278 : vector<1x2xf32> to vector<16x2xf32>
    %281 = arith.mulf %279, %280 : vector<16x2xf32>
    %cst_212 = arith.constant dense<0.000000e+00> : vector<16xf32>
    %282 = vector.multi_reduction <add>, %281, %cst_212 [1] : vector<16x2xf32> to vector<16xf32>
    %283 = vector.shape_cast %282 : vector<16xf32> to vector<16x1xf32>
    %c0_213 = arith.constant 0 : index
    %c0_214 = arith.constant 0 : index
    %284 = vector.load %arg17[%c0_213, %c0_214] : memref<16x1xf32, #tpu.memory_space<vmem>>, vector<16x1xf32>
    %285 = arith.addf %283, %284 : vector<16x1xf32>
    %286 = arith.negf %285 : vector<16x1xf32>
    %287 = math.exp %286 : vector<16x1xf32>
    %cst_215 = arith.constant 1.000000e+00 : f32
    %288 = vector.broadcast %cst_215 : f32 to vector<16x1xf32>
    %289 = arith.addf %288, %287 : vector<16x1xf32>
    %290 = arith.divf %288, %289 : vector<16x1xf32>
    %291 = vector.broadcast %290 : vector<16x1xf32> to vector<16x256xf32>
    %292 = arith.mulf %265, %291 : vector<16x256xf32>
    %293 = arith.extf %81 : vector<16x256xbf16> to vector<16x256xf32>
    %294 = arith.addf %293, %186 : vector<16x256xf32>
    %295 = arith.addf %294, %292 : vector<16x256xf32>
    %296 = vector.shape_cast %295 : vector<16x256xf32> to vector<1x16x256xf32>
    %c0_216 = arith.constant 0 : index
    %c0_217 = arith.constant 0 : index
    %c0_218 = arith.constant 0 : index
    %297 = vector.load %arg18[%c0_216, %c0_217, %c0_218] : memref<1x16x256xf32, #tpu.memory_space<vmem>>, vector<1x16x256xf32>
    tpu.vector_store %arg18[%c0_216, %c0_217, %c0_218], %296 {strides = array<i32>} : memref<1x16x256xf32, #tpu.memory_space<vmem>>, vector<1x16x256xf32>,
    return
  }
  func.func @transform_0(%arg0: i32) -> (i32, i32, i32) {
    %c0_i32 = arith.constant 0 : i32
    %c0_i32_0 = arith.constant 0 : i32
    %c0_i32_1 = arith.constant 0 : i32
    return %arg0, %c0_i32, %c0_i32_0 : i32, i32, i32
  }
  func.func @transform_1(%arg0: i32) -> (i32, i32) {
    %c0_i32 = arith.constant 0 : i32
    %c0_i32_0 = arith.constant 0 : i32
    %c0_i32_1 = arith.constant 0 : i32
    return %c0_i32, %c0_i32_0 : i32, i32
  }
  func.func @transform_2(%arg0: i32) -> (i32, i32) {
    %c0_i32 = arith.constant 0 : i32
    %c0_i32_0 = arith.constant 0 : i32
    %c0_i32_1 = arith.constant 0 : i32
    return %c0_i32, %c0_i32_0 : i32, i32
  }
  func.func @transform_3(%arg0: i32) -> (i32, i32) {
    %c0_i32 = arith.constant 0 : i32
    %c0_i32_0 = arith.constant 0 : i32
    %c0_i32_1 = arith.constant 0 : i32
    return %c0_i32, %c0_i32_0 : i32, i32
  }
  func.func @transform_4(%arg0: i32) -> (i32, i32) {
    %c0_i32 = arith.constant 0 : i32
    %c0_i32_0 = arith.constant 0 : i32
    %c0_i32_1 = arith.constant 0 : i32
    return %c0_i32, %c0_i32_0 : i32, i32
  }
  func.func @transform_5(%arg0: i32) -> (i32, i32) {
    %c0_i32 = arith.constant 0 : i32
    %c0_i32_0 = arith.constant 0 : i32
    %c0_i32_1 = arith.constant 0 : i32
    return %c0_i32, %c0_i32_0 : i32, i32
  }
  func.func @transform_6(%arg0: i32) -> (i32, i32) {
    %c0_i32 = arith.constant 0 : i32
    %c0_i32_0 = arith.constant 0 : i32
    %c0_i32_1 = arith.constant 0 : i32
    return %c0_i32, %c0_i32_0 : i32, i32
  }
  func.func @transform_7(%arg0: i32) -> (i32, i32) {
    %c0_i32 = arith.constant 0 : i32
    %c0_i32_0 = arith.constant 0 : i32
    %c0_i32_1 = arith.constant 0 : i32
    return %c0_i32, %c0_i32_0 : i32, i32
  }
  func.func @transform_8(%arg0: i32) -> (i32, i32) {
    %c0_i32 = arith.constant 0 : i32
    %c0_i32_0 = arith.constant 0 : i32
    %c0_i32_1 = arith.constant 0 : i32
    return %c0_i32, %c0_i32_0 : i32, i32
  }
  func.func @transform_9(%arg0: i32) -> (i32, i32) {
    %c0_i32 = arith.constant 0 : i32
    %c0_i32_0 = arith.constant 0 : i32
    %c0_i32_1 = arith.constant 0 : i32
    return %c0_i32, %c0_i32_0 : i32, i32
  }
  func.func @transform_10(%arg0: i32) -> (i32, i32) {
    %c0_i32 = arith.constant 0 : i32
    %c0_i32_0 = arith.constant 0 : i32
    %c0_i32_1 = arith.constant 0 : i32
    return %c0_i32, %c0_i32_0 : i32, i32
  }
  func.func @transform_11(%arg0: i32) -> (i32, i32) {
    %c0_i32 = arith.constant 0 : i32
    %c0_i32_0 = arith.constant 0 : i32
    %c0_i32_1 = arith.constant 0 : i32
    return %c0_i32, %c0_i32_0 : i32, i32
  }
  func.func @transform_12(%arg0: i32) -> (i32, i32) {
    %c0_i32 = arith.constant 0 : i32
    %c0_i32_0 = arith.constant 0 : i32
    %c0_i32_1 = arith.constant 0 : i32
    return %c0_i32, %c0_i32_0 : i32, i32
  }
  func.func @transform_13(%arg0: i32) -> (i32, i32) {
    %c0_i32 = arith.constant 0 : i32
    %c0_i32_0 = arith.constant 0 : i32
    %c0_i32_1 = arith.constant 0 : i32
    return %c0_i32, %c0_i32_0 : i32, i32
  }
  func.func @transform_14(%arg0: i32) -> (i32, i32) {
    %c0_i32 = arith.constant 0 : i32
    %c0_i32_0 = arith.constant 0 : i32
    %c0_i32_1 = arith.constant 0 : i32
    return %c0_i32, %c0_i32_0 : i32, i32
  }
  func.func @transform_15(%arg0: i32) -> (i32, i32) {
    %c0_i32 = arith.constant 0 : i32
    %c0_i32_0 = arith.constant 0 : i32
    %c0_i32_1 = arith.constant 0 : i32
    return %c0_i32, %c0_i32_0 : i32, i32
  }
  func.func @transform_16(%arg0: i32) -> (i32, i32) {
    %c0_i32 = arith.constant 0 : i32
    %c0_i32_0 = arith.constant 0 : i32
    %c0_i32_1 = arith.constant 0 : i32
    return %c0_i32, %c0_i32_0 : i32, i32
  }
  func.func @transform_17(%arg0: i32) -> (i32, i32, i32) {
    %c0_i32 = arith.constant 0 : i32
    %c0_i32_0 = arith.constant 0 : i32
    %c0_i32_1 = arith.constant 0 : i32
    return %arg0, %c0_i32, %c0_i32_0 : i32, i32, i32
  }
}

</mosaic_0001>

<bundles_post_ra>
// kernel: seek_forward.1
= control target key start
LH: loop header
LB: loop body
LE: loop exit
PB: predicated region body
PF: predicated region fallthrough
CT: control target
= control target key end

     0   :  { %s3218_s24 = smov 0   ;;  %s4053_s0 = inlined_call_operand.vmem [shape: f32[2,16,256], index: 0, kind: input, shape index: {}]   ;;  %s4054_s1 = inlined_call_operand.vmem [shape: bf16[16,144], index: 1, kind: input, shape index: {}]   ;;  %s4055_s2 = inlined_call_operand.vmem [shape: f32[16,1], index: 2, kind: input, shape index: {}]   ;;  %s4056_s3 = inlined_call_operand.vmem [shape: f32[16,1], index: 3, kind: input, shape index: {}]   ;;  %s4057_s4 = inlined_call_operand.vmem [shape: bf16[16,16], index: 4, kind: input, shape index: {}]   ;;  %s4058_s5 = inlined_call_operand.vmem [shape: f32[16,1], index: 5, kind: input, shape index: {}]   ;;  %s4059_s6 = inlined_call_operand.vmem [shape: f32[16,1], index: 6, kind: input, shape index: {}]   ;;  %s4060_s7 = inlined_call_operand.vmem [shape: bf16[8,144], index: 7, kind: input, shape index: {}]   ;;  %s4061_s8 = inlined_call_operand.vmem [shape: f32[8,1], index: 8, kind: input, shape index: {}]   ;;  %s4062_s9 = inlined_call_operand.vmem [shape: f32[8,1], index: 9, kind: input, shape index: {}]   ;;  %s4063_s10 = inlined_call_operand.vmem [shape: bf16[16,8], index: 10, kind: input, shape index: {}]   ;;  %s4064_s11 = inlined_call_operand.vmem [shape: f32[16,1], index: 11, kind: input, shape index: {}]   ;;  %s4065_s12 = inlined_call_operand.vmem [shape: f32[16,1], index: 12, kind: input, shape index: {}]   ;;  %s4066_s13 = inlined_call_operand.vmem [shape: f32[16,2], index: 13, kind: input, shape index: {}]   ;;  %s4067_s14 = inlined_call_operand.vmem [shape: f32[1,2], index: 14, kind: input, shape index: {}]   ;;  %s4068_s15 = inlined_call_operand.vmem [shape: f32[16,2], index: 15, kind: input, shape index: {}]   ;;  %s4069_s16 = inlined_call_operand.vmem [shape: f32[16,1], index: 16, kind: input, shape index: {}]   ;;  %s4070_s17 = inlined_call_operand.vmem [shape: f32[2,16,256], index: 17, kind: output, shape index: {}]  }
   0x1   :  { %4104 = sst [smem:[#allocation4_spill]] %s4053_s0 }
   0x2   :  { %4105 = sst [smem:[#allocation5_spill]] %s4054_s1 }
   0x3 LB: > { %s2680_s25 = sadd.s32 4294967295, %s3116_s24   ;;  %p2684_p0 = scmp.ge.s32.totalorder %s3116_s24, 1  ;;  %s3116_s24 = sphi %s3218_s24, %s27_s24  }
   0x4   : > { %p487_p1 = scmp.lt.s32.totalorder %s3116_s24, 3 }
   0x6   : > { %p488_p2 = pnand %p2684_p0, %p487_p1 }
   0x7   : > { %p539_p3 = scmp.lt.s32.totalorder (!%p488_p2), %s2680_s25, 1  ;;  %s4106_s29 = sld [smem:[#allocation4_spill]] (!%p488_p2) }
   0x8   : > { %491 = sbr.rel (%p488_p2) target bundleno = 2588 (0xa1c), region = 88  ;;  %s4085_s30 = smov (!%p488_p2), 127  }
   0x9   : > { %s4089_s18 = smov (!%p488_p2), 15   ;;  %s4087_s19 = smov (!%p488_p2), 111  }
   0xa   : > { %s3122_s1 = smov (!%p488_p2), 113   ;;  %s4091_s20 = smov (!%p488_p2), 1  }
   0xb   : > { %s4083_s21 = smov (!%p488_p2), 17   ;;  %s3125_s22 = smov (!%p488_p2), 112  }
   0xc   : > { %s3126_s23 = smov (!%p488_p2), 16   ;;  %s4145_s28 = sld [smem:[#allocation5_spill]] (!%p488_p2) }
   0xd   : > { %v556_v0 = vlaneseq  ;;  %v3118_v1 = vmov 0   ;;  %s4218_s25 = smov (!%p539_p3, %s2680_s25), 1  ;;  %vm4073_vm11 = vcmask 121856   ;;  %v4113_v40 = vmov 0  ;;  %s4150_s27 = smov 17  }
   0xe   : > { %552 = vst [vmem:[#allocation3] sm:$0xf] %v3118_v1  ;;  %3050 = vset.pattern.permute.xlu2 %v3118_v1  ;;  %3049 = vset.pattern.permute.xlu1 %v3118_v1  ;;  %s4081_s26 = sshll.u32 %s4218_s25, 5  ;;  %v3294_v29 = vunpack.c.l.b16 %v3118_v1  ;;  %v3297_v30 = vunpack.c.h.b16 %v3118_v1 }
   0xf   : > { %v557_v2 = vand.u32 127, %v556_v0  ;;  %553 = vst [vmem:[#allocation3 + $0x10] sm:$0xf] %v3118_v1  ;;  %3051 = vset.pattern.permute.xlu0 %v3118_v1  ;;  %s543_s0 = scalar_lea.vmem %s4106_s29, %s4081_s26 }
  0x10   : > { %554 = vst [vmem:[#allocation3 + $0xc] sm:$0xf] %v3118_v1  ;;  %v587_v6 = vld [vmem:[%s543_s0] sm:$0xff]  ;;  %v588_v7 = vld [vmem:[%s543_s0 + $0x8] sm:$0xff]  ;;  %v589_v12 = vld [vmem:[%s543_s0 + $0x10] sm:$0xff] }
  0x11   : > { %v558_v3 = vadd.s32 128, %v557_v2  ;;  %v563_v4 = vand.u32 15, %v557_v2  ;;  %555 = vst [vmem:[#allocation3 + $0x1c] sm:$0xf] %v3118_v1  ;;  %v3250_v11 = vpack.c.bf16 %v588_v7, %v587_v6  ;;  %v590_v13 = vld [vmem:[%s543_s0 + $0x18] sm:$0xff]  ;;  %s4148_s0 = smov 127  }
  0x12   : > { %v3256_v14 = vpack.c.bf16 %v590_v13, %v589_v12  ;;  %v4123_v13 = vmov 0 }
  0x13   : > { %v570_v5 = vand.u32 15, %v558_v3  ;;  %vm583_vm0 = vcmp.ge.s32.totalorder %v563_v4, 1  ;;  %vm3242_vm3 = vcmp.lt.s32.totalorder %v563_v4, 15  ;;  %593 = vst [vmem:[#allocation3 + $0x4] sm:$0xff] %v3250_v11 }
  0x14   : > { %795 = vst [vmem:[#allocation2 + $0x40] sm:$0xff] %v3250_v11 }
  0x15   : > { %vm584_vm1 = vcmp.ge.s32.totalorder %v570_v5, 1  ;;  %vm3246_vm4 = vcmp.lt.s32.totalorder %v570_v5, 15  ;;  %594 = vst [vmem:[#allocation3 + $0x14] sm:$0xff] %v3256_v14 }
  0x16   : > { %vm603_vm2 = vmpackc.low %vm584_vm1, %vm583_vm0  ;;  %796 = vst [vmem:[#allocation2 + $0x48] sm:$0xff] %v3256_v14 }
  0x17   : > { %v604_v8 = vsel %vm603_vm2, 65537, %v3118_v1  ;;  %vm691_vm5 = vmpackc.low %vm3246_vm4, %vm3242_vm3  ;;  %v898_v16 = vld [vmem:[#allocation3 + $0xc] sm:$0xf]  ;;  %vm4076_vm3 = vcmask 7168  }
  0x18   : > { %745 = vrot.lane.b32.xlu1 %v604_v8, %s4085_s30  ;;  %851 = vrot.lane.b32.xlu0 %v604_v8, %s4089_s18  ;;  %v692_v15 = vsel %vm691_vm5, 65537, %v3118_v1  ;;  %v900_v17 = vld [vmem:[#allocation3 + $0x1c] sm:$0xf]  ;;  %v848_v48 = vld [vmem:[#allocation3 + $0xc] sm:$0xf] }
  0x19   : > { %605 = vrot.lane.b32.xlu2 %v604_v8, %s4087_s19  ;;  %v3029_v18 = vpack.i.bf16 %v900_v17, %v898_v16  ;;  %v850_v49 = vld [vmem:[#allocation3 + $0x1c] sm:$0xf]  ;;  %v798_v63 = vld [vmem:[#allocation3 + $0xc] sm:$0xf] }
  0x1a   : > { %v655_v20 = vld [vmem:[#allocation3 + $0x8] sm:$0xf]  ;;  %v3276_v21 = vld [vmem:[#allocation3] sm:$0xff]  ;;  %v800_v0 = vld [vmem:[#allocation3 + $0x1c] sm:$0xf] }
  0x1b   : > { %v684_v57 = vld [vmem:[#allocation3 + $0x8] sm:$0xf] }
  0x1c   : > { %v3274_v19 = vld [vmem:[#allocation3 + $0x10] sm:$0xff]  ;;  %v657_v22 = vld [vmem:[#allocation3 + $0x18] sm:$0xf]  ;;  %v742_v17 = vld [vmem:[#allocation3 + $0x8] sm:$0xf] }
  0x1d   : > { %v744_v35 = vld [vmem:[#allocation3 + $0x18] sm:$0xf] }
  0x1e   : > { %v598_v43 = vld [vmem:[#allocation3 + $0x18] sm:$0xf] }
  0x20   : > { %693 = vrot.lane.b32.xlu1 %v692_v15, %s3122_s1  ;;  %801 = vrot.lane.b32.xlu0 %v692_v15, %s4091_s20 }
  0x21   : > { %930 = vrot.lane.b32.xlu2 %v692_v15, %s4083_s21 }
  0x28   : > { %3030 = vrot.lane.b32.xlu1 %v3029_v18, %s3125_s22  ;;  %905 = vrot.lane.b32.xlu0 %v3250_v11, %s3125_s22 }
  0x29   : > { %909 = vrot.lane.b32.xlu2 %v3256_v14, %s3125_s22 }
  0x30   : > { %666 = vrot.lane.b32.xlu1 %v3274_v19, %s3126_s23  ;;  %664 = vrot.lane.b32.xlu0 %v655_v20, %s3126_s23 }
  0x31   : > { %662 = vrot.lane.b32.xlu2 %v3276_v21, %s3126_s23 }
  0x39   : > { %668 = vrot.lane.b32.xlu2 %v657_v22, %s3126_s23 }
  0x73   : > { %v3284_v23 = vpop.permute.xlu2 %605 }
  0x74   : > { %v3287_v24 = vrot.slane %v3284_v23, 4 }
  0x76   : > { %v617_v27 = vunpack.c.l.b16 %v3287_v24  ;;  %v618_v28 = vunpack.c.h.b16 %v3287_v24 }
  0x78   : > { %vm621_vm6 = vcmp.ne.s32.totalorder %v617_v27, %v3294_v29  ;;  %vm622_vm7 = vcmp.ne.s32.totalorder %v618_v28, %v3297_v30  ;;  %v686_v28 = vld [vmem:[#allocation3 + $0x18] sm:$0xf] }
  0x79   : > { %vm3316_vm14 = vmpackc.low %vm622_vm7, %vm621_vm6 }
  0x7a   : > { %v4114_v40 = vsel %vm3316_vm14, 4294967295, %v4113_v40  ;;  %v627_v52 = vsel %vm3316_vm14, %v598_v43, 0 }
  0x8a   : > { %v3289_v25 = vpop.permute.xlu1 %745  ;;  %v852_v26 = vpop.permute.xlu0 %851 }
  0x8b   : > { %v3300_v31 = vrot.slane %v3289_v25, 4  ;;  %v853_v32 = vrot.slane %v852_v26, 4 }
  0x8d   : > { %v757_v33 = vunpack.c.l.b16 %v3300_v31  ;;  %v758_v34 = vunpack.c.h.b16 %v3300_v31  ;;  %v862_v36 = vunpack.c.l.b16 %v853_v32  ;;  %v863_v37 = vunpack.c.h.b16 %v853_v32 }
  0x8e   : > { %v854_v44 = vsel %vm4073_vm11, %v853_v32, %v852_v26  ;;  %v4125_v32 = vmov 0 }
  0x8f   : > { %vm761_vm8 = vcmp.ne.s32.totalorder %v757_v33, %v3294_v29  ;;  %vm762_vm9 = vcmp.ne.s32.totalorder %v758_v34, %v3297_v30  ;;  %vm866_vm12 = vcmp.ne.s32.totalorder %v862_v36, %v3294_v29  ;;  %vm867_vm13 = vcmp.ne.s32.totalorder %v863_v37, %v3297_v30 }
  0x90   : > { %vm3308_vm10 = vmpackc.low %vm762_vm9, %vm761_vm8  ;;  %v855_v53 = vunpack.c.l.b16 %v854_v44  ;;  %v856_v54 = vunpack.c.h.b16 %v854_v44  ;;  %v596_v44 = vld [vmem:[#allocation3 + $0x8] sm:$0xf] }
  0x91   : > { %v767_v39 = vsel %vm3308_vm10, %v744_v35, 0  ;;  %vm3324_vm15 = vmpackc.low %vm867_vm13, %vm866_vm12  ;;  %vm4074_vm12 = vcmask 1039360   ;;  %v765_v22 = vsel %vm3308_vm10, %v742_v17, 0  ;;  %v1172_v17 = vld [vmem:[%s4056_s3 + $0x8] sm:$0xff] }
  0x92   : > { %v3320_v41 = vpop.permute.xlu1 %693  ;;  %v802_v42 = vpop.permute.xlu0 %801  ;;  %778 = vrot.lane.b32.xlu0 %v767_v39, %s4091_s20  ;;  %v870_v55 = vsel %vm3324_vm15, %v848_v48, 0  ;;  %v872_v56 = vsel %vm3324_vm15, %v850_v49, 0  ;;  %vm859_vm6 = vcmp.ne.s32.totalorder %v855_v53, %v3294_v29  ;;  %vm860_vm7 = vcmp.ne.s32.totalorder %v856_v54, %v3297_v30  ;;  %v929_v48 = vld [vmem:[#allocation3 + $0x1c] sm:$0xf] }
  0x93   : > { %v3329_v46 = vrot.slane %v3320_v41, 4  ;;  %v803_v47 = vrot.slane %v802_v42, 4  ;;  %v3034_v61 = vpack.i.bf16 %v872_v56, %v870_v55  ;;  %vm3363_vm9 = vmpackc.low %vm860_vm7, %vm859_vm6  ;;  %v749_v12 = vsel %vm4074_vm12, %v3300_v31, %v3289_v25  ;;  %v931_v25 = vpop.permute.xlu2 %930 }
  0x94   : > { %v869_v9 = vsel %vm3363_vm9, %v3250_v11, 0  ;;  %v871_v10 = vsel %vm3363_vm9, %v3256_v14, 0  ;;  %v750_v15 = vunpack.c.l.b16 %v749_v12  ;;  %v751_v16 = vunpack.c.h.b16 %v749_v12 }
  0x95   : > { %v705_v50 = vunpack.c.l.b16 %v3329_v46  ;;  %v706_v51 = vunpack.c.h.b16 %v3329_v46  ;;  %v812_v58 = vunpack.c.l.b16 %v803_v47  ;;  %v813_v59 = vunpack.c.h.b16 %v803_v47  ;;  %3035 = vrot.lane.b32.xlu1 %v3034_v61, %s3122_s1 }
  0x96   : > { %v804_v2 = vsel %vm4076_vm3, %v803_v47, %v802_v42  ;;  %vm754_vm6 = vcmp.ne.s32.totalorder %v750_v15, %v3294_v29  ;;  %vm755_vm7 = vcmp.ne.s32.totalorder %v751_v16, %v3297_v30  ;;  %v932_v31 = vrot.slane %v931_v25, 4  ;;  %v927_v47 = vld [vmem:[#allocation3 + $0xc] sm:$0xf]  ;;  %v1257_v16 = vld [vmem:[%s4059_s6] sm:$0xff] }
  0x97   : > { %vm709_vm0 = vcmp.ne.s32.totalorder %v705_v50, %v3294_v29  ;;  %vm710_vm1 = vcmp.ne.s32.totalorder %v706_v51, %v3297_v30  ;;  %vm816_vm4 = vcmp.ne.s32.totalorder %v812_v58, %v3294_v29  ;;  %vm817_vm5 = vcmp.ne.s32.totalorder %v813_v59, %v3297_v30 }
  0x98   : > { %vm3341_vm2 = vmpackc.low %vm710_vm1, %vm709_vm0  ;;  %v805_v6 = vunpack.c.l.b16 %v804_v2  ;;  %v806_v7 = vunpack.c.h.b16 %v804_v2  ;;  %v941_v39 = vunpack.c.l.b16 %v932_v31  ;;  %v4127_v42 = vmov 0 }
  0x99   : > { %v713_v62 = vsel %vm3341_vm2, %v684_v57, 0  ;;  %vm3353_vm8 = vmpackc.low %vm817_vm5, %vm816_vm4  ;;  %vm4072_vm4 = vcmask 908288   ;;  %vm4075_vm5 = vcmask 924672   ;;  %v715_v37 = vsel %vm3341_vm2, %v686_v28, 0 }
  0x9a   : > { %638 = vrot.lane.b32.xlu0 %v627_v52, %s4083_s21  ;;  %722 = vrot.lane.b32.xlu2 %v713_v62, %s4089_s18  ;;  %v820_v3 = vsel %vm3353_vm8, %v798_v63, 0  ;;  %v822_v4 = vsel %vm3353_vm8, %v800_v0, 0  ;;  %vm809_vm13 = vcmp.ne.s32.totalorder %v805_v6, %v3294_v29  ;;  %vm810_vm0 = vcmp.ne.s32.totalorder %v806_v7, %v3297_v30  ;;  %v3031_v62 = vpop.permute.xlu1 %3030  ;;  %v906_v63 = vpop.permute.xlu0 %905  ;;  %v1155_v7 = vld [vmem:[%s4055_s2] sm:$0xff] }
  0x9b   : > { %v3039_v8 = vpack.i.bf16 %v822_v4, %v820_v3  ;;  %vm3381_vm1 = vmpackc.low %vm810_vm0, %vm809_vm13  ;;  %v609_v26 = vsel %vm4072_vm4, %v3287_v24, %v3284_v23  ;;  %v697_v27 = vsel %vm4075_vm5, %v3329_v46, %v3320_v41  ;;  %v942_v41 = vunpack.c.h.b16 %v932_v31  ;;  %v910_v61 = vpop.permute.xlu2 %909  ;;  %v2121_v46 = vld [vmem:[#allocation3 + $0x1c] sm:$0xf] }
  0x9c   : > { %v4124_v13 = vsel %vm3381_vm1, 4294967295, %v4123_v13  ;;  %v819_v18 = vsel %vm3381_vm1, %v3250_v11, 0  ;;  %v821_v20 = vsel %vm3381_vm1, %v3256_v14, 0  ;;  %vm3404_vm13 = vmpackc.low %vm755_vm7, %vm754_vm6  ;;  %v610_v33 = vunpack.c.l.b16 %v609_v26 }
  0x9d   : > { %3040 = vrot.lane.b32.xlu1 %v3039_v8, %s4085_s30  ;;  %v4126_v32 = vsel %vm3404_vm13, 4294967295, %v4125_v32  ;;  %v611_v34 = vunpack.c.h.b16 %v609_v26  ;;  %v698_v35 = vunpack.c.l.b16 %v697_v27  ;;  %v699_v36 = vunpack.c.h.b16 %v697_v27 }
  0x9e   : > { %v764_v23 = vsel %vm3404_vm13, %v3276_v21, 0  ;;  %v766_v24 = vsel %vm3404_vm13, %v3274_v19, 0  ;;  %vm614_vm0 = vcmp.ne.s32.totalorder %v610_v33, %v3294_v29  ;;  %vm945_vm12 = vcmp.ne.s32.totalorder %v941_v39, %v3294_v29 }
  0x9f   : > { %vm615_vm6 = vcmp.ne.s32.totalorder %v611_v34, %v3297_v30  ;;  %vm702_vm7 = vcmp.ne.s32.totalorder %v698_v35, %v3294_v29  ;;  %vm703_vm4 = vcmp.ne.s32.totalorder %v699_v36, %v3297_v30  ;;  %vm946_vm5 = vcmp.ne.s32.totalorder %v942_v41, %v3297_v30 }
  0xa0   : > { %vm3423_vm11 = vmpackc.low %vm615_vm6, %vm614_vm0  ;;  %vm4094_vm13 = vcmask 138240   ;;  %v625_v51 = vsel %vm3316_vm14, %v596_v44, 0  ;;  %v915_v0 = vrot.slane %v910_v61, 4  ;;  %v3033_v2 = vunpack.i.h.bf16 %v3031_v62  ;;  %v1442_v44 = vld [vmem:[#allocation3 + $0xc] sm:$0xf] }
  0xa1   : > { %v4128_v42 = vsel %vm3423_vm11, 4294967295, %v4127_v42  ;;  %vm3429_vm3 = vmpackc.low %vm703_vm4, %vm702_vm7  ;;  %v626_v50 = vsel %vm3423_vm11, %v3274_v19, 0  ;;  %v933_v52 = vsel %vm4094_vm13, %v932_v31, %v931_v25  ;;  %v624_v57 = vsel %vm3423_vm11, %v3276_v21, 0 }
  0xa2   : > { %877 = vrot.lane.b32.xlu0 %v869_v9, %s3122_s1  ;;  %881 = vrot.lane.b32.xlu2 %v871_v10, %s3122_s1  ;;  %vm3433_vm1 = vmpackc.low %vm946_vm5, %vm945_vm12  ;;  %v714_v49 = vsel %vm3429_vm3, %v3274_v19, 0  ;;  %v934_v55 = vunpack.c.l.b16 %v933_v52  ;;  %v935_v56 = vunpack.c.h.b16 %v933_v52  ;;  %v712_v58 = vsel %vm3429_vm3, %v3276_v21, 0  ;;  %v667_v36 = vpop.permute.xlu1 %666 }
  0xa3   : > { %v949_v53 = vsel %vm3433_vm1, %v927_v47, 0  ;;  %v951_v54 = vsel %vm3433_vm1, %v929_v48, 0  ;;  %v3032_v3 = vunpack.i.l.bf16 %v3031_v62  ;;  %v913_v4 = vrot.slane %v906_v63, 4  ;;  %v663_v15 = vpop.permute.xlu2 %662  ;;  %v1444_v47 = vld [vmem:[#allocation3 + $0x1c] sm:$0xf] }
  0xa4   : > { %v3044_v19 = vpack.i.bf16 %v951_v54, %v949_v53  ;;  %vm938_vm12 = vcmp.ne.s32.totalorder %v934_v55, %v3294_v29  ;;  %vm939_vm4 = vcmp.ne.s32.totalorder %v935_v56, %v3297_v30  ;;  %v1156_v29 = vld [vmem:[%s4055_s2 + $0x8] sm:$0xff]  ;;  %vm4097_vm0 = vcmask 1043456  }
  0xa5   : > { %774 = vrot.lane.b32.xlu1 %v765_v22, %s4091_s20  ;;  %vm3464_vm5 = vmpackc.low %vm939_vm4, %vm938_vm12  ;;  %vm4082_vm6 = vcmask 916480   ;;  %v916_v6 = vrot.slane %v3033_v2, 4  ;;  %v670_v31 = vrot.slane %v663_v15, 4  ;;  %vm4093_vm7 = vcmask 130048  }
  0xa6   : > { %v948_v30 = vsel %vm3464_vm5, %v3250_v11, 0  ;;  %v950_v21 = vsel %vm3464_vm5, %v3256_v14, 0  ;;  %v914_v11 = vrot.slane %v3032_v3, 4  ;;  %v1241_v14 = vld [vmem:[%s4058_s5] sm:$0xff]  ;;  %v672_v39 = vrot.slane %v667_v36, 4 }
  0xa7   : > { %v920_v8 = vsel %vm4097_vm0, %v915_v0, %v916_v6  ;;  %v1446_v54 = vsel %vm3324_vm15, %v1442_v44, 0  ;;  %v1448_v55 = vsel %vm3324_vm15, %v1444_v47, 0  ;;  %vm4135_vm12 = vcmask 7168  }
  0xa8   : > { %v917_v9 = vsel %vm4097_vm0, %v913_v4, %v914_v11  ;;  %v921_v10 = vsel %vm4082_vm6, %v910_v61, %v920_v8  ;;  %vm4136_vm4 = vcmask 924672  }
  0xa9   : > { %v919_v12 = vsel %vm4082_vm6, %v906_v63, %v917_v9  ;;  %925 = vst [vmem:[#allocation2 + $0x78] sm:$0xff] %v921_v10 }
  0xaa   : > { %827 = vrot.lane.b32.xlu0 %v819_v18, %s4085_s30  ;;  %831 = vrot.lane.b32.xlu2 %v821_v20, %s4085_s30  ;;  %924 = vst [vmem:[#allocation2 + $0x70] sm:$0xff] %v919_v12  ;;  %v1474_v18 = vld [vmem:[#allocation3 + $0xc] sm:$0xf]  ;;  %v1476_v20 = vld [vmem:[#allocation3 + $0x1c] sm:$0xf] }
  0xab   : > { %v669_v22 = vpop.permute.xlu2 %668  ;;  %v3052_v28 = vpack.i.bf16 %v1476_v20, %v1474_v18 }
  0xac   : > { %v673_v33 = vrot.slane %v669_v22, 4 }
  0xad   : > { %726 = vrot.lane.b32.xlu1 %v715_v37, %s4089_s18  ;;  %v665_v37 = vpop.permute.xlu0 %664 }
  0xae   : > { %v671_v41 = vrot.slane %v665_v37, 4  ;;  %v677_v48 = vsel %vm4097_vm0, %v672_v39, %v673_v33 }
  0xaf   : > { %v678_v52 = vsel %vm4093_vm7, %v667_v36, %v677_v48 }
  0xb0   : > { %v2968_v26 = vld [vmem:[#allocation2 + $0x74] sm:$0xf0]  ;;  %v2757_v35 = vld [vmem:[#allocation2 + $0x78] sm:$0xf0]  ;;  %682 = vst [vmem:[#allocation2 + $0x18] sm:$0xff] %v678_v52 }
  0xb1   : > { %v2755_v25 = vld [vmem:[#allocation2 + $0x70] sm:$0xf]  ;;  %v2967_v27 = vld [vmem:[#allocation2 + $0x74] sm:$0xf] }
  0xb2   : > { %772 = vrot.lane.b32.xlu0 %v764_v23, %s4091_s20  ;;  %776 = vrot.lane.b32.xlu2 %v766_v24, %s4091_s20  ;;  %v2756_v34 = vor.u32 %v2968_v26, %v2755_v25  ;;  %v2760_v23 = vor.u32 %v2967_v27, %v2757_v35  ;;  %v1242_v24 = vld [vmem:[%s4058_s5 + $0x8] sm:$0xff] }
  0xb4   : > { %1099 = vmatpush.bf16.msra.mxu0 %v2756_v34  ;;  %1127 = vmatpush.bf16.msra.mxu2 %v2760_v23 }
  0xb5   : > { %634 = vrot.lane.b32.xlu1 %v625_v51, %s4083_s21  ;;  %v1504_v51 = vld [vmem:[#allocation3 + $0x1c] sm:$0xf] }
  0xba   : > { %724 = vrot.lane.b32.xlu0 %v714_v49, %s4089_s18  ;;  %636 = vrot.lane.b32.xlu2 %v626_v50, %s4083_s21  ;;  %v674_v49 = vsel %vm4097_vm0, %v670_v31, %v671_v41  ;;  %v1502_v50 = vld [vmem:[#allocation3 + $0xc] sm:$0xf] }
  0xbb   : > { %v676_v53 = vsel %vm4093_vm7, %v663_v15, %v674_v49  ;;  %v1506_v56 = vsel %vm3433_vm1, %v1502_v50, 0 }
  0xbc   : > { %681 = vst [vmem:[#allocation2 + $0x10] sm:$0xff] %v676_v53 }
  0xbd   : > { %720 = vrot.lane.b32.xlu1 %v712_v58, %s4089_s18 }
  0xc2   : > { %3045 = vrot.lane.b32.xlu2 %v3044_v19, %s4087_s19  ;;  %632 = vrot.lane.b32.xlu0 %v624_v57, %s4083_s21  ;;  %v1508_v19 = vsel %vm3433_vm1, %v1504_v51, 0  ;;  %v3057_v57 = vpack.i.bf16 %v1448_v55, %v1446_v54  ;;  %s4147_s21 = smov 111  }
  0xc3   : > { %v3067_v58 = vpack.i.bf16 %v1508_v19, %v1506_v56 }
  0xc5   : > { %956 = vrot.lane.b32.xlu1 %v948_v30, %s4087_s19  ;;  %v1412_v30 = vld [vmem:[#allocation3 + $0x1c] sm:$0xf] }
  0xc6   : > { %v1416_v61 = vsel %vm3353_vm8, %v1412_v30, 0 }
  0xca   : > { %1164 = vperm.xlu2 %3050, %v1156_v29   ;;  %960 = vrot.lane.b32.xlu0 %v950_v21, %s4087_s19  ;;  %v1410_v29 = vld [vmem:[#allocation3 + $0xc] sm:$0xf] }
  0xcb   : > { %v1414_v21 = vsel %vm3353_vm8, %v1410_v29, 0 }
  0xcc   : > { %v3062_v62 = vpack.i.bf16 %v1416_v61, %v1414_v21  ;;  %v2731_v61 = vld [vmem:[#allocation2 + $0x40] sm:$0xf] }
  0xcd   : > { %1159 = vperm.xlu1 %3049, %v1155_v7  }
  0xd2   : > { %1245 = vperm.xlu2 %3050, %v1241_v14  }
  0xd5   : > { %1180 = vperm.xlu1 %3049, %v1172_v17  }
  0xda   : > { %1261 = vperm.xlu2 %3050, %v1257_v16  }
  0xdd   : > { %1250 = vperm.xlu1 %3049, %v1242_v24  }
  0xe2   : > { %3053 = vrot.lane.b32.xlu2 %v3052_v28, %s3125_s22 }
  0xe5   : > { %3068 = vrot.lane.b32.xlu1 %v3067_v58, %s4087_s19  ;;  %s4171_s19 = smov 15  }
  0xea   : > { %3058 = vrot.lane.b32.xlu2 %v3057_v57, %s3122_s1 }
  0xf2   : > { %3063 = vrot.lane.b32.xlu2 %v3062_v62, %s4085_s30  ;;  %v2962_v62 = vld [vmem:[#allocation2 + $0x44] sm:$0xf0]  ;;  %s4170_s30 = smov 1  }
  0xf4   : > { %v3518_v63 = vpop.permute.xlu2 %722 }
  0xfc   : > { %v882_v0 = vpop.permute.xlu2 %881 }
  0xfd   : > { %v887_v10 = vrot.slane %v882_v0, 4 }
 0x104   : > { %v779_v2 = vpop.permute.xlu0 %778  ;;  %v832_v3 = vpop.permute.xlu2 %831 }
 0x105   : > { %v783_v11 = vrot.slane %v779_v2, 4  ;;  %v837_v36 = vrot.slane %v832_v3, 4 }
 0x107   : > { %v3036_v14 = vpop.permute.xlu1 %3035 }
 0x108   : > { %v3038_v8 = vunpack.i.h.bf16 %v3036_v14  ;;  %v3037_v16 = vunpack.i.l.bf16 %v3036_v14 }
 0x10a   : > { %v888_v12 = vrot.slane %v3038_v8, 4  ;;  %v886_v25 = vrot.slane %v3037_v16, 4 }
 0x10c   : > { %v639_v4 = vpop.permute.xlu0 %638  ;;  %v777_v6 = vpop.permute.xlu2 %776  ;;  %v891_v17 = vsel %vm4097_vm0, %v887_v10, %v888_v12  ;;  %v2732_v10 = vor.u32 %v2962_v62, %v2731_v61 }
 0x10d   : > { %v782_v7 = vrot.slane %v777_v6, 4  ;;  %v892_v18 = vsel %vm4136_vm4, %v882_v0, %v891_v17  ;;  %v643_v26 = vrot.slane %v639_v4, 4  ;;  %v2733_v4 = vld [vmem:[#allocation2 + $0x48] sm:$0xf0] }
 0x10e   : > { %896 = vst [vmem:[#allocation2 + $0x68] sm:$0xff] %v892_v18 }
 0x10f   : > { %v787_v9 = vsel %vm4097_vm0, %v782_v7, %v783_v11  ;;  %v3041_v27 = vpop.permute.xlu1 %3040 }
 0x110   : > { %v788_v15 = vsel %vm4135_vm12, %v777_v6, %v787_v9  ;;  %v3043_v33 = vunpack.i.h.bf16 %v3041_v27  ;;  %vm4137_vm12 = vmmov %vm4136_vm4  ;;  %v3042_v39 = vunpack.i.l.bf16 %v3041_v27  ;;  %vm4138_vm4 = vcmask 1039360  }
 0x111   : > { %792 = vst [vmem:[#allocation2 + $0x38] sm:$0xff] %v788_v15  ;;  %vm4139_vm6 = vmmov %vm4138_vm4 }
 0x112   : > { %v838_v37 = vrot.slane %v3043_v33, 4  ;;  %v836_v48 = vrot.slane %v3042_v39, 4 }
 0x114   : > { %v878_v20 = vpop.permute.xlu0 %877  ;;  %v637_v22 = vpop.permute.xlu2 %636  ;;  %v841_v41 = vsel %vm4097_vm0, %v837_v36, %v838_v37 }
 0x115   : > { %v885_v28 = vrot.slane %v878_v20, 4  ;;  %v642_v31 = vrot.slane %v637_v22, 4  ;;  %v842_v44 = vsel %vm4138_vm4, %v832_v3, %v841_v41  ;;  %v2966_v52 = vld [vmem:[#allocation2 + $0x64] sm:$0xf0]  ;;  %v2749_v56 = vld [vmem:[#allocation2 + $0x68] sm:$0xf0] }
 0x116   : > { %846 = vst [vmem:[#allocation2 + $0x58] sm:$0xff] %v842_v44  ;;  %v2961_v3 = vld [vmem:[#allocation2 + $0x44] sm:$0xf] }
 0x117   : > { %v889_v34 = vsel %vm4097_vm0, %v885_v28, %v886_v25  ;;  %v648_v35 = vsel %vm4097_vm0, %v642_v31, %v643_v26  ;;  %v775_v49 = vpop.permute.xlu1 %774  ;;  %v2736_v12 = vor.u32 %v2961_v3, %v2733_v4  ;;  %v2707_v3 = vld [vmem:[#allocation2 + $0x10] sm:$0xf]  ;;  %v2956_v4 = vld [vmem:[#allocation2 + $0x14] sm:$0xf0] }
 0x118   : > { %v890_v23 = vsel %vm4137_vm12, %v878_v20, %v889_v34  ;;  %v649_v24 = vsel %vm4094_vm13, %v637_v22, %v648_v35  ;;  %v781_v29 = vrot.slane %v775_v49, 4  ;;  %v2960_v22 = vld [vmem:[#allocation2 + $0x34] sm:$0xf0]  ;;  %vm4141_vm12 = vcmask 121856   ;;  %v2725_v28 = vld [vmem:[#allocation2 + $0x38] sm:$0xf0] }
 0x119   : > { %895 = vst [vmem:[#allocation2 + $0x60] sm:$0xff] %v890_v23  ;;  %v729_v23 = vrot.slane %v3518_v63, 4  ;;  %vm4142_vm4 = vmmov %vm4141_vm12 }
 0x11a   : > { %653 = vst [vmem:[#allocation2 + $0x8] sm:$0xff] %v649_v24 }
 0x11c   : > { %v828_v47 = vpop.permute.xlu0 %827  ;;  %v3046_v41 = vpop.permute.xlu2 %3045 }
 0x11d   : > { %v835_v50 = vrot.slane %v828_v47, 4  ;;  %v2964_v2 = vld [vmem:[#allocation2 + $0x54] sm:$0xf0]  ;;  %v2741_v7 = vld [vmem:[#allocation2 + $0x58] sm:$0xf0] }
 0x11f   : > { %v839_v51 = vsel %vm4097_vm0, %v835_v50, %v836_v48  ;;  %v727_v30 = vpop.permute.xlu1 %726  ;;  %v3048_v48 = vunpack.i.h.bf16 %v3046_v41  ;;  %v3047_v50 = vunpack.i.l.bf16 %v3046_v41 }
 0x120   : > { %v840_v53 = vsel %vm4139_vm6, %v828_v47, %v839_v51  ;;  %v2747_v54 = vld [vmem:[#allocation2 + $0x60] sm:$0xf]  ;;  %v2965_v55 = vld [vmem:[#allocation2 + $0x64] sm:$0xf]  ;;  %vm4140_vm6 = vcmask 7168   ;;  %v731_v16 = vrot.slane %v727_v30, 4 }
 0x121   : > { %845 = vst [vmem:[#allocation2 + $0x50] sm:$0xff] %v840_v53  ;;  %v2748_v19 = vor.u32 %v2966_v52, %v2747_v54  ;;  %v2752_v57 = vor.u32 %v2965_v55, %v2749_v56  ;;  %v967_v52 = vrot.slane %v3048_v48, 4  ;;  %v965_v55 = vrot.slane %v3047_v50, 4  ;;  %v1171_v30 = vld [vmem:[%s4056_s3] sm:$0xff] }
 0x122   : > { %1175 = vperm.xlu0 %3051, %v1171_v30  }
 0x123   : > { %1100 = vmatpush.bf16.msra.mxu0 %v2748_v19  ;;  %1128 = vmatpush.bf16.msra.mxu2 %v2752_v57 }
 0x124   : > { %v773_v58 = vpop.permute.xlu0 %772 }
 0x125   : > { %v780_v21 = vrot.slane %v773_v58, 4 }
 0x127   : > { %v784_v0 = vsel %vm4097_vm0, %v780_v21, %v781_v29  ;;  %v635_v17 = vpop.permute.xlu1 %634 }
 0x128   : > { %v786_v6 = vsel %vm4140_vm6, %v773_v58, %v784_v0  ;;  %v2739_v11 = vld [vmem:[#allocation2 + $0x50] sm:$0xf]  ;;  %v2963_v14 = vld [vmem:[#allocation2 + $0x54] sm:$0xf]  ;;  %v641_v35 = vrot.slane %v635_v17, 4  ;;  %vm4143_vm6 = vcmask 908288  }
 0x129   : > { %791 = vst [vmem:[#allocation2 + $0x30] sm:$0xff] %v786_v6  ;;  %v2740_v8 = vor.u32 %v2964_v2, %v2739_v11  ;;  %v2744_v9 = vor.u32 %v2963_v14, %v2741_v7  ;;  %v2955_v6 = vld [vmem:[#allocation2 + $0x14] sm:$0xf]  ;;  %v2709_v11 = vld [vmem:[#allocation2 + $0x18] sm:$0xf0]  ;;  %v2708_v14 = vor.u32 %v2956_v4, %v2707_v3 }
 0x12a   : > { %v2712_v7 = vor.u32 %v2955_v6, %v2709_v11  ;;  %v2952_v17 = vld [vmem:[%s4145_s28 + $0x4] sm:$0xf0] }
 0x12b   : > { %1101 = vmatpush.bf16.msra.mxu0 %v2740_v8  ;;  %1129 = vmatpush.bf16.msra.mxu2 %v2744_v9  ;;  %v2691_v8 = vld [vmem:[%s4145_s28] sm:$0xf]  ;;  %v3554_v9 = vld [vmem:[%s4059_s6 + $0x8] sm:$0xff] }
 0x12c   : > { %v725_v15 = vpop.permute.xlu0 %724  ;;  %1266 = vperm.xlu0 %3051, %v3554_v9  }
 0x12d   : > { %v730_v18 = vrot.slane %v725_v15, 4 }
 0x12f   : > { %v735_v20 = vsel %vm4097_vm0, %v730_v18, %v731_v16  ;;  %1102 = vmatpush.bf16.msra.mxu0 %v2732_v10  ;;  %1130 = vmatpush.bf16.msra.mxu2 %v2736_v12  ;;  %v721_v36 = vpop.permute.xlu1 %720  ;;  %v2954_v12 = vld [vmem:[#allocation2 + $0x4] sm:$0xf0]  ;;  %v2701_v16 = vld [vmem:[#allocation2 + $0x8] sm:$0xf0] }
 0x130   : > { %v736_v25 = vsel %vm4141_vm12, %v725_v15, %v735_v20  ;;  %v2723_v26 = vld [vmem:[#allocation2 + $0x30] sm:$0xf]  ;;  %v2959_v27 = vld [vmem:[#allocation2 + $0x34] sm:$0xf]  ;;  %v728_v24 = vrot.slane %v721_v36, 4  ;;  %vm4144_vm12 = vmmov %vm4143_vm6 }
 0x131   : > { %740 = vst [vmem:[#allocation2 + $0x28] sm:$0xff] %v736_v25  ;;  %v2724_v31 = vor.u32 %v2960_v22, %v2723_v26  ;;  %v2728_v33 = vor.u32 %v2959_v27, %v2725_v28  ;;  %v2951_v22 = vld [vmem:[%s4145_s28 + $0x4] sm:$0xf]  ;;  %v2693_v27 = vld [vmem:[%s4145_s28 + $0x8] sm:$0xf0] }
 0x132   : > { %v732_v44 = vsel %vm4097_vm0, %v728_v24, %v729_v23 }
 0x133   : > { %1103 = vmatpush.bf16.msra.mxu0 %v2724_v31  ;;  %1131 = vmatpush.bf16.msra.mxu2 %v2728_v33  ;;  %v734_v49 = vsel %vm4142_vm4, %v721_v36, %v732_v44  ;;  %v2696_v36 = vor.u32 %v2951_v22, %v2693_v27  ;;  %vm4146_vm4 = vnez %v4124_v13 }
 0x134   : > { %v633_v34 = vpop.permute.xlu0 %632  ;;  %739 = vst [vmem:[#allocation2 + $0x20] sm:$0xff] %v734_v49 }
 0x135   : > { %v640_v37 = vrot.slane %v633_v34, 4 }
 0x137   : > { %v645_v39 = vsel %vm4097_vm0, %v640_v37, %v641_v35  ;;  %v957_v53 = vpop.permute.xlu1 %956  ;;  %v2692_v35 = vor.u32 %v2952_v17, %v2691_v8 }
 0x138   : > { %v647_v47 = vsel %vm4094_vm13, %v633_v34, %v645_v39  ;;  %v964_v63 = vrot.slane %v957_v53, 4  ;;  %v2958_v58 = vld [vmem:[#allocation2 + $0x24] sm:$0xf0]  ;;  %v2717_v29 = vld [vmem:[#allocation2 + $0x28] sm:$0xf0]  ;;  %vm4154_vm13 = vcmask 908288  }
 0x139   : > { %652 = vst [vmem:[#allocation2] sm:$0xff] %v647_v47 }
 0x13a   : > { %v968_v19 = vsel %vm4097_vm0, %v964_v63, %v965_v55 }
 0x13b   : > { %v969_v21 = vsel %vm4144_vm12, %v957_v53, %v968_v19  ;;  %v2715_v61 = vld [vmem:[#allocation2 + $0x20] sm:$0xf]  ;;  %v2957_v62 = vld [vmem:[#allocation2 + $0x24] sm:$0xf]  ;;  %vm4151_vm12 = vcmask 916480  }
 0x13c   : > { %v961_v51 = vpop.permute.xlu0 %960  ;;  %974 = vst [vmem:[#allocation2 + $0x80] sm:$0xff] %v969_v21  ;;  %v2716_v0 = vor.u32 %v2958_v58, %v2715_v61  ;;  %v2720_v2 = vor.u32 %v2957_v62, %v2717_v29 }
 0x13d   : > { %v966_v54 = vrot.slane %v961_v51, 4 }
 0x13e   : > { %1104 = vmatpush.bf16.msra.mxu0 %v2716_v0  ;;  %1132 = vmatpush.bf16.msra.mxu2 %v2720_v2 }
 0x13f   : > { %v970_v56 = vsel %vm4097_vm0, %v966_v54, %v967_v52  ;;  %v1160_v41 = vpop.permute.xlu1 %1159  ;;  %v1165_v54 = vpop.permute.xlu2 %1164 }
 0x140   : > { %v971_v57 = vsel %vm4143_vm6, %v961_v51, %v970_v56  ;;  %v2699_v10 = vld [vmem:[#allocation2] sm:$0xf]  ;;  %v2953_v15 = vld [vmem:[#allocation2 + $0x4] sm:$0xf]  ;;  %vm4149_vm6 = vnez %v4126_v32 }
 0x141   : > { %975 = vst [vmem:[#allocation2 + $0x88] sm:$0xff] %v971_v57  ;;  %v2700_v28 = vor.u32 %v2954_v12, %v2699_v10  ;;  %v2704_v31 = vor.u32 %v2953_v15, %v2701_v16  ;;  %v2971_v15 = vld [vmem:[%s4057_s4] sm:$0xff] }
 0x142   : > { %1105 = vmatpush.bf16.msra.mxu0 %v2708_v14  ;;  %1133 = vmatpush.bf16.msra.mxu2 %v2712_v7 }
 0x143   : > { %v2763_v25 = vld [vmem:[#allocation2 + $0x80] sm:$0xf]  ;;  %v2969_v26 = vld [vmem:[#allocation2 + $0x84] sm:$0xf] }
 0x146   : > { %1106 = vmatpush.bf16.msra.mxu0 %v2700_v28  ;;  %1134 = vmatpush.bf16.msra.mxu2 %v2704_v31 }
 0x147   : > { %v1181_v29 = vpop.permute.xlu1 %1180  ;;  %v1246_v16 = vpop.permute.xlu2 %1245 }
 0x148   : > { %v2970_v18 = vld [vmem:[#allocation2 + $0x84] sm:$0xf0]  ;;  %v2765_v20 = vld [vmem:[#allocation2 + $0x88] sm:$0xf0] }
 0x149   : > { %v2764_v33 = vor.u32 %v2970_v18, %v2763_v25  ;;  %v2768_v34 = vor.u32 %v2969_v26, %v2765_v20  ;;  %1135 = vmatmul.bf16.vlgmr.msra.gmra.mxu2 %v2692_v35  ;;  %1107 = vmatmul.bf16.vlgmr.msra.gmra.mxu0 %v2692_v35 }
 0x14b   : > { %1120 = vmatpush.bf16.msra.mxu1 %v2764_v33  ;;  %1148 = vmatpush.bf16.msra.mxu3 %v2768_v34 }
 0x14e   : > { %2769 = vmatmul.msk.bf16.vlgmr.msra.gmra.mxu1 %vm4093_vm7, %v2696_v36  ;;  %2770 = vmatmul.msk.bf16.vlgmr.msra.gmra.mxu3 %vm4093_vm7, %v2696_v36 }
 0x14f   : > { %v1262_v20 = vpop.permute.xlu2 %1261  ;;  %v1251_v31 = vpop.permute.xlu1 %1250 }
 0x194   : > { %v1176_v53 = vpop.permute.xlu0 %1175 }
 0x1c6   : > { %v1108_v37 = vpop.f32.mrf.mxu0 }
 0x1cb   : > { %v1122_v23 = vpop.f32.mrf.mxu1 }
 0x1cc   : > { %v1123_v24 = vadd.f32 %v1122_v23, %v1108_v37  ;;  %v1136_v39 = vpop.f32.mrf.mxu2  ;;  %v1267_v37 = vpop.permute.xlu0 %1266 }
 0x1ce   : > { %v1110_v48 = vpop.f32.mrf.mxu0  ;;  %v1167_v50 = vmul.f32 %v1160_v41, %v1123_v24 }
 0x1d0   : > { %v1183_v63 = vadd.f32 %v1176_v53, %v1167_v50 }
 0x1d1   : > { %v1150_v44 = vpop.f32.mrf.mxu3 }
 0x1d2   : > { %v1151_v47 = vadd.f32 %v1150_v44, %v1136_v39  ;;  %v1187_v21 = vmax.f32 %v1183_v63, 0.0 }
 0x1d3   : > { %v1124_v49 = vpop.f32.mrf.mxu1 }
 0x1d4   : > { %v1168_v51 = vmul.f32 %v1160_v41, %v1151_v47  ;;  %v1125_v52 = vadd.f32 %v1124_v49, %v1110_v48  ;;  %v1138_v19 = vpop.f32.mrf.mxu2 }
 0x1d6   : > { %v1169_v55 = vmul.f32 %v1165_v54, %v1125_v52  ;;  %v1184_v56 = vadd.f32 %v1176_v53, %v1168_v51 }
 0x1d8   : > { %v1185_v30 = vadd.f32 %v1181_v29, %v1169_v55  ;;  %v1188_v61 = vmax.f32 %v1184_v56, 0.0 }
 0x1d9   : > { %v1152_v57 = vpop.f32.mrf.mxu3 }
 0x1da   : > { %v1153_v58 = vadd.f32 %v1152_v57, %v1138_v19  ;;  %v1189_v2 = vmax.f32 %v1185_v30, 0.0  ;;  %v3568_v3 = vpack.c.bf16 %v1188_v61, %v1187_v21 }
 0x1dc   : > { %v1170_v62 = vmul.f32 %v1165_v54, %v1153_v58  ;;  %v1202_v11 = vunpack.c.l.b16 %v3568_v3  ;;  %v1203_v7 = vunpack.c.h.b16 %v3568_v3  ;;  %v2610_v45 = vunpack.c.h.bf16 %v3568_v3 }
 0x1de   : > { %v1186_v0 = vadd.f32 %v1181_v29, %v1170_v62 }
 0x1e0   : > { %v1190_v4 = vmax.f32 %v1186_v0, 0.0 }
 0x1e2   : > { %v3570_v6 = vpack.c.bf16 %v1190_v4, %v1189_v2 }
 0x1e4   : > { %v1204_v14 = vunpack.c.l.b16 %v3570_v6  ;;  %v1205_v8 = vunpack.c.h.b16 %v3570_v6 }
 0x1e6   : > { %v1206_v10 = vpack.c.b16 %v1204_v14, %v1202_v11  ;;  %v1207_v12 = vpack.c.b16 %v1205_v8, %v1203_v7  ;;  %v3631_v7 = vld [vmem:[%s4061_s8] sm:$0xff] }
 0x1e8   : > { %1220 = vmatpush.bf16.msrb.mxu1 %v1206_v10  ;;  %1234 = vmatpush.bf16.msrb.mxu3 %v1207_v12 }
 0x1eb   : > { %2775 = vmatmul.msk.bf16.vlgmr.msrb.gmra.mxu1 %vm4093_vm7, %v2971_v15  ;;  %2776 = vmatmul.msk.bf16.vlgmr.msrb.gmra.mxu3 %vm4093_vm7, %v2971_v15  ;;  %v3643_v15 = vld [vmem:[%s4064_s11 + $0x8] sm:$0xff] }
 0x268   : > { %v1222_v17 = vpop.f32.mrf.mxu1 }
 0x269   : > { %v1253_v18 = vmul.f32 %v1246_v16, %v1222_v17 }
 0x26b   : > { %v1269_v25 = vadd.f32 %v1262_v20, %v1253_v18  ;;  %v3653_v18 = vld [vmem:[%s4064_s11] sm:$0xff] }
 0x26d   : > { %v1273_v33 = vmax.f32 %v1269_v25, 0.0  ;;  %v3664_v25 = vld [vmem:[%s4062_s9] sm:$0xff] }
 0x26e   : > { %v1236_v22 = vpop.f32.mrf.mxu3 }
 0x26f   : > { %v1254_v26 = vmul.f32 %v1246_v16, %v1236_v22 }
 0x270   : > { %v1224_v27 = vpop.f32.mrf.mxu1 }
 0x271   : > { %v1270_v28 = vadd.f32 %v1262_v20, %v1254_v26  ;;  %v1255_v35 = vmul.f32 %v1251_v31, %v1224_v27  ;;  %v3655_v20 = vpop.permute.xlu2 %3053  ;;  %v3669_v26 = vld [vmem:[%s4065_s12 + $0x8] sm:$0xff] }
 0x273   : > { %v1274_v34 = vmax.f32 %v1270_v28, 0.0  ;;  %v1271_v24 = vadd.f32 %v1267_v37, %v1255_v35  ;;  %v3678_v28 = vld [vmem:[%s4065_s12] sm:$0xff] }
 0x275   : > { %v1277_v36 = vpack.c.bf16 %v1274_v34, %v1273_v33  ;;  %v1275_v44 = vmax.f32 %v1271_v24, 0.0  ;;  %v3069_v34 = vpop.permute.xlu1 %3068 }
 0x276   : > { %v1238_v23 = vpop.f32.mrf.mxu3 }
 0x277   : > { %1279 = vst [vmem:[#allocation3 + $0x4] sm:$0xff] %v1277_v36  ;;  %v1256_v39 = vmul.f32 %v1251_v31, %v1238_v23  ;;  %1481 = vrot.lane.b32.xlu1 %v1277_v36, %s3125_s22  ;;  %v1445_v55 = vsel %vm3363_vm9, %v1277_v36, 0  ;;  %v1505_v56 = vsel %vm3464_vm5, %v1277_v36, 0  ;;  %v1413_v19 = vsel %vm4146_vm4, %v1277_v36, 0 }
 0x278   : > { %1407 = vst [vmem:[#allocation2 + $0x40] sm:$0xff] %v1277_v36  ;;  %v3055_v36 = vunpack.i.l.bf16 %v3655_v20 }
 0x279   : > { %v1272_v41 = vadd.f32 %v1267_v37, %v1256_v39  ;;  %v3673_v27 = vpop.permute.xlu2 %3058 }
 0x27a   : > { %v1490_v37 = vrot.slane %v3055_v36, 4 }
 0x27b   : > { %v1276_v47 = vmax.f32 %v1272_v41, 0.0 }
 0x27d   : > { %v1278_v48 = vpack.c.bf16 %v1276_v47, %v1275_v44 }
 0x27e   : > { %v1313_v49 = vld [vmem:[#allocation3] sm:$0xff]  ;;  %v1374_v50 = vld [vmem:[#allocation3 + $0x8] sm:$0xf] }
 0x27f   : > { %v1314_v51 = vld [vmem:[#allocation3 + $0x8] sm:$0xf]  ;;  %1280 = vst [vmem:[#allocation3 + $0x14] sm:$0xff] %v1278_v48  ;;  %1321 = vrot.lane.b32.xlu0 %v1313_v49, %s3126_s23  ;;  %v1378_v52 = vsel %vm3308_vm10, %v1374_v50, 0  ;;  %v1345_v63 = vsel %vm3429_vm3, %v1313_v49, 0  ;;  %v1377_v29 = vsel %vm4149_vm6, %v1313_v49, 0 }
 0x280   : > { %1323 = vrot.lane.b32.xlu1 %v1314_v51, %s3126_s23  ;;  %1387 = vrot.lane.b32.xlu2 %v1378_v52, %s4091_s20  ;;  %1408 = vst [vmem:[#allocation2 + $0x48] sm:$0xff] %v1278_v48  ;;  %v1342_v53 = vld [vmem:[#allocation3 + $0x8] sm:$0xf]  ;;  %v1447_v21 = vsel %vm3363_vm9, %v1278_v48, 0  ;;  %v1285_v61 = vsel %vm3423_vm11, %v1313_v49, 0  ;;  %v1507_v62 = vsel %vm3464_vm5, %v1278_v48, 0 }
 0x281   : > { %v1346_v54 = vsel %vm3341_vm2, %v1342_v53, 0  ;;  %v1282_v2 = vld [vmem:[#allocation3 + $0x8] sm:$0xf]  ;;  %v1415_v4 = vsel %vm4146_vm4, %v1278_v48, 0  ;;  %v3681_v31 = vpop.permute.xlu2 %3063 }
 0x282   : > { %v1286_v14 = vsel %vm3316_vm14, %v1282_v2, 0 }
 0x286   : > { %v1315_v57 = vld [vmem:[#allocation3 + $0x10] sm:$0xff]  ;;  %v1344_v58 = vld [vmem:[#allocation3 + $0x18] sm:$0xf] }
 0x287   : > { %1355 = vrot.lane.b32.xlu0 %v1346_v54, %s4089_s18  ;;  %v1348_v30 = vsel %vm3341_vm2, %v1344_v58, 0  ;;  %v1376_v0 = vld [vmem:[#allocation3 + $0x18] sm:$0xf]  ;;  %v1379_v8 = vsel %vm4149_vm6, %v1315_v57, 0  ;;  %v1347_v10 = vsel %vm3429_vm3, %v1315_v57, 0  ;;  %v1287_v22 = vsel %vm3423_vm11, %v1315_v57, 0 }
 0x288   : > { %1453 = vrot.lane.b32.xlu1 %v1445_v55, %s3122_s1  ;;  %1353 = vrot.lane.b32.xlu2 %v1345_v63, %s4089_s18  ;;  %v1380_v11 = vsel %vm3308_vm10, %v1376_v0, 0  ;;  %v1284_v12 = vld [vmem:[#allocation3 + $0x18] sm:$0xf]  ;;  %v3060_v54 = vunpack.i.l.bf16 %v3673_v27  ;;  %v3071_v55 = vunpack.i.h.bf16 %v3069_v34 }
 0x289   : > { %v1316_v16 = vld [vmem:[#allocation3 + $0x18] sm:$0xf]  ;;  %v1288_v17 = vsel %vm3316_vm14, %v1284_v12, 0 }
 0x28f   : > { %1513 = vrot.lane.b32.xlu0 %v1505_v56, %s4147_s21 }
 0x290   : > { %1421 = vrot.lane.b32.xlu1 %v1413_v19, %s4148_s0  ;;  %1325 = vrot.lane.b32.xlu2 %v1315_v57, %s3126_s23  ;;  %v1462_v19 = vrot.slane %v3060_v54, 4 }
 0x297   : > { %1485 = vrot.lane.b32.xlu0 %v1278_v48, %s3125_s22 }
 0x298   : > { %1385 = vrot.lane.b32.xlu1 %v1377_v29, %s4091_s20  ;;  %1359 = vrot.lane.b32.xlu2 %v1348_v30, %s4089_s18 }
 0x29f   : > { %1457 = vrot.lane.b32.xlu0 %v1447_v21, %s3122_s1  ;;  %v1524_v21 = vrot.slane %v3071_v55, 4 }
 0x2a0   : > { %1293 = vrot.lane.b32.xlu1 %v1285_v61, %s4150_s27  ;;  %1517 = vrot.lane.b32.xlu2 %v1507_v62, %s4147_s21 }
 0x2a7   : > { %1425 = vrot.lane.b32.xlu0 %v1415_v4, %s4148_s0 }
 0x2a8   : > { %1391 = vrot.lane.b32.xlu1 %v1380_v11, %s4091_s20  ;;  %1295 = vrot.lane.b32.xlu2 %v1286_v14, %s4150_s27  ;;  %v3065_v14 = vunpack.i.l.bf16 %v3681_v31 }
 0x2af   : > { %1389 = vrot.lane.b32.xlu0 %v1379_v8, %s4091_s20  ;;  %v3070_v8 = vunpack.i.l.bf16 %v3069_v34  ;;  %v3056_v34 = vunpack.i.h.bf16 %v3655_v20 }
 0x2b0   : > { %1357 = vrot.lane.b32.xlu1 %v1347_v10, %s4089_s18  ;;  %1706 = vperm.xlu2 %3050, %v3631_v7  }
 0x2b7   : > { %1327 = vrot.lane.b32.xlu0 %v1316_v16, %s3126_s23 }
 0x2b8   : > { %1299 = vrot.lane.b32.xlu1 %v1288_v17, %s4150_s27  ;;  %1778 = vperm.xlu2 %3050, %v3643_v15   ;;  %v1430_v17 = vrot.slane %v3065_v14, 4 }
 0x2bf   : > { %1297 = vrot.lane.b32.xlu0 %v1287_v22, %s4150_s27  ;;  %v1522_v22 = vrot.slane %v3070_v8, 4 }
 0x2c0   : > { %1773 = vperm.xlu1 %3049, %v3653_v18  }
 0x2c7   : > { %1714 = vperm.xlu0 %3051, %v3664_v25  }
 0x2c8   : > { %1794 = vperm.xlu1 %3049, %v3669_v26  }
 0x2cf   : > { %1789 = vperm.xlu0 %3051, %v3678_v28  }
 0x2da   : > { %v3683_v33 = vpop.permute.xlu2 %1387 }
 0x2e2   : > { %v1354_v35 = vpop.permute.xlu2 %1353 }
 0x2e3   : > { %v1361_v57 = vrot.slane %v1354_v35, 4 }
 0x2e9   : > { %v1482_v23 = vpop.permute.xlu1 %1481 }
 0x2ea   : > { %v3686_v24 = vpop.permute.xlu2 %1325  ;;  %v1489_v39 = vrot.slane %v1482_v23, 4 }
 0x2ec   : > { %v1493_v41 = vsel %vm4097_vm0, %v1489_v39, %v1490_v37 }
 0x2ed   : > { %v1494_v44 = vsel %vm4151_vm12, %v1482_v23, %v1493_v41  ;;  %vm4152_vm12 = vcmask 121856  }
 0x2ee   : > { %1499 = vst [vmem:[#allocation2 + $0x70] sm:$0xff] %v1494_v44 }
 0x2f1   : > { %v1322_v47 = vpop.permute.xlu0 %1321 }
 0x2f2   : > { %v1324_v48 = vpop.permute.xlu1 %1323  ;;  %v1329_v49 = vrot.slane %v1322_v47, 4  ;;  %v3690_v50 = vpop.permute.xlu2 %1359 }
 0x2f3   : > { %v1330_v51 = vrot.slane %v1324_v48, 4  ;;  %v1492_v48 = vrot.slane %v3056_v34, 4 }
 0x2f5   : > { %v1333_v52 = vsel %vm4097_vm0, %v1329_v49, %v1330_v51  ;;  %v1394_v49 = vrot.slane %v3683_v33, 4  ;;  %v2835_v14 = vld [vmem:[#allocation2 + $0x70] sm:$0xf]  ;;  %v2986_v8 = vld [vmem:[#allocation2 + $0x74] sm:$0xf] }
 0x2f6   : > { %v1334_v53 = vsel %vm4093_vm7, %v1322_v47, %v1333_v52  ;;  %vm4153_vm7 = vcmask 924672  }
 0x2f7   : > { %1339 = vst [vmem:[#allocation2 + $0x10] sm:$0xff] %v1334_v53 }
 0x2f9   : > { %v1356_v63 = vpop.permute.xlu0 %1355 }
 0x2fa   : > { %v1454_v56 = vpop.permute.xlu1 %1453  ;;  %v1362_v58 = vrot.slane %v1356_v63, 4  ;;  %v1518_v29 = vpop.permute.xlu2 %1517 }
 0x2fb   : > { %v1461_v30 = vrot.slane %v1454_v56, 4  ;;  %v1523_v61 = vrot.slane %v1518_v29, 4 }
 0x2fc   : > { %v1365_v62 = vsel %vm4097_vm0, %v1361_v57, %v1362_v58  ;;  %v3061_v58 = vunpack.i.h.bf16 %v3673_v27 }
 0x2fd   : > { %v1465_v0 = vsel %vm4097_vm0, %v1461_v30, %v1462_v19  ;;  %v1366_v2 = vsel %vm4152_vm12, %v1354_v35, %v1365_v62  ;;  %v1527_v4 = vsel %vm4097_vm0, %v1523_v61, %v1524_v21  ;;  %vm4155_vm12 = vmmov %vm4154_vm13 }
 0x2fe   : > { %v1466_v11 = vsel %vm4153_vm7, %v1454_v56, %v1465_v0  ;;  %1371 = vst [vmem:[#allocation2 + $0x20] sm:$0xff] %v1366_v2  ;;  %v1528_v10 = vsel %vm4154_vm13, %v1518_v29, %v1527_v4  ;;  %vm4156_vm7 = vcmask 1039360   ;;  %vm4157_vm13 = vcmask 916480  }
 0x2ff   : > { %1532 = vst [vmem:[#allocation2 + $0x88] sm:$0xff] %v1528_v10  ;;  %v1464_v62 = vrot.slane %v3061_v58, 4 }
 0x300   : > { %1471 = vst [vmem:[#allocation2 + $0x60] sm:$0xff] %v1466_v11 }
 0x301   : > { %v1514_v12 = vpop.permute.xlu0 %1513 }
 0x302   : > { %v1422_v16 = vpop.permute.xlu1 %1421  ;;  %v1521_v36 = vrot.slane %v1514_v12, 4  ;;  %v1296_v33 = vpop.permute.xlu2 %1295 }
 0x303   : > { %v1429_v37 = vrot.slane %v1422_v16, 4  ;;  %v1302_v0 = vrot.slane %v1296_v33, 4 }
 0x304   : > { %v1525_v35 = vsel %vm4097_vm0, %v1521_v36, %v1522_v22  ;;  %v3720_v22 = vld [vmem:[%s4060_s7] sm:$0xff]  ;;  %v3066_v36 = vunpack.i.h.bf16 %v3681_v31 }
 0x305   : > { %v1433_v23 = vsel %vm4097_vm0, %v1429_v37, %v1430_v17  ;;  %v1526_v39 = vsel %vm4155_vm12, %v1514_v12, %v1525_v35  ;;  %vm4158_vm12 = vcmask 7168  }
 0x306   : > { %v1434_v41 = vsel %vm4156_vm7, %v1422_v16, %v1433_v23  ;;  %1531 = vst [vmem:[#allocation2 + $0x80] sm:$0xff] %v1526_v39  ;;  %v2989_v54 = vld [vmem:[#allocation2 + $0x84] sm:$0xf0]  ;;  %v2845_v57 = vld [vmem:[#allocation2 + $0x88] sm:$0xf0]  ;;  %vm4159_vm7 = vcmask 924672   ;;  %v1554_v23 = vunpack.c.h.b16 %v3720_v22 }
 0x307   : > { %1439 = vst [vmem:[#allocation2 + $0x50] sm:$0xff] %v1434_v41 }
 0x308   : > { %v3724_v39 = vpack.c.b16 %v1554_v23, %v1554_v23 }
 0x309   : > { %v1486_v44 = vpop.permute.xlu0 %1485 }
 0x30a   : > { %v1386_v47 = vpop.permute.xlu1 %1385  ;;  %v1491_v51 = vrot.slane %v1486_v44, 4 }
 0x30b   : > { %v1393_v52 = vrot.slane %v1386_v47, 4 }
 0x30c   : > { %v1495_v53 = vsel %vm4097_vm0, %v1491_v51, %v1492_v48  ;;  %v2827_v48 = vld [vmem:[#allocation2 + $0x60] sm:$0xf] }
 0x30d   : > { %v1397_v55 = vsel %vm4097_vm0, %v1393_v52, %v1394_v49  ;;  %v1496_v63 = vsel %vm4157_vm13, %v1486_v44, %v1495_v53  ;;  %v2843_v56 = vld [vmem:[#allocation2 + $0x80] sm:$0xf]  ;;  %v2988_v19 = vld [vmem:[#allocation2 + $0x84] sm:$0xf]  ;;  %vm4160_vm13 = vcmask 138240   ;;  %v1432_v44 = vrot.slane %v3066_v36, 4 }
 0x30e   : > { %v1398_v20 = vsel %vm4158_vm12, %v1386_v47, %v1397_v55  ;;  %1500 = vst [vmem:[#allocation2 + $0x78] sm:$0xff] %v1496_v63  ;;  %v2844_v29 = vor.u32 %v2989_v54, %v2843_v56  ;;  %v2848_v30 = vor.u32 %v2988_v19, %v2845_v57  ;;  %vm4161_vm12 = vcmask 130048   ;;  %v2984_v52 = vld [vmem:[#allocation2 + $0x64] sm:$0xf] }
 0x30f   : > { %1403 = vst [vmem:[#allocation2 + $0x30] sm:$0xff] %v1398_v20  ;;  %v1364_v19 = vrot.slane %v3690_v50, 4  ;;  %v2981_v50 = vld [vmem:[#allocation2 + $0x44] sm:$0xf0] }
 0x310   : > { %1671 = vmatpush.bf16.msra.mxu3 %v2844_v29  ;;  %1697 = vmatpush.bf16.msrb.mxu2 %v2848_v30  ;;  %v2819_v30 = vld [vmem:[#allocation2 + $0x50] sm:$0xf] }
 0x311   : > { %v1458_v21 = vpop.permute.xlu0 %1457 }
 0x312   : > { %v1294_v61 = vpop.permute.xlu1 %1293  ;;  %v1463_v2 = vrot.slane %v1458_v21, 4 }
 0x313   : > { %v1301_v4 = vrot.slane %v1294_v61, 4  ;;  %2849 = vmatmul.msk.bf16.vlgmr.msra.gmra.mxu3 %vm4161_vm12, %v3724_v39 }
 0x314   : > { %v1467_v11 = vsel %vm4097_vm0, %v1463_v2, %v1464_v62  ;;  %v2982_v62 = vld [vmem:[#allocation2 + $0x54] sm:$0xf] }
 0x315   : > { %v1305_v10 = vsel %vm4097_vm0, %v1301_v4, %v1302_v0  ;;  %v1468_v27 = vsel %vm4159_vm7, %v1458_v21, %v1467_v11  ;;  %v2987_v12 = vld [vmem:[#allocation2 + $0x74] sm:$0xf0]  ;;  %v2837_v16 = vld [vmem:[#allocation2 + $0x78] sm:$0xf0]  ;;  %vm4162_vm7 = vmmov %vm4161_vm12  ;;  %vm4164_vm12 = vcmask 7168  }
 0x316   : > { %v1306_v17 = vsel %vm4160_vm13, %v1294_v61, %v1305_v10  ;;  %1472 = vst [vmem:[#allocation2 + $0x68] sm:$0xff] %v1468_v27  ;;  %v2836_v37 = vor.u32 %v2987_v12, %v2835_v14  ;;  %v2840_v35 = vor.u32 %v2986_v8, %v2837_v16  ;;  %2850 = vmatmul.msk.bf16.vlgmr.msrb.gmra.mxu2 %vm4162_vm7, %v3724_v39  ;;  %vm4163_vm13 = vcmask 1039360   ;;  %v2813_v14 = vld [vmem:[#allocation2 + $0x48] sm:$0xf0]  ;;  %v2811_v10 = vld [vmem:[#allocation2 + $0x40] sm:$0xf] }
 0x317   : > { %1311 = vst [vmem:[#allocation2] sm:$0xff] %v1306_v17  ;;  %vm4165_vm7 = vcmask 121856   ;;  %v2980_v27 = vld [vmem:[#allocation2 + $0x44] sm:$0xf]  ;;  %v1331_v12 = vrot.slane %v3686_v24, 4  ;;  %v2812_v17 = vor.u32 %v2981_v50, %v2811_v10 }
 0x318   : > { %1651 = vmatpush.bf16.msra.mxu1 %v2836_v37  ;;  %1677 = vmatpush.bf16.msrb.mxu0 %v2840_v35  ;;  %v2816_v36 = vor.u32 %v2980_v27, %v2813_v14  ;;  %v2803_v35 = vld [vmem:[#allocation2 + $0x30] sm:$0xf] }
 0x319   : > { %v1426_v41 = vpop.permute.xlu0 %1425 }
 0x31a   : > { %v1392_v34 = vpop.permute.xlu1 %1391  ;;  %v1431_v47 = vrot.slane %v1426_v41, 4 }
 0x31b   : > { %v1396_v57 = vrot.slane %v1392_v34, 4  ;;  %v2978_v34 = vld [vmem:[#allocation2 + $0x34] sm:$0xf] }
 0x31c   : > { %v1435_v31 = vsel %vm4097_vm0, %v1431_v47, %v1432_v44 }
 0x31d   : > { %v1436_v49 = vsel %vm4163_vm13, %v1426_v41, %v1435_v31  ;;  %v2985_v51 = vld [vmem:[#allocation2 + $0x64] sm:$0xf0]  ;;  %v2829_v53 = vld [vmem:[#allocation2 + $0x68] sm:$0xf0]  ;;  %vm4166_vm13 = vcmask 130048  }
 0x31e   : > { %1440 = vst [vmem:[#allocation2 + $0x58] sm:$0xff] %v1436_v49  ;;  %v2828_v54 = vor.u32 %v2985_v51, %v2827_v48  ;;  %v2832_v55 = vor.u32 %v2984_v52, %v2829_v53  ;;  %v2795_v53 = vld [vmem:[#allocation2 + $0x20] sm:$0xf] }
 0x320   : > { %1652 = vmatpush.bf16.msra.mxu1 %v2828_v54  ;;  %1678 = vmatpush.bf16.msrb.mxu0 %v2832_v55  ;;  %v2976_v54 = vld [vmem:[#allocation2 + $0x24] sm:$0xf] }
 0x321   : > { %v1390_v63 = vpop.permute.xlu0 %1389 }
 0x322   : > { %v1358_v56 = vpop.permute.xlu1 %1357  ;;  %v1395_v20 = vrot.slane %v1390_v63, 4 }
 0x323   : > { %v1363_v58 = vrot.slane %v1358_v56, 4 }
 0x324   : > { %v1399_v29 = vsel %vm4097_vm0, %v1395_v20, %v1396_v57  ;;  %v2787_v57 = vld [vmem:[#allocation2 + $0x10] sm:$0xf] }
 0x325   : > { %v1367_v33 = vsel %vm4097_vm0, %v1363_v58, %v1364_v19  ;;  %v1400_v21 = vsel %vm4164_vm12, %v1390_v63, %v1399_v29  ;;  %v2983_v61 = vld [vmem:[#allocation2 + $0x54] sm:$0xf0]  ;;  %v2821_v0 = vld [vmem:[#allocation2 + $0x58] sm:$0xf0]  ;;  %vm4167_vm12 = vcmask 138240  }
 0x326   : > { %v1368_v2 = vsel %vm4165_vm7, %v1358_v56, %v1367_v33  ;;  %1404 = vst [vmem:[#allocation2 + $0x38] sm:$0xff] %v1400_v21  ;;  %v2820_v4 = vor.u32 %v2983_v61, %v2819_v30  ;;  %v2824_v11 = vor.u32 %v2982_v62, %v2821_v0  ;;  %v2974_v29 = vld [vmem:[#allocation2 + $0x14] sm:$0xf]  ;;  %v1553_v61 = vunpack.c.l.b16 %v3720_v22  ;;  %v2779_v62 = vld [vmem:[#allocation2] sm:$0xf] }
 0x327   : > { %1372 = vst [vmem:[#allocation2 + $0x28] sm:$0xff] %v1368_v2  ;;  %v2972_v2 = vld [vmem:[#allocation2 + $0x4] sm:$0xf]  ;;  %vm4096_vm7 = vcmask 64512  }
 0x328   : > { %1653 = vmatpush.bf16.msra.mxu1 %v2820_v4  ;;  %1679 = vmatpush.bf16.msrb.mxu0 %v2824_v11  ;;  %v3744_v14 = vpack.c.b16 %v1553_v61, %v1553_v61 }
 0x329   : > { %v1328_v8 = vpop.permute.xlu0 %1327 }
 0x32a   : > { %v1332_v16 = vrot.slane %v1328_v8, 4  ;;  %v1300_v48 = vpop.permute.xlu1 %1299 }
 0x32b   : > { %v1304_v55 = vrot.slane %v1300_v48, 4 }
 0x32c   : > { %v1335_v37 = vsel %vm4097_vm0, %v1331_v12, %v1332_v16  ;;  %1654 = vmatpush.bf16.msra.mxu1 %v2812_v17  ;;  %1680 = vmatpush.bf16.msrb.mxu0 %v2816_v36 }
 0x32d   : > { %v1336_v23 = vsel %vm4166_vm13, %v3686_v24, %v1335_v37  ;;  %v2979_v41 = vld [vmem:[#allocation2 + $0x34] sm:$0xf0]  ;;  %v2805_v44 = vld [vmem:[#allocation2 + $0x38] sm:$0xf0]  ;;  %v1707_v37 = vpop.permute.xlu2 %1706 }
 0x32e   : > { %1340 = vst [vmem:[#allocation2 + $0x18] sm:$0xff] %v1336_v23  ;;  %v2804_v47 = vor.u32 %v2979_v41, %v2803_v35  ;;  %v2808_v31 = vor.u32 %v2978_v34, %v2805_v44  ;;  %v2977_v49 = vld [vmem:[#allocation2 + $0x24] sm:$0xf0]  ;;  %v2797_v51 = vld [vmem:[#allocation2 + $0x28] sm:$0xf0] }
 0x32f   : > { %v2796_v56 = vor.u32 %v2977_v49, %v2795_v53  ;;  %v2800_v19 = vor.u32 %v2976_v54, %v2797_v51 }
 0x330   : > { %1655 = vmatpush.bf16.msra.mxu1 %v2804_v47  ;;  %1681 = vmatpush.bf16.msrb.mxu0 %v2808_v31 }
 0x331   : > { %v1298_v52 = vpop.permute.xlu0 %1297 }
 0x332   : > { %v1303_v63 = vrot.slane %v1298_v52, 4 }
 0x334   : > { %v1307_v24 = vsel %vm4097_vm0, %v1303_v63, %v1304_v55  ;;  %1656 = vmatpush.bf16.msra.mxu1 %v2796_v56  ;;  %1682 = vmatpush.bf16.msrb.mxu0 %v2800_v19  ;;  %v2990_v55 = vld [vmem:[%s4063_s10] sm:$0xff]  ;;  %v1774_v63 = vpop.permute.xlu1 %1773 }
 0x335   : > { %v1308_v20 = vsel %vm4167_vm12, %v1298_v52, %v1307_v24  ;;  %v2975_v58 = vld [vmem:[#allocation2 + $0x14] sm:$0xf0]  ;;  %v2789_v30 = vld [vmem:[#allocation2 + $0x18] sm:$0xf0]  ;;  %vm4095_vm12 = vcmask 15360  }
 0x336   : > { %1312 = vst [vmem:[#allocation2 + $0x8] sm:$0xff] %v1308_v20  ;;  %v2788_v33 = vor.u32 %v2975_v58, %v2787_v57  ;;  %v2792_v21 = vor.u32 %v2974_v29, %v2789_v30 }
 0x338   : > { %1657 = vmatpush.bf16.msra.mxu1 %v2788_v33  ;;  %1683 = vmatpush.bf16.msrb.mxu0 %v2792_v21  ;;  %v1779_v21 = vpop.permute.xlu2 %1778 }
 0x339   : > { %v1715_v41 = vpop.permute.xlu0 %1714 }
 0x33d   : > { %v2973_v0 = vld [vmem:[#allocation2 + $0x4] sm:$0xf0]  ;;  %v2781_v4 = vld [vmem:[#allocation2 + $0x8] sm:$0xf0] }
 0x33e   : > { %v2780_v11 = vor.u32 %v2973_v0, %v2779_v62  ;;  %v2784_v50 = vor.u32 %v2972_v2, %v2781_v4 }
 0x340   : > { %1658 = vmatpush.bf16.msra.mxu1 %v2780_v11  ;;  %1684 = vmatpush.bf16.msrb.mxu0 %v2784_v50 }
 0x341   : > { %v1790_v20 = vpop.permute.xlu0 %1789 }
 0x343   : > { %1659 = vmatmul.bf16.vlgmr.msra.gmra.mxu1 %v3744_v14  ;;  %1685 = vmatmul.bf16.vlgmr.msrb.gmra.mxu0 %v3744_v14 }
 0x396   : > { %v1673_v8 = vpop.f32.mrf.mxu3 }
 0x399   : > { %v1699_v10 = vpop.f32.mrf.mxu2 }
 0x39e   : > { %v1675_v27 = vpop.f32.mrf.mxu3 }
 0x3a1   : > { %v1701_v12 = vpop.f32.mrf.mxu2 }
 0x3c0   : > { %v1660_v16 = vpop.f32.mrf.mxu1  ;;  %v1686_v22 = vpop.f32.mrf.mxu0 }
 0x3c1   : > { %v1674_v17 = vadd.f32 %v1673_v8, %v1660_v16  ;;  %v1700_v36 = vadd.f32 %v1699_v10, %v1686_v22  ;;  %v1795_v8 = vpop.permute.xlu1 %1794 }
 0x3c3   : > { %v1709_v35 = vmul.f32 %v1707_v37, %v1674_v17  ;;  %v1710_v23 = vmul.f32 %v1707_v37, %v1700_v36 }
 0x3c5   : > { %v1717_v34 = vadd.f32 %v1715_v41, %v1709_v35  ;;  %v1718_v44 = vadd.f32 %v1715_v41, %v1710_v23  ;;  %v3127_v23 = vmov 256.0  }
 0x3c6   : > { %3092 = vrcp.f32 %v3127_v23  ;;  %v3813_v23 = vld [vmem:[%s4069_s16 + $0x8] sm:$0xff] }
 0x3c7   : > { %v1719_v47 = vmax.f32 %v1717_v34, 0.0  ;;  %v1720_v31 = vmax.f32 %v1718_v44, 0.0 }
 0x3c8   : > { %v1662_v48 = vpop.f32.mrf.mxu1  ;;  %v1688_v49 = vpop.f32.mrf.mxu0 }
 0x3c9   : > { %v1721_v51 = vpack.c.bf16 %v1719_v47, %v1719_v47  ;;  %v1722_v52 = vpack.c.bf16 %v1720_v31, %v1720_v31 }
 0x3cb   : > { %v1736_v53 = vsel %vm4097_vm0, %v1721_v51, 0  ;;  %v1739_v54 = vsel %vm4097_vm0, %v1722_v52, 0  ;;  %v3777_v52 = vld [vmem:[%s4066_s13] sm:$0xff] }
 0x3cc   : > { %1748 = vmatpush.bf16.msrb.mxu3 %v1736_v53  ;;  %1762 = vmatpush.bf16.msra.mxu2 %v1739_v54  ;;  %v3093_v41 = vpop.eup %3092  ;;  %v3782_v53 = vld [vmem:[%s4066_s13 + $0x8] sm:$0xff] }
 0x3cd   : > { %v1818_v34 = vmul.f32 256.0, %v3093_v41  ;;  %vm1822_vm13 = vweird.f32 %v3093_v41 }
 0x3cf   : > { %2855 = vmatmul.msk.bf16.vlgmr.msrb.gmra.mxu3 %vm4096_vm7, %v2990_v55  ;;  %2856 = vmatmul.msk.bf16.vlgmr.msra.gmra.mxu2 %vm4096_vm7, %v2990_v55  ;;  %v1819_v44 = vsub.f32 1.0, %v1818_v34 }
 0x3d1   : > { %v1820_v47 = vmul.f32 %v3093_v41, %v1819_v44 }
 0x3d3   : > { %v1821_v31 = vadd.f32 %v3093_v41, %v1820_v47 }
 0x3d5   : > { %v3771_v48 = vsel %vm1822_vm13, %v3093_v41, %v1821_v31  ;;  %v3818_v41 = vld [vmem:[%s4069_s16] sm:$0xff] }
 0x452   : > { %v1750_v56 = vpop.f32.mrf.mxu3  ;;  %v1764_v19 = vpop.f32.mrf.mxu2 }
 0x453   : > { %v1781_v24 = vmul.f32 %v1774_v63, %v1750_v56  ;;  %v1782_v57 = vmul.f32 %v1774_v63, %v1764_v19 }
 0x455   : > { %v1797_v58 = vadd.f32 %v1790_v20, %v1781_v24  ;;  %v1798_v29 = vadd.f32 %v1790_v20, %v1782_v57 }
 0x457   : > { %v1801_v30 = vmax.f32 %v1797_v58, 0.0  ;;  %v1802_v33 = vmax.f32 %v1798_v29, 0.0 }
 0x459   : > { %v3755_v61 = vpack.c.bf16 %v1802_v33, %v1801_v30 }
 0x45a   : > { %v1752_v62 = vpop.f32.mrf.mxu3  ;;  %v1766_v0 = vpop.f32.mrf.mxu2 }
 0x45b   : > { %v1783_v2 = vmul.f32 %v1779_v21, %v1752_v62  ;;  %v1784_v4 = vmul.f32 %v1779_v21, %v1766_v0  ;;  %v1807_v11 = vunpack.c.l.bf16 %v3755_v61  ;;  %v1808_v50 = vunpack.c.h.bf16 %v3755_v61  ;;  %v1840_v21 = vld [vmem:[%s4067_s14] sm:$0x1] }
 0x45d   : > { %v1799_v10 = vadd.f32 %v1795_v8, %v1783_v2  ;;  %v1800_v27 = vadd.f32 %v1795_v8, %v1784_v4  ;;  %v1811_v12 = vadd.f32 %v1808_v50, %v1807_v11  ;;  %v3795_v4 = vld [vmem:[%s4068_s15 + $0x8] sm:$0xff]  ;;  %v3800_v8 = vld [vmem:[%s4068_s15] sm:$0xff] }
 0x45f   : > { %v1803_v16 = vmax.f32 %v1799_v10, 0.0  ;;  %v1804_v22 = vmax.f32 %v1800_v27, 0.0  ;;  %1812 = vadd.xlane.f32.xlu2 %v1811_v12 }
 0x461   : > { %v3763_v17 = vpack.c.bf16 %v1804_v22, %v1803_v16 }
 0x463   : > { %v1809_v36 = vunpack.c.l.bf16 %v3763_v17  ;;  %v1810_v37 = vunpack.c.h.bf16 %v3763_v17 }
 0x465   : > { %v1814_v35 = vadd.f32 %v1810_v37, %v1809_v36 }
 0x467   : > { %1815 = vadd.xlane.f32.xlu0 %v1814_v35  ;;  %v1950_v35 = vld [vmem:[%s4058_s5] sm:$0xff] }
 0x4d2   : > { %v1813_v49 = vpop.xlane.xlu2 %1812 }
 0x4d3   : > { %v1824_v51 = vmul.f32 %v3771_v48, %v1813_v49 }
 0x4d5   : > { %v1828_v55 = vmul.f32 %v3777_v52, %v1824_v51 }
 0x4d7   : > { %v1831_v19 = vsel %vm4095_vm12, %v1828_v55, 0.0 }
 0x4da   : > { %v1816_v54 = vpop.xlane.xlu0 %1815 }
 0x4db   : > { %v1825_v63 = vmul.f32 %v3771_v48, %v1816_v54 }
 0x4dd   : > { %v1829_v56 = vmul.f32 %v3782_v53, %v1825_v63 }
 0x4df   : > { %v1832_v24 = vsel %vm4095_vm12, %v1829_v56, 0.0 }
 0x4e0   : > { %v1833_v57 = vadd.f32 %v1832_v24, %v1831_v19 }
 0x4e2   : > { %v1834_v20 = vrot.slane %v1833_v57, 4 }
 0x4e4   : > { %v1835_v58 = vadd.f32 %v1834_v20, %v1833_v57 }
 0x4e6   : > { %v1836_v29 = vrot.slane %v1835_v58, 2 }
 0x4e8   : > { %v1837_v30 = vadd.f32 %v1836_v29, %v1835_v58 }
 0x4ea   : > { %v1838_v33 = vrot.slane %v1837_v30, 1 }
 0x4ec   : > { %v1839_v62 = vadd.f32 %v1838_v33, %v1837_v30 }
 0x4ee   : > { %v1841_v0 = vadd.f32 %v1840_v21, %v1839_v62 }
 0x4f0   : > { %v1842_v2 = vmax.f32 %v1841_v0, 0.0 }
 0x4f2   : > { %v1845_v10 = vperm.slane %v1842_v2, 0 }
 0x4f4   : > { %v1847_v27 = vmul.f32 %v1845_v10, %v3795_v4  ;;  %v1846_v12 = vmul.f32 %v1845_v10, %v3800_v8 }
 0x4f6   : > { %v1851_v16 = vsel %vm4095_vm12, %v1847_v27, 0.0  ;;  %v1848_v22 = vsel %vm4095_vm12, %v1846_v12, 0.0 }
 0x4f7   : > { %1852 = vadd.xlane.f32.xlu2 %v1851_v16  ;;  %1849 = vadd.xlane.f32.xlu1 %v1848_v22 }
 0x510   : > { %1954 = vperm.xlu1 %3049, %v1950_v35  }
 0x518   : > { %1975 = vperm.xlu1 %3049, %v3554_v9  }
 0x56a   : > { %v1853_v34 = vpop.xlane.xlu2 %1852  ;;  %v1850_v44 = vpop.xlane.xlu1 %1849 }
 0x56b   : > { %v1857_v47 = vadd.f32 %v3813_v23, %v1853_v34  ;;  %v1856_v31 = vadd.f32 %v3818_v41, %v1850_v44  ;;  %v1951_v44 = vld [vmem:[%s4058_s5 + $0x8] sm:$0xff] }
 0x56d   : > { %v2858_v49 = vmul.f32 -1.442695, %v1857_v47  ;;  %v2857_v51 = vmul.f32 -1.442695, %v1856_v31  ;;  %v1966_v47 = vld [vmem:[%s4059_s6] sm:$0xff] }
 0x56e   : > { %v2211_v31 = vld [vmem:[#allocation3 + $0xc] sm:$0xf] }
 0x56f   : > { %3094 = vpow2.f32 %v2858_v49  ;;  %v2213_v49 = vld [vmem:[#allocation3 + $0x1c] sm:$0xf] }
 0x570   : > { %3096 = vpow2.f32 %v2857_v51  ;;  %v2183_v51 = vld [vmem:[#allocation3 + $0xc] sm:$0xf] }
 0x575   : > { %v3095_v9 = vpop.eup %3094 }
 0x576   : > { %v3097_v54 = vpop.eup %3096  ;;  %v1865_v55 = vadd.f32 1.0, %v3095_v9  ;;  %v2185_v9 = vld [vmem:[#allocation3 + $0x1c] sm:$0xf] }
 0x577   : > { %v1864_v63 = vadd.f32 1.0, %v3097_v54  ;;  %v2215_v54 = vsel %vm3433_vm1, %v2211_v31, 0 }
 0x578   : > { %3098 = vrcp.f32 %v1865_v55  ;;  %v1892_v58 = vand.u32 2147483648, %v1865_v55  ;;  %v1890_v33 = vand.u32 2147483647, %v1865_v55  ;;  %vm1886_vm7 = vweird.f32 %v1865_v55 }
 0x579   : > { %3100 = vrcp.f32 %v1864_v63  ;;  %v1877_v21 = vand.u32 2147483648, %v1864_v63  ;;  %v1875_v0 = vand.u32 2147483647, %v1864_v63  ;;  %vm1871_vm14 = vweird.f32 %v1864_v63 }
 0x57a   : > { %v1893_v10 = vor.u32 1.1754944e-38, %v1892_v58  ;;  %vm1891_vm11 = vcmp.eq.f32.partialorder %v1890_v33, 8.507059e+37  ;;  %v2125_v33 = vsel %vm3353_vm8, %v2121_v46, 0 }
 0x57b   : > { %v1878_v16 = vor.u32 1.1754944e-38, %v1877_v21  ;;  %vm1876_vm4 = vcmp.eq.f32.partialorder %v1875_v0, 8.507059e+37  ;;  %v2609_v0 = vunpack.c.l.bf16 %v3568_v3 }
 0x57e   : > { %v3099_v56 = vpop.eup %3098 }
 0x57f   : > { %v3101_v19 = vpop.eup %3100  ;;  %v1882_v24 = vmul.f32 %v3099_v56, %v1865_v55  ;;  %vm1887_vm13 = vweird.f32 %v3099_v56  ;;  %v2217_v55 = vsel %vm3433_vm1, %v2213_v49, 0  ;;  %vm4174_vm1 = vnez %v4128_v42 }
 0x580   : > { %v1867_v57 = vmul.f32 %v3101_v19, %v1864_v63  ;;  %vm1872_vm12 = vweird.f32 %v3101_v19  ;;  %vm1888_vm0 = vmor %vm1886_vm7, %vm1887_vm13  ;;  %v3072_v63 = vpack.i.bf16 %v2185_v9, %v2183_v51  ;;  %vm4185_vm13 = vcmask 908288  }
 0x581   : > { %v1883_v20 = vsub.f32 1.0, %v1882_v24  ;;  %vm1873_vm6 = vmor %vm1871_vm14, %vm1872_vm12  ;;  %v2153_v24 = vld [vmem:[#allocation3 + $0x1c] sm:$0xf]  ;;  %vm4184_vm12 = vcmask 924672  }
 0x582   : > { %v1868_v29 = vsub.f32 1.0, %v1867_v57 }
 0x583   : > { %v1884_v30 = vmul.f32 %v3099_v56, %v1883_v20  ;;  %v2157_v20 = vsel %vm3324_vm15, %v2153_v24, 0 }
 0x584   : > { %v1869_v62 = vmul.f32 %v3101_v19, %v1868_v29  ;;  %v2119_v29 = vld [vmem:[#allocation3 + $0xc] sm:$0xf] }
 0x585   : > { %v1885_v2 = vadd.f32 %v3099_v56, %v1884_v30  ;;  %v2123_v30 = vsel %vm3353_vm8, %v2119_v29, 0  ;;  %vm4173_vm8 = vnez %v4126_v32 }
 0x586   : > { %v1870_v27 = vadd.f32 %v3101_v19, %v1869_v62  ;;  %v3082_v21 = vpack.i.bf16 %v2125_v33, %v2123_v30 }
 0x587   : > { %v1889_v12 = vsel %vm1888_vm0, %v3099_v56, %v1885_v2  ;;  %v3087_v56 = vpack.i.bf16 %v2217_v55, %v2215_v54 }
 0x588   : > { %v1894_v22 = vsel %vm1891_vm11, %v1893_v10, %v1889_v12  ;;  %v1874_v35 = vsel %vm1873_vm6, %v3101_v19, %v1870_v27  ;;  %v2151_v19 = vld [vmem:[#allocation3 + $0xc] sm:$0xf]  ;;  %vm4168_vm11 = vcmask 130048   ;;  %vm4182_vm6 = vcmask 121856  }
 0x589   : > { %1903 = vperm.xlu0 %3051, %v1894_v22   ;;  %v1879_v34 = vsel %vm1876_vm4, %v1878_v16, %v1874_v35  ;;  %v2155_v57 = vsel %vm3324_vm15, %v2151_v19, 0  ;;  %v2611_v16 = vunpack.c.l.bf16 %v3570_v6  ;;  %v2612_v22 = vunpack.c.h.bf16 %v3570_v6  ;;  %vm4169_vm14 = vmmov %vm4168_vm11 }
 0x58a   : > { %1898 = vperm.xlu2 %3050, %v1879_v34   ;;  %v3077_v58 = vpack.i.bf16 %v2157_v20, %v2155_v57  ;;  %vm4172_vm15 = vnez %v4124_v13 }
 0x591   : > { %1959 = vperm.xlu0 %3051, %v1951_v44  }
 0x592   : > { %1970 = vperm.xlu2 %3050, %v1966_v47  }
 0x599   : > { %3088 = vrot.lane.b32.xlu0 %v3087_v56, %s4147_s21 }
 0x59a   : > { %3073 = vrot.lane.b32.xlu2 %v3072_v63, %s3125_s22 }
 0x5a2   : > { %3078 = vrot.lane.b32.xlu2 %v3077_v58, %s3122_s1 }
 0x5aa   : > { %3083 = vrot.lane.b32.xlu2 %v3082_v21, %s4148_s0 }
 0x5e4   : > { %v1899_v62 = vpop.permute.xlu2 %1898 }
 0x5e5   : > { %v1906_v2 = vmul.f32 %v1899_v62, %v1807_v11  ;;  %v1907_v10 = vmul.f32 %v1899_v62, %v1808_v50  ;;  %v2991_v50 = vld [vmem:[%s4057_s4] sm:$0xff] }
 0x5e7   : > { %v3850_v27 = vadd.f32 %v2609_v0, %v1906_v2  ;;  %v3852_v12 = vadd.f32 %v2610_v45, %v1907_v10 }
 0x5fb   : > { %v1904_v1 = vpop.permute.xlu0 %1903 }
 0x5fc   : > { %v1908_v35 = vmul.f32 %v1904_v1, %v1809_v36  ;;  %v1909_v3 = vmul.f32 %v1904_v1, %v1810_v37  ;;  %v1955_v36 = vpop.permute.xlu1 %1954  ;;  %v1971_v37 = vpop.permute.xlu2 %1970 }
 0x5fe   : > { %v1910_v34 = vpack.c.bf16 %v1908_v35, %v1906_v2  ;;  %v1911_v11 = vpack.c.bf16 %v1909_v3, %v1907_v10  ;;  %v3860_v44 = vadd.f32 %v2611_v16, %v1908_v35  ;;  %v3862_v61 = vadd.f32 %v2612_v22, %v1909_v3 }
 0x600   : > { %1929 = vmatpush.bf16.msrb.mxu1 %v1910_v34  ;;  %1943 = vmatpush.bf16.msra.mxu3 %v1911_v11 }
 0x603   : > { %2863 = vmatmul.msk.bf16.vlgmr.msrb.gmra.mxu1 %vm4168_vm11, %v2991_v50  ;;  %2864 = vmatmul.msk.bf16.vlgmr.msra.gmra.mxu3 %vm4169_vm14, %v2991_v50  ;;  %v1960_v54 = vpop.permute.xlu0 %1959 }
 0x604   : > { %v1976_v24 = vpop.permute.xlu1 %1975  ;;  %v3928_v32 = vpop.permute.xlu2 %3073 }
 0x605   : > { %v3075_v42 = vunpack.i.l.bf16 %v3928_v32 }
 0x680   : > { %v1931_v6 = vpop.f32.mrf.mxu1 }
 0x681   : > { %v1962_v17 = vmul.f32 %v1955_v36, %v1931_v6 }
 0x683   : > { %v1978_v31 = vadd.f32 %v1971_v37, %v1962_v17 }
 0x685   : > { %v1982_v55 = vmax.f32 %v1978_v31, 0.0 }
 0x686   : > { %v1945_v47 = vpop.f32.mrf.mxu3 }
 0x687   : > { %v1963_v49 = vmul.f32 %v1955_v36, %v1945_v47 }
 0x688   : > { %v1933_v51 = vpop.f32.mrf.mxu1 }
 0x689   : > { %v1979_v9 = vadd.f32 %v1971_v37, %v1963_v49  ;;  %v1964_v56 = vmul.f32 %v1960_v54, %v1933_v51 }
 0x68b   : > { %v1983_v63 = vmax.f32 %v1979_v9, 0.0  ;;  %v1980_v20 = vadd.f32 %v1976_v24, %v1964_v56  ;;  %v3089_v9 = vpop.permute.xlu0 %3088 }
 0x68d   : > { %v1986_v19 = vpack.c.bf16 %v1983_v63, %v1982_v55  ;;  %v1984_v46 = vmax.f32 %v1980_v20, 0.0  ;;  %v2199_v55 = vrot.slane %v3075_v42, 4 }
 0x68e   : > { %v1947_v57 = vpop.f32.mrf.mxu3 }
 0x68f   : > { %1988 = vst [vmem:[#allocation3 + $0x4] sm:$0xff] %v1986_v19  ;;  %v1965_v58 = vmul.f32 %v1960_v54, %v1947_v57  ;;  %2190 = vrot.lane.b32.xlu0 %v1986_v19, %s3125_s22  ;;  %v2154_v1 = vsel %vm3363_vm9, %v1986_v19, 0  ;;  %v2214_v22 = vsel %vm3464_vm5, %v1986_v19, 0  ;;  %v2122_v35 = vsel %vm4172_vm15, %v1986_v19, 0 }
 0x690   : > { %2116 = vst [vmem:[#allocation2 + $0x40] sm:$0xff] %v1986_v19 }
 0x691   : > { %v1981_v29 = vadd.f32 %v1976_v24, %v1965_v58 }
 0x693   : > { %v1985_v30 = vmax.f32 %v1981_v29, 0.0 }
 0x695   : > { %v1987_v33 = vpack.c.bf16 %v1985_v30, %v1984_v46  ;;  %v3091_v30 = vunpack.i.h.bf16 %v3089_v9 }
 0x696   : > { %v2022_v21 = vld [vmem:[#allocation3] sm:$0xff]  ;;  %v2083_v62 = vld [vmem:[#allocation3 + $0x8] sm:$0xf] }
 0x697   : > { %v2023_v0 = vld [vmem:[#allocation3 + $0x8] sm:$0xf]  ;;  %1989 = vst [vmem:[#allocation3 + $0x14] sm:$0xff] %v1987_v33  ;;  %2030 = vrot.lane.b32.xlu1 %v2022_v21, %s3126_s23  ;;  %v2087_v45 = vsel %vm3308_vm10, %v2083_v62, 0  ;;  %v2054_v16 = vsel %vm3429_vm3, %v2022_v21, 0  ;;  %v2086_v11 = vsel %vm4173_vm8, %v2022_v21, 0 }
 0x698   : > { %2032 = vrot.lane.b32.xlu0 %v2023_v0, %s3126_s23  ;;  %2096 = vrot.lane.b32.xlu2 %v2087_v45, %s4170_s30  ;;  %2117 = vst [vmem:[#allocation2 + $0x48] sm:$0xff] %v1987_v33  ;;  %v2051_v2 = vld [vmem:[#allocation3 + $0x8] sm:$0xf]  ;;  %v2156_v6 = vsel %vm3363_vm9, %v1987_v33, 0  ;;  %v1994_v36 = vsel %vm4174_vm1, %v2022_v21, 0  ;;  %v2216_v17 = vsel %vm3464_vm5, %v1987_v33, 0  ;;  %vm4179_vm5 = vmmov %vm4168_vm11 }
 0x699   : > { %v2055_v10 = vsel %vm3341_vm2, %v2051_v2, 0  ;;  %v1991_v37 = vld [vmem:[#allocation3 + $0x8] sm:$0xf]  ;;  %v2124_v47 = vsel %vm4172_vm15, %v1987_v33, 0  ;;  %vm4188_vm15 = vmmov %vm4185_vm13 }
 0x69e   : > { %v2024_v3 = vld [vmem:[#allocation3 + $0x10] sm:$0xff]  ;;  %v2053_v34 = vld [vmem:[#allocation3 + $0x18] sm:$0xf] }
 0x69f   : > { %2064 = vrot.lane.b32.xlu1 %v2055_v10, %s4171_s19  ;;  %v2057_v50 = vsel %vm3341_vm2, %v2053_v34, 0  ;;  %v2085_v60 = vld [vmem:[#allocation3 + $0x18] sm:$0xf]  ;;  %vm4175_vm2 = vnez %v4114_v40  ;;  %v2088_v59 = vsel %vm4173_vm8, %v2024_v3, 0  ;;  %v2056_v49 = vsel %vm3429_vm3, %v2024_v3, 0  ;;  %v3936_v40 = vpop.permute.xlu2 %3078 }
 0x6a0   : > { %2162 = vrot.lane.b32.xlu0 %v2154_v1, %s3122_s1  ;;  %2062 = vrot.lane.b32.xlu2 %v2054_v16, %s4171_s19  ;;  %v2089_v5 = vsel %vm3308_vm10, %v2085_v60, 0  ;;  %v1995_v31 = vsel %vm4175_vm2, %v1991_v37, 0  ;;  %v1993_v38 = vld [vmem:[#allocation3 + $0x18] sm:$0xf]  ;;  %v1996_v43 = vsel %vm4174_vm1, %v2024_v3, 0  ;;  %vm4176_vm10 = vcmask 1043456  }
 0x6a1   : > { %v2025_v13 = vld [vmem:[#allocation3 + $0x18] sm:$0xf]  ;;  %v1997_v51 = vsel %vm4175_vm2, %v1993_v38, 0  ;;  %vm4177_vm3 = vcmask 916480   ;;  %vm4178_vm9 = vmmov %vm4176_vm10  ;;  %v3080_v46 = vunpack.i.l.bf16 %v3936_v40  ;;  %v2233_v1 = vrot.slane %v3091_v30, 4 }
 0x6a2   : > { %vm4180_vm0 = vmmov %vm4178_vm9  ;;  %vm4189_vm8 = vcmask 1039360  }
 0x6a3   : > { %v2171_v62 = vrot.slane %v3080_v46, 4  ;;  %vm4181_vm4 = vmmov %vm4180_vm0 }
 0x6a4   : > { %vm4183_vm7 = vmmov %vm4180_vm0 }
 0x6a5   : > { %vm4186_vm11 = vmmov %vm4180_vm0 }
 0x6a6   : > { %vm4187_vm14 = vmmov %vm4180_vm0 }
 0x6a7   : > { %2222 = vrot.lane.b32.xlu1 %v2214_v22, %s4147_s21  ;;  %vm4190_vm1 = vmmov %vm4180_vm0 }
 0x6a8   : > { %2130 = vrot.lane.b32.xlu0 %v2122_v35, %s4148_s0  ;;  %2034 = vrot.lane.b32.xlu2 %v2024_v3, %s3126_s23  ;;  %vm4191_vm2 = vmmov %vm4180_vm0 }
 0x6af   : > { %2194 = vrot.lane.b32.xlu1 %v1987_v33, %s3125_s22 }
 0x6b0   : > { %2094 = vrot.lane.b32.xlu0 %v2086_v11, %s4170_s30  ;;  %2068 = vrot.lane.b32.xlu2 %v2057_v50, %s4171_s19 }
 0x6b7   : > { %2166 = vrot.lane.b32.xlu1 %v2156_v6, %s3122_s1  ;;  %v3090_v6 = vunpack.i.l.bf16 %v3089_v9 }
 0x6b8   : > { %2002 = vrot.lane.b32.xlu0 %v1994_v36, %s4150_s27  ;;  %2226 = vrot.lane.b32.xlu2 %v2216_v17, %s4147_s21 }
 0x6bf   : > { %2134 = vrot.lane.b32.xlu1 %v2124_v47, %s4148_s0  ;;  %v2231_v47 = vrot.slane %v3090_v6, 4  ;;  %s4216_s0 = sshll.u32 %s4218_s25, 5 }
 0x6c0   : > { %2100 = vrot.lane.b32.xlu0 %v2089_v5, %s4170_s30  ;;  %2004 = vrot.lane.b32.xlu2 %v1995_v31, %s4150_s27  ;;  %s548_s29 = scalar_lea.vmem %s4070_s17, %s4216_s0 }
 0x6c7   : > { %2098 = vrot.lane.b32.xlu1 %v2088_v59, %s4170_s30 }
 0x6c8   : > { %2066 = vrot.lane.b32.xlu0 %v2056_v49, %s4171_s19  ;;  %2415 = vperm.xlu2 %3050, %v3631_v7   ;;  %v3939_v7 = vpop.permute.xlu2 %3083 }
 0x6c9   : > { %v3085_v50 = vunpack.i.l.bf16 %v3939_v7 }
 0x6cb   : > { %v2139_v37 = vrot.slane %v3085_v50, 4 }
 0x6cf   : > { %2036 = vrot.lane.b32.xlu1 %v2025_v13, %s3126_s23 }
 0x6d0   : > { %2008 = vrot.lane.b32.xlu0 %v1997_v51, %s4150_s27  ;;  %2485 = vperm.xlu2 %3050, %v3643_v15   ;;  %v3076_v51 = vunpack.i.h.bf16 %v3928_v32 }
 0x6d7   : > { %2006 = vrot.lane.b32.xlu1 %v1996_v43, %s4150_s27 }
 0x6d8   : > { %2480 = vperm.xlu0 %3051, %v3653_v18  }
 0x6df   : > { %2423 = vperm.xlu1 %3049, %v3664_v25  }
 0x6e0   : > { %2501 = vperm.xlu0 %3051, %v3669_v26  }
 0x6e7   : > { %2496 = vperm.xlu1 %3049, %v3678_v28  }
 0x6f2   : > { %v3941_v15 = vpop.permute.xlu2 %2096 }
 0x6f3   : > { %v2103_v42 = vrot.slane %v3941_v15, 4 }
 0x6fa   : > { %v2063_v54 = vpop.permute.xlu2 %2062 }
 0x6fb   : > { %v2070_v0 = vrot.slane %v2063_v54, 4 }
 0x701   : > { %v2191_v63 = vpop.permute.xlu0 %2190 }
 0x702   : > { %v3944_v56 = vpop.permute.xlu2 %2034  ;;  %v2198_v18 = vrot.slane %v2191_v63, 4 }
 0x704   : > { %v2202_v25 = vsel %vm4176_vm10, %v2198_v18, %v2199_v55  ;;  %vm4192_vm10 = vmmov %vm4177_vm3 }
 0x705   : > { %v2203_v26 = vsel %vm4177_vm3, %v2191_v63, %v2202_v25  ;;  %vm4193_vm3 = vcmask 7168  }
 0x706   : > { %2208 = vst [vmem:[#allocation2 + $0x70] sm:$0xff] %v2203_v26 }
 0x709   : > { %v2031_v19 = vpop.permute.xlu1 %2030 }
 0x70a   : > { %v2033_v28 = vpop.permute.xlu0 %2032  ;;  %v2038_v24 = vrot.slane %v2031_v19, 4  ;;  %v3948_v57 = vpop.permute.xlu2 %2068 }
 0x70b   : > { %v2039_v20 = vrot.slane %v2033_v28, 4 }
 0x70d   : > { %v2042_v58 = vsel %vm4178_vm9, %v2038_v24, %v2039_v20  ;;  %vm4194_vm9 = vmmov %vm4179_vm5 }
 0x70e   : > { %v2043_v29 = vsel %vm4179_vm5, %v2031_v19, %v2042_v58  ;;  %v3081_v58 = vunpack.i.h.bf16 %v3936_v40 }
 0x70f   : > { %2048 = vst [vmem:[#allocation2 + $0x10] sm:$0xff] %v2043_v29 }
 0x711   : > { %v2065_v33 = vpop.permute.xlu1 %2064 }
 0x712   : > { %v2163_v21 = vpop.permute.xlu0 %2162  ;;  %v2071_v45 = vrot.slane %v2065_v33, 4  ;;  %v2227_v2 = vpop.permute.xlu2 %2226 }
 0x713   : > { %v2170_v10 = vrot.slane %v2163_v21, 4  ;;  %v2232_v16 = vrot.slane %v2227_v2, 4 }
 0x714   : > { %v2074_v22 = vsel %vm4180_vm0, %v2070_v0, %v2071_v45 }
 0x715   : > { %v2174_v35 = vsel %vm4181_vm4, %v2170_v10, %v2171_v62  ;;  %v2075_v3 = vsel %vm4182_vm6, %v2063_v54, %v2074_v22  ;;  %v2236_v34 = vsel %vm4183_vm7, %v2232_v16, %v2233_v1  ;;  %v2201_v54 = vrot.slane %v3076_v51, 4  ;;  %vm4195_vm4 = vmmov %vm4180_vm0  ;;  %v3006_v22 = vld [vmem:[#allocation2 + $0x74] sm:$0xf] }
 0x716   : > { %v2175_v11 = vsel %vm4184_vm12, %v2163_v21, %v2174_v35  ;;  %2080 = vst [vmem:[#allocation2 + $0x20] sm:$0xff] %v2075_v3  ;;  %v2237_v36 = vsel %vm4185_vm13, %v2227_v2, %v2236_v34  ;;  %v2173_v21 = vrot.slane %v3081_v58, 4  ;;  %v2923_v2 = vld [vmem:[#allocation2 + $0x70] sm:$0xf]  ;;  %vm4196_vm6 = vmmov %vm4184_vm12  ;;  %vm4197_vm7 = vcmask 138240  }
 0x717   : > { %2241 = vst [vmem:[#allocation2 + $0x88] sm:$0xff] %v2237_v36  ;;  %v3086_v34 = vunpack.i.h.bf16 %v3939_v7  ;;  %vm4198_vm12 = vmmov %vm4180_vm0  ;;  %v2073_v51 = vrot.slane %v3948_v57, 4  ;;  %v3001_v57 = vld [vmem:[#allocation2 + $0x44] sm:$0xf0] }
 0x718   : > { %2180 = vst [vmem:[#allocation2 + $0x60] sm:$0xff] %v2175_v11  ;;  %vm4199_vm13 = vmmov %vm4189_vm8 }
 0x719   : > { %v2223_v17 = vpop.permute.xlu1 %2222  ;;  %v2141_v36 = vrot.slane %v3086_v34, 4 }
 0x71a   : > { %v2131_v60 = vpop.permute.xlu0 %2130  ;;  %v2230_v5 = vrot.slane %v2223_v17, 4  ;;  %v2005_v15 = vpop.permute.xlu2 %2004 }
 0x71b   : > { %v2138_v31 = vrot.slane %v2131_v60, 4  ;;  %v2011_v62 = vrot.slane %v2005_v15, 4  ;;  %v2040_v15 = vrot.slane %v3944_v56, 4 }
 0x71c   : > { %v2234_v59 = vsel %vm4186_vm11, %v2230_v5, %v2231_v47  ;;  %vm4200_vm11 = vmmov %vm4180_vm0 }
 0x71d   : > { %v2142_v49 = vsel %vm4187_vm14, %v2138_v31, %v2139_v37  ;;  %v2235_v38 = vsel %vm4188_vm15, %v2223_v17, %v2234_v59  ;;  %vm4201_vm14 = vmmov %vm4180_vm0 }
 0x71e   : > { %v2143_v13 = vsel %vm4189_vm8, %v2131_v60, %v2142_v49  ;;  %2240 = vst [vmem:[#allocation2 + $0x80] sm:$0xff] %v2235_v38  ;;  %v3009_v25 = vld [vmem:[#allocation2 + $0x84] sm:$0xf0]  ;;  %v2933_v20 = vld [vmem:[#allocation2 + $0x88] sm:$0xf0]  ;;  %vm4202_vm15 = vmmov %vm4193_vm3  ;;  %vm4203_vm8 = vcmask 121856  }
 0x71f   : > { %2148 = vst [vmem:[#allocation2 + $0x50] sm:$0xff] %v2143_v13  ;;  %v2915_v37 = vld [vmem:[#allocation2 + $0x60] sm:$0xf]  ;;  %v3004_v31 = vld [vmem:[#allocation2 + $0x64] sm:$0xf] }
 0x721   : > { %v2195_v43 = vpop.permute.xlu1 %2194 }
 0x722   : > { %v2095_v9 = vpop.permute.xlu0 %2094  ;;  %v2200_v55 = vrot.slane %v2195_v43, 4 }
 0x723   : > { %v2102_v63 = vrot.slane %v2095_v9, 4 }
 0x724   : > { %v2204_v18 = vsel %vm4190_vm1, %v2200_v55, %v2201_v54  ;;  %vm4204_vm1 = vmmov %vm4180_vm0 }
 0x725   : > { %v2106_v26 = vsel %vm4191_vm2, %v2102_v63, %v2103_v42  ;;  %v2205_v19 = vsel %vm4192_vm10, %v2195_v43, %v2204_v18  ;;  %v2931_v28 = vld [vmem:[#allocation2 + $0x80] sm:$0xf]  ;;  %v3008_v24 = vld [vmem:[#allocation2 + $0x84] sm:$0xf]  ;;  %vm4205_vm2 = vmmov %vm4179_vm5 }
 0x726   : > { %v2107_v32 = vsel %vm4193_vm3, %v2095_v9, %v2106_v26  ;;  %2209 = vst [vmem:[#allocation2 + $0x78] sm:$0xff] %v2205_v19  ;;  %v2932_v29 = vor.u32 %v3009_v25, %v2931_v28  ;;  %v2936_v46 = vor.u32 %v3008_v24, %v2933_v20  ;;  %v2907_v55 = vld [vmem:[#allocation2 + $0x50] sm:$0xf]  ;;  %v3002_v26 = vld [vmem:[#allocation2 + $0x54] sm:$0xf]  ;;  %vm4206_vm10 = vmmov %vm4180_vm0 }
 0x727   : > { %2112 = vst [vmem:[#allocation2 + $0x30] sm:$0xff] %v2107_v32  ;;  %v2901_v32 = vld [vmem:[#allocation2 + $0x48] sm:$0xf0]  ;;  %vm4207_vm3 = vmmov %vm4197_vm7 }
 0x728   : > { %2380 = vmatpush.bf16.msrb.mxu2 %v2932_v29  ;;  %2406 = vmatpush.bf16.msrb.mxu3 %v2936_v46  ;;  %v2899_v29 = vld [vmem:[#allocation2 + $0x40] sm:$0xf]  ;;  %v3000_v46 = vld [vmem:[#allocation2 + $0x44] sm:$0xf] }
 0x729   : > { %v2167_v30 = vpop.permute.xlu1 %2166 }
 0x72a   : > { %v2003_v33 = vpop.permute.xlu0 %2002  ;;  %v2172_v0 = vrot.slane %v2167_v30, 4 }
 0x72b   : > { %v2010_v45 = vrot.slane %v2003_v33, 4  ;;  %2937 = vmatmul.msk.bf16.vlgmr.msrb.gmra.mxu2 %vm4194_vm9, %v3724_v39  ;;  %2938 = vmatmul.msk.bf16.vlgmr.msrb.gmra.mxu3 %vm4179_vm5, %v3724_v39  ;;  %vm4208_vm9 = vmmov %vm4180_vm0 }
 0x72c   : > { %v2176_v40 = vsel %vm4180_vm0, %v2172_v0, %v2173_v21  ;;  %v2904_v21 = vor.u32 %v3000_v46, %v2901_v32  ;;  %vm4209_vm5 = vmmov %vm4180_vm0  ;;  %vm4210_vm0 = vcmask 64512  }
 0x72d   : > { %v2014_v10 = vsel %vm4195_vm4, %v2010_v45, %v2011_v62  ;;  %v2177_v1 = vsel %vm4196_vm6, %v2167_v30, %v2176_v40  ;;  %v3007_v16 = vld [vmem:[#allocation2 + $0x74] sm:$0xf0]  ;;  %v2925_v35 = vld [vmem:[#allocation2 + $0x78] sm:$0xf0]  ;;  %vm4211_vm4 = vmmov %vm4210_vm0  ;;  %vm4212_vm6 = vcmask 15360  }
 0x72e   : > { %v2015_v3 = vsel %vm4197_vm7, %v2003_v33, %v2014_v10  ;;  %2181 = vst [vmem:[#allocation2 + $0x68] sm:$0xff] %v2177_v1  ;;  %v2924_v11 = vor.u32 %v3007_v16, %v2923_v2  ;;  %v2928_v50 = vor.u32 %v3006_v22, %v2925_v35  ;;  %v2900_v33 = vor.u32 %v3001_v57, %v2899_v29  ;;  %v2891_v0 = vld [vmem:[#allocation2 + $0x30] sm:$0xf]  ;;  %v2998_v2 = vld [vmem:[#allocation2 + $0x34] sm:$0xf]  ;;  %vm4213_vm7 = vmmov %vm4212_vm6 }
 0x72f   : > { %2020 = vst [vmem:[#allocation2] sm:$0xff] %v2015_v3 }
 0x730   : > { %2360 = vmatpush.bf16.msra.mxu0 %v2924_v11  ;;  %2386 = vmatpush.bf16.msra.mxu1 %v2928_v50  ;;  %v2883_v11 = vld [vmem:[#allocation2 + $0x20] sm:$0xf]  ;;  %v2996_v50 = vld [vmem:[#allocation2 + $0x24] sm:$0xf] }
 0x731   : > { %v2135_v39 = vpop.permute.xlu1 %2134 }
 0x732   : > { %v2101_v6 = vpop.permute.xlu0 %2100  ;;  %v2140_v17 = vrot.slane %v2135_v39, 4 }
 0x733   : > { %v2105_v43 = vrot.slane %v2101_v6, 4 }
 0x734   : > { %v2144_v60 = vsel %vm4198_vm12, %v2140_v17, %v2141_v36  ;;  %vm4214_vm12 = vmmov %vm4212_vm6 }
 0x735   : > { %v2145_v47 = vsel %vm4199_vm13, %v2135_v39, %v2144_v60  ;;  %v3005_v5 = vld [vmem:[#allocation2 + $0x64] sm:$0xf0]  ;;  %v2917_v59 = vld [vmem:[#allocation2 + $0x68] sm:$0xf0]  ;;  %v2875_v60 = vld [vmem:[#allocation2 + $0x10] sm:$0xf] }
 0x736   : > { %2149 = vst [vmem:[#allocation2 + $0x58] sm:$0xff] %v2145_v47  ;;  %v2916_v7 = vor.u32 %v3005_v5, %v2915_v37  ;;  %v2920_v49 = vor.u32 %v3004_v31, %v2917_v59  ;;  %v2994_v5 = vld [vmem:[#allocation2 + $0x14] sm:$0xf]  ;;  %vm4215_vm13 = vmmov %vm4212_vm6 }
 0x738   : > { %2361 = vmatpush.bf16.msra.mxu0 %v2916_v7  ;;  %2387 = vmatpush.bf16.msra.mxu1 %v2920_v49  ;;  %v2867_v49 = vld [vmem:[#allocation2] sm:$0xf] }
 0x739   : > { %v2099_v38 = vpop.permute.xlu1 %2098 }
 0x73a   : > { %v2067_v13 = vpop.permute.xlu0 %2066  ;;  %v2104_v9 = vrot.slane %v2099_v38, 4 }
 0x73b   : > { %v2072_v54 = vrot.slane %v2067_v13, 4 }
 0x73c   : > { %v2108_v42 = vsel %vm4200_vm11, %v2104_v9, %v2105_v43 }
 0x73d   : > { %v2076_v63 = vsel %vm4201_vm14, %v2072_v54, %v2073_v51  ;;  %v2109_v18 = vsel %vm4202_vm15, %v2099_v38, %v2108_v42  ;;  %v3003_v25 = vld [vmem:[#allocation2 + $0x54] sm:$0xf0]  ;;  %v2909_v19 = vld [vmem:[#allocation2 + $0x58] sm:$0xf0] }
 0x73e   : > { %v2077_v28 = vsel %vm4203_vm8, %v2067_v13, %v2076_v63  ;;  %2113 = vst [vmem:[#allocation2 + $0x38] sm:$0xff] %v2109_v18  ;;  %v2908_v24 = vor.u32 %v3003_v25, %v2907_v55  ;;  %v2912_v20 = vor.u32 %v3002_v26, %v2909_v19  ;;  %v2992_v13 = vld [vmem:[#allocation2 + $0x4] sm:$0xf] }
 0x73f   : > { %2081 = vst [vmem:[#allocation2 + $0x28] sm:$0xff] %v2077_v28  ;;  %v2416_v28 = vpop.permute.xlu2 %2415 }
 0x740   : > { %2362 = vmatpush.bf16.msra.mxu0 %v2908_v24  ;;  %2388 = vmatpush.bf16.msra.mxu1 %v2912_v20 }
 0x741   : > { %v2037_v58 = vpop.permute.xlu1 %2036 }
 0x742   : > { %v2041_v30 = vrot.slane %v2037_v58, 4  ;;  %v2009_v22 = vpop.permute.xlu0 %2008 }
 0x743   : > { %v2013_v39 = vrot.slane %v2009_v22, 4 }
 0x744   : > { %v2044_v62 = vsel %vm4204_vm1, %v2040_v15, %v2041_v30  ;;  %2363 = vmatpush.bf16.msra.mxu0 %v2900_v33  ;;  %2389 = vmatpush.bf16.msra.mxu1 %v2904_v21 }
 0x745   : > { %v2045_v45 = vsel %vm4205_vm2, %v3944_v56, %v2044_v62  ;;  %v2999_v40 = vld [vmem:[#allocation2 + $0x34] sm:$0xf0]  ;;  %v2893_v10 = vld [vmem:[#allocation2 + $0x38] sm:$0xf0] }
 0x746   : > { %2049 = vst [vmem:[#allocation2 + $0x18] sm:$0xff] %v2045_v45  ;;  %v2892_v1 = vor.u32 %v2999_v40, %v2891_v0  ;;  %v2896_v16 = vor.u32 %v2998_v2, %v2893_v10  ;;  %v2997_v35 = vld [vmem:[#allocation2 + $0x24] sm:$0xf0]  ;;  %v2885_v3 = vld [vmem:[#allocation2 + $0x28] sm:$0xf0]  ;;  %v3010_v0 = vld [vmem:[%s4063_s10] sm:$0xff] }
 0x747   : > { %v2884_v36 = vor.u32 %v2997_v35, %v2883_v11  ;;  %v2888_v17 = vor.u32 %v2996_v50, %v2885_v3  ;;  %v2486_v11 = vpop.permute.xlu2 %2485 }
 0x748   : > { %2364 = vmatpush.bf16.msra.mxu0 %v2892_v1  ;;  %2390 = vmatpush.bf16.msra.mxu1 %v2896_v16 }
 0x749   : > { %v2007_v34 = vpop.permute.xlu1 %2006 }
 0x74a   : > { %v2012_v6 = vrot.slane %v2007_v34, 4  ;;  %v2481_v45 = vpop.permute.xlu0 %2480 }
 0x74c   : > { %v2016_v56 = vsel %vm4206_vm10, %v2012_v6, %v2013_v39  ;;  %2365 = vmatpush.bf16.msra.mxu0 %v2884_v36  ;;  %2391 = vmatpush.bf16.msra.mxu1 %v2888_v17 }
 0x74d   : > { %v2017_v37 = vsel %vm4207_vm3, %v2007_v34, %v2016_v56  ;;  %v2995_v47 = vld [vmem:[#allocation2 + $0x14] sm:$0xf0]  ;;  %v2877_v31 = vld [vmem:[#allocation2 + $0x18] sm:$0xf0] }
 0x74e   : > { %2021 = vst [vmem:[#allocation2 + $0x8] sm:$0xff] %v2017_v37  ;;  %v2876_v59 = vor.u32 %v2995_v47, %v2875_v60  ;;  %v2880_v7 = vor.u32 %v2994_v5, %v2877_v31 }
 0x750   : > { %2366 = vmatpush.bf16.msra.mxu0 %v2876_v59  ;;  %2392 = vmatpush.bf16.msra.mxu1 %v2880_v7 }
 0x751   : > { %v2424_v57 = vpop.permute.xlu1 %2423 }
 0x752   : > { %v2502_v37 = vpop.permute.xlu0 %2501 }
 0x755   : > { %v2993_v38 = vld [vmem:[#allocation2 + $0x4] sm:$0xf0]  ;;  %v2869_v51 = vld [vmem:[#allocation2 + $0x8] sm:$0xf0] }
 0x756   : > { %v2868_v43 = vor.u32 %v2993_v38, %v2867_v49  ;;  %v2872_v9 = vor.u32 %v2992_v13, %v2869_v51 }
 0x758   : > { %2367 = vmatpush.bf16.msra.mxu0 %v2868_v43  ;;  %2393 = vmatpush.bf16.msra.mxu1 %v2872_v9 }
 0x759   : > { %v2497_v16 = vpop.permute.xlu1 %2496 }
 0x75b   : > { %2368 = vmatmul.bf16.vlgmr.msra.gmra.mxu0 %v3744_v14  ;;  %2394 = vmatmul.bf16.vlgmr.msra.gmra.mxu1 %v3744_v14 }
 0x7ae   : > { %v2382_v54 = vpop.f32.mrf.mxu2  ;;  %v2408_v42 = vpop.f32.mrf.mxu3 }
 0x7b6   : > { %v2384_v55 = vpop.f32.mrf.mxu2  ;;  %v2410_v63 = vpop.f32.mrf.mxu3 }
 0x7d8   : > { %v2369_v18 = vpop.f32.mrf.mxu0  ;;  %v2395_v25 = vpop.f32.mrf.mxu1 }
 0x7d9   : > { %v2383_v26 = vadd.f32 %v2382_v54, %v2369_v18  ;;  %v2409_v19 = vadd.f32 %v2408_v42, %v2395_v25 }
 0x7db   : > { %v2418_v24 = vmul.f32 %v2416_v28, %v2383_v26  ;;  %v2419_v20 = vmul.f32 %v2416_v28, %v2409_v19 }
 0x7dd   : > { %v2426_v32 = vadd.f32 %v2424_v57, %v2418_v24  ;;  %v2427_v58 = vadd.f32 %v2424_v57, %v2419_v20 }
 0x7df   : > { %v2428_v29 = vmax.f32 %v2426_v32, 0.0  ;;  %v2429_v46 = vmax.f32 %v2427_v58, 0.0  ;;  %v2539_v32 = vld [vmem:[%s4067_s14] sm:$0x1] }
 0x7e0   : > { %v2371_v15 = vpop.f32.mrf.mxu0  ;;  %v2397_v30 = vpop.f32.mrf.mxu1 }
 0x7e1   : > { %v2430_v33 = vpack.c.bf16 %v2428_v29, %v2428_v29  ;;  %v2431_v14 = vpack.c.bf16 %v2429_v46, %v2429_v46 }
 0x7e3   : > { %v2443_v21 = vsel %vm4208_vm9, %v2430_v33, 0  ;;  %v2446_v62 = vsel %vm4209_vm5, %v2431_v14, 0 }
 0x7e4   : > { %2455 = vmatpush.bf16.msra.mxu2 %v2443_v21  ;;  %2469 = vmatpush.bf16.msra.mxu3 %v2446_v62 }
 0x7e7   : > { %2943 = vmatmul.msk.bf16.vlgmr.msra.gmra.mxu2 %vm4210_vm0, %v3010_v0  ;;  %2944 = vmatmul.msk.bf16.vlgmr.msra.gmra.mxu3 %vm4211_vm4, %v3010_v0 }
 0x86a   : > { %v2457_v40 = vpop.f32.mrf.mxu2  ;;  %v2471_v2 = vpop.f32.mrf.mxu3 }
 0x86b   : > { %v2488_v10 = vmul.f32 %v2481_v45, %v2457_v40  ;;  %v2489_v1 = vmul.f32 %v2481_v45, %v2471_v2 }
 0x86d   : > { %v2504_v22 = vadd.f32 %v2497_v16, %v2488_v10  ;;  %v2505_v35 = vadd.f32 %v2497_v16, %v2489_v1 }
 0x86f   : > { %v2508_v3 = vmax.f32 %v2504_v22, 0.0  ;;  %v2509_v34 = vmax.f32 %v2505_v35, 0.0 }
 0x871   : > { %v4002_v50 = vpack.c.bf16 %v2509_v34, %v2508_v3 }
 0x872   : > { %v2459_v39 = vpop.f32.mrf.mxu2  ;;  %v2473_v6 = vpop.f32.mrf.mxu3 }
 0x873   : > { %v2490_v36 = vmul.f32 %v2486_v11, %v2459_v39  ;;  %v2491_v17 = vmul.f32 %v2486_v11, %v2473_v6  ;;  %v2514_v56 = vunpack.c.l.bf16 %v4002_v50  ;;  %v2515_v60 = vunpack.c.h.bf16 %v4002_v50 }
 0x875   : > { %v2506_v47 = vadd.f32 %v2502_v37, %v2490_v36  ;;  %v2507_v5 = vadd.f32 %v2502_v37, %v2491_v17  ;;  %v2518_v31 = vadd.f32 %v2515_v60, %v2514_v56 }
 0x877   : > { %v2510_v59 = vmax.f32 %v2506_v47, 0.0  ;;  %v2511_v7 = vmax.f32 %v2507_v5, 0.0  ;;  %2519 = vadd.xlane.f32.xlu2 %v2518_v31 }
 0x879   : > { %v4010_v49 = vpack.c.bf16 %v2511_v7, %v2510_v59 }
 0x87b   : > { %v2516_v38 = vunpack.c.l.bf16 %v4010_v49  ;;  %v2517_v13 = vunpack.c.h.bf16 %v4010_v49 }
 0x87d   : > { %v2521_v51 = vadd.f32 %v2517_v13, %v2516_v38 }
 0x87f   : > { %2522 = vadd.xlane.f32.xlu1 %v2521_v51 }
 0x8ea   : > { %v2520_v43 = vpop.xlane.xlu2 %2519 }
 0x8eb   : > { %v2524_v9 = vmul.f32 %v2520_v43, %v3771_v48 }
 0x8ed   : > { %v2528_v42 = vmul.f32 %v2524_v9, %v3777_v52 }
 0x8ef   : > { %v2530_v18 = vsel %vm4212_vm6, %v2528_v42, 0.0 }
 0x8f2   : > { %v2523_v54 = vpop.xlane.xlu1 %2522 }
 0x8f3   : > { %v2525_v55 = vmul.f32 %v2523_v54, %v3771_v48 }
 0x8f5   : > { %v2529_v63 = vmul.f32 %v2525_v55, %v3782_v53 }
 0x8f7   : > { %v2531_v25 = vsel %vm4213_vm7, %v2529_v63, 0.0 }
 0x8f8   : > { %v2532_v26 = vadd.f32 %v2531_v25, %v2530_v18 }
 0x8fa   : > { %v2533_v19 = vrot.slane %v2532_v26, 4 }
 0x8fc   : > { %v2534_v28 = vadd.f32 %v2533_v19, %v2532_v26 }
 0x8fe   : > { %v2535_v24 = vrot.slane %v2534_v28, 2 }
 0x900   : > { %v2536_v20 = vadd.f32 %v2535_v24, %v2534_v28 }
 0x902   : > { %v2537_v57 = vrot.slane %v2536_v20, 1 }
 0x904   : > { %v2538_v58 = vadd.f32 %v2537_v57, %v2536_v20 }
 0x906   : > { %v2540_v52 = vadd.f32 %v2539_v32, %v2538_v58 }
 0x908   : > { %v2541_v29 = vmax.f32 %v2540_v52, 0.0 }
 0x90a   : > { %v2544_v48 = vperm.slane %v2541_v29, 0 }
 0x90c   : > { %v2546_v53 = vmul.f32 %v2544_v48, %v3795_v4  ;;  %v2545_v46 = vmul.f32 %v2544_v48, %v3800_v8 }
 0x90e   : > { %v2550_v15 = vsel %vm4214_vm12, %v2546_v53, 0.0  ;;  %v2547_v30 = vsel %vm4215_vm13, %v2545_v46, 0.0 }
 0x90f   : > { %2551 = vadd.xlane.f32.xlu2 %v2550_v15  ;;  %2548 = vadd.xlane.f32.xlu0 %v2547_v30 }
 0x982   : > { %v2552_v33 = vpop.xlane.xlu2 %2551  ;;  %v2549_v14 = vpop.xlane.xlu0 %2548 }
 0x983   : > { %v2556_v21 = vadd.f32 %v2552_v33, %v3813_v23  ;;  %v2555_v62 = vadd.f32 %v2549_v14, %v3818_v41 }
 0x985   : > { %v2946_v0 = vmul.f32 -1.442695, %v2556_v21  ;;  %v2945_v45 = vmul.f32 -1.442695, %v2555_v62 }
 0x987   : > { %3102 = vpow2.f32 %v2946_v0 }
 0x988   : > { %3104 = vpow2.f32 %v2945_v45 }
 0x98d   : > { %v3103_v40 = vpop.eup %3102 }
 0x98e   : > { %v3105_v4 = vpop.eup %3104  ;;  %v2564_v2 = vadd.f32 1.0, %v3103_v40 }
 0x98f   : > { %v2563_v8 = vadd.f32 1.0, %v3105_v4 }
 0x990   : > { %3106 = vrcp.f32 %v2564_v2  ;;  %v2591_v3 = vand.u32 2147483648, %v2564_v2  ;;  %v2589_v41 = vand.u32 2147483647, %v2564_v2  ;;  %vm2585_vm15 = vweird.f32 %v2564_v2 }
 0x991   : > { %3108 = vrcp.f32 %v2563_v8  ;;  %v2576_v11 = vand.u32 2147483648, %v2563_v8  ;;  %v2574_v6 = vand.u32 2147483647, %v2563_v8  ;;  %vm2570_vm1 = vweird.f32 %v2563_v8 }
 0x992   : > { %v2592_v17 = vor.u32 1.1754944e-38, %v2591_v3  ;;  %vm2590_vm2 = vcmp.eq.f32.partialorder %v2589_v41, 8.507059e+37 }
 0x993   : > { %v2577_v5 = vor.u32 1.1754944e-38, %v2576_v11  ;;  %vm2575_vm3 = vcmp.eq.f32.partialorder %v2574_v6, 8.507059e+37 }
 0x996   : > { %v3107_v10 = vpop.eup %3106 }
 0x997   : > { %v3109_v1 = vpop.eup %3108  ;;  %v2581_v16 = vmul.f32 %v3107_v10, %v2564_v2  ;;  %vm2586_vm11 = vweird.f32 %v3107_v10 }
 0x998   : > { %v2566_v22 = vmul.f32 %v3109_v1, %v2563_v8  ;;  %vm2571_vm14 = vweird.f32 %v3109_v1  ;;  %vm2587_vm8 = vmor %vm2585_vm15, %vm2586_vm11 }
 0x999   : > { %v2582_v35 = vsub.f32 1.0, %v2581_v16  ;;  %vm2572_vm10 = vmor %vm2570_vm1, %vm2571_vm14 }
 0x99a   : > { %v2567_v34 = vsub.f32 1.0, %v2566_v22 }
 0x99b   : > { %v2583_v23 = vmul.f32 %v3107_v10, %v2582_v35 }
 0x99c   : > { %v2568_v39 = vmul.f32 %v3109_v1, %v2567_v34 }
 0x99d   : > { %v2584_v36 = vadd.f32 %v3107_v10, %v2583_v23 }
 0x99e   : > { %v2569_v37 = vadd.f32 %v3109_v1, %v2568_v39 }
 0x99f   : > { %v2588_v47 = vsel %vm2587_vm8, %v3107_v10, %v2584_v36 }
 0x9a0   : > { %v2593_v31 = vsel %vm2590_vm2, %v2592_v17, %v2588_v47  ;;  %v2573_v59 = vsel %vm2572_vm10, %v3109_v1, %v2569_v37 }
 0x9a1   : > { %2602 = vperm.xlu0 %3051, %v2593_v31   ;;  %v2578_v7 = vsel %vm2575_vm3, %v2577_v5, %v2573_v59 }
 0x9a2   : > { %2597 = vperm.xlu1 %3049, %v2578_v7  }
 0xa13   : > { %v2603_v51 = vpop.permute.xlu0 %2602 }
 0xa14   : > { %v2598_v43 = vpop.permute.xlu1 %2597  ;;  %v2607_v9 = vmul.f32 %v2603_v51, %v2516_v38  ;;  %v2608_v54 = vmul.f32 %v2603_v51, %v2517_v13 }
 0xa15   : > { %v2605_v42 = vmul.f32 %v2598_v43, %v2514_v56  ;;  %v2606_v55 = vmul.f32 %v2598_v43, %v2515_v60 }
 0xa16   : > { %v2619_v63 = vadd.f32 %v3860_v44, %v2607_v9  ;;  %v2620_v49 = vadd.f32 %v3862_v61, %v2608_v54 }
 0xa17   : > { %v2617_v18 = vadd.f32 %v3850_v27, %v2605_v42  ;;  %v2618_v38 = vadd.f32 %v3852_v12, %v2606_v55 }
 0xa18   : > { %2623 = vst [vmem:[%s548_s29 + $0x10] sm:$0xff] %v2619_v63 }
 0xa19   : > { %2621 = vst [vmem:[%s548_s29] sm:$0xff] %v2617_v18 }
 0xa1a   : > { %2622 = vst [vmem:[%s548_s29 + $0x8] sm:$0xff] %v2618_v38 }
 0xa1b   : > { %2624 = vst [vmem:[%s548_s29 + $0x18] sm:$0xff] %v2620_v49 }
 0xa1c PF: > { %s27_s24 = sadd.s32 1, %s3116_s24  }
 0xa1d   : > { %p24_p4 = scmp.ge.s32.totalorder %s27_s24, 4  }
 0xa1f   :  { %26 = sbr.rel (!%p24_p4) target bundleno = 3 (0x3), region = 118 }

</bundles_post_ra>
